<compile_context>
chip_gen: v7x
topology: tpu7x:2x2x1
jax: 0.10.0
libtpu: 0.0.40
codegen_flags: <defaults>
</compile_context>

<pallas_src>
import jax
import jax.numpy as jnp
from jax import lax
from jax.experimental import pallas as pl
from jax.experimental.pallas import tpu as pltpu

LANE = 128
_VMEM_LIMIT = 64 * 1024 * 1024  # tiles here are tiny; larger limit helps v5e/v6e scale-up


def _round_up(v, m):
    return ((v + m - 1) // m) * m


def _pick_cout_tile(cout_p, target=256):
    """Largest multiple of 128 <= target that divides cout_p (cout_p is 128-aligned)."""
    best = cout_p
    t = LANE
    while t <= min(target, cout_p):
        if cout_p % t == 0:
            best = t
        t += LANE
    return best


# --------------------- producer: bn1 + ReLU + zero-pad ----------------------

def _make_bn_relu_pad_kernel(H, W):
    def kernel(x_ref, s_ref, b_ref, o_ref):
        # y = relu(x * scale + bias), computed in f32, stored bf16 into the
        # interior of the zero-initialized spatially padded output tile.
        y = jnp.maximum(x_ref[...].astype(jnp.float32) * s_ref[...] + b_ref[...], 0.0)
        o_ref[...] = jnp.zeros_like(o_ref)
        o_ref[1:H + 1, 1:W + 1, :] = y.astype(o_ref.dtype)
    return kernel


def bn_relu_pad(x, scale, bias, Hp, Wp, out_dtype=jnp.bfloat16):
    """x: (N, H, W, C) bf16 -> (N, Hp, Wp, C) `out_dtype`, zero spatial border,
    interior = relu(x*scale + bias)."""
    N, H, W, C = x.shape
    return pl.pallas_call(
        _make_bn_relu_pad_kernel(H, W),
        out_shape=jax.ShapeDtypeStruct((N, Hp, Wp, C), out_dtype),
        grid=(N,),
        in_specs=[pl.BlockSpec((None, H, W, C), lambda n: (n, 0, 0, 0)),
                  pl.BlockSpec((1, 1, C), lambda n: (0, 0, 0)),
                  pl.BlockSpec((1, 1, C), lambda n: (0, 0, 0))],
        out_specs=pl.BlockSpec((None, Hp, Wp, C), lambda n: (n, 0, 0, 0)),
        compiler_params=pltpu.CompilerParams(
            dimension_semantics=("parallel",),
            vmem_limit_bytes=_VMEM_LIMIT),
    )(x, scale.reshape(1, 1, C).astype(jnp.float32),
      bias.reshape(1, 1, C).astype(jnp.float32))


# ----------------------------- fused 3x3 conv --------------------------------

def _make_conv3x3_kernel(stride, Ho, Wo, Cin_p, fuse_bn_relu, fuse_shortcut,
                         fuse_residual, pad_out):
    """3x3 conv over one image / one Cout tile.  The 3 kj taps of each ki are
    stacked along K (partial im2col in VMEM) -> 3 MXU matmuls with K=3*Cin_p,
    accumulated in a jnp f32 value (single accumulator write).  Optional fused
    epilogues: bn2+ReLU, residual add, fused 1x1 shortcut (second output), and
    spatially zero-padded output (so the next conv needs no XLA pad pass)."""
    def kernel(*refs):
        it = iter(refs)
        x_ref = next(it)                     # (P, Hh, Wh, Cin_p) bf16 (batch squeezed)
        w_ref = next(it)                     # (3, 3*Cin_p, cot)  bf16
        s_ref = b_ref = ws_ref = r_ref = None
        if fuse_bn_relu:
            s_ref = next(it)                 # (1, cot) f32
            b_ref = next(it)                 # (1, cot) f32
        if fuse_shortcut:
            ws_ref = next(it)                # (Cin_p, cot) bf16
        if fuse_residual:
            r_ref = next(it)                 # (Ho, Wo, cot) bf16
        o_ref = next(it)                     # (Ho[+2], Wo[+2], cot)
        sc_ref = next(it) if fuse_shortcut else None

        acc = None
        for ki in range(3):
            parts = []
            for kj in range(3):
                p = (ki % stride) * stride + (kj % stride)
                oi, oj = ki // stride, kj // stride
                win = x_ref[p, oi:oi + Ho, oj:oj + Wo, :]        # (Ho, Wo, Cin_p)
                parts.append(win.reshape(Ho * Wo, Cin_p))
            a = jnp.concatenate(parts, axis=-1)                  # (Ho*Wo, 3*Cin_p)
            d = jnp.dot(a, w_ref[ki], preferred_element_type=jnp.float32)
            acc = d if acc is None else acc + d

        if fuse_bn_relu:                       # folded BN affine + ReLU epilogue
            acc = jnp.maximum(acc * s_ref[...] + b_ref[...], 0.0)
        if fuse_residual:                      # residual add epilogue
            acc = acc + r_ref[...].reshape(Ho * Wo, -1).astype(jnp.float32)
        out = acc.reshape(Ho, Wo, -1).astype(o_ref.dtype)

        if pad_out:                            # emit spatially pre-padded output
            o_ref[...] = jnp.zeros_like(o_ref)
            o_ref[1:Ho + 1, 1:Wo + 1, :] = out
        else:
            o_ref[...] = out

        if fuse_shortcut:                      # 1x1 stride-s conv == center-tap matmul
            pc = (1 % stride) * stride + (1 % stride)
            oc = 1 // stride
            c = x_ref[pc, oc:oc + Ho, oc:oc + Wo, :].reshape(Ho * Wo, Cin_p)
            r = jnp.dot(c, ws_ref[...], preferred_element_type=jnp.float32)
            sc_ref[...] = r.reshape(Ho, Wo, -1).astype(sc_ref.dtype)
    return kernel


def conv3x3_fused(xph, w_k, *, stride, Ho, Wo, scale=None, bias=None,
                  w_short=None, residual=None, pad_out=False,
                  out_dtype=jnp.bfloat16):
    """xph: (N, stride^2, Hh, Wh, Cin_p) bf16 (zero-padded, phase-split activation),
    w_k: (3, 3*Cin_p, Cout_p) bf16 (kj stacked along K).  Grid = (Cout tiles, batch),
    both parallel; Cout outermost so weight blocks are not re-fetched per image."""
    N, P, Hh, Wh, Cin_p = xph.shape
    KK, K3, Cout_p = w_k.shape
    assert KK == 3 and K3 == 3 * Cin_p and P == stride * stride
    assert 2 // stride + Ho <= Hh and 2 // stride + Wo <= Wh
    cot = _pick_cout_tile(Cout_p)
    n_co = Cout_p // cot
    Hop, Wop = (Ho + 2, Wo + 2) if pad_out else (Ho, Wo)

    fuse_bn = scale is not None
    fuse_sc = w_short is not None
    fuse_res = residual is not None

    in_specs = [
        pl.BlockSpec((None, P, Hh, Wh, Cin_p), lambda co, n: (n, 0, 0, 0, 0)),
        pl.BlockSpec((3, K3, cot), lambda co, n: (0, 0, co)),
    ]
    args = [xph, w_k]
    if fuse_bn:
        in_specs += [pl.BlockSpec((1, cot), lambda co, n: (0, co)),
                     pl.BlockSpec((1, cot), lambda co, n: (0, co))]
        args += [scale.reshape(1, Cout_p).astype(jnp.float32),
                 bias.reshape(1, Cout_p).astype(jnp.float32)]
    if fuse_sc:
        in_specs.append(pl.BlockSpec((Cin_p, cot), lambda co, n: (0, co)))
        args.append(w_short)
    if fuse_res:
        in_specs.append(pl.BlockSpec((None, Ho, Wo, cot),
                                     lambda co, n: (n, 0, 0, co)))
        args.append(residual)

    out_shape = [jax.ShapeDtypeStruct((N, Hop, Wop, Cout_p), out_dtype)]
    out_specs = [pl.BlockSpec((None, Hop, Wop, cot), lambda co, n: (n, 0, 0, co))]
    if fuse_sc:
        out_shape.append(jax.ShapeDtypeStruct((N, Ho, Wo, Cout_p), jnp.bfloat16))
        out_specs.append(pl.BlockSpec((None, Ho, Wo, cot),
                                      lambda co, n: (n, 0, 0, co)))

    return pl.pallas_call(
        _make_conv3x3_kernel(stride, Ho, Wo, Cin_p, fuse_bn, fuse_sc,
                             fuse_res, pad_out),
        out_shape=tuple(out_shape) if fuse_sc else out_shape[0],
        grid=(n_co, N),
        in_specs=in_specs,
        out_specs=tuple(out_specs) if fuse_sc else out_specs[0],
        compiler_params=pltpu.CompilerParams(
            dimension_semantics=("parallel", "parallel"),
            vmem_limit_bytes=_VMEM_LIMIT),
    )(*args)


# ------------------------------- JAX glue ------------------------------------

def _prep_conv3x3_weight(w_oihw, cin_p, cout_p):
    """(Cout, Cin, 3, 3) -> (3, 3*Cin_p, Cout_p) bf16; rows ordered kj-major then Cin
    (matches the in-kernel kj concatenation along K)."""
    co, ci, kh, kw = w_oihw.shape
    w = jnp.transpose(w_oihw, (2, 3, 1, 0))                    # (ki, kj, Cin, Cout)
    w = jnp.pad(w, ((0, 0), (0, 0), (0, cin_p - ci), (0, cout_p - co)))
    return w.reshape(kh, kw * cin_p, cout_p).astype(jnp.bfloat16)


def _prep_conv1x1_weight(w_oihw, cin_p, cout_p):
    co, ci, _, _ = w_oihw.shape
    w = jnp.transpose(w_oihw.reshape(co, ci), (1, 0))
    w = jnp.pad(w, ((0, cin_p - ci), (0, cout_p - co)))
    return w.astype(jnp.bfloat16)


def init_basic_block(key, in_planes, out_planes, stride):
    ks = jax.random.split(key, 11)
    p = {
        "bn1_gamma": jax.random.uniform(ks[0], (in_planes,), jnp.float32, 0.5, 1.5),
        "bn1_beta":  0.1 * jax.random.normal(ks[1], (in_planes,), jnp.float32),
        "bn1_mean":  0.1 * jax.random.normal(ks[2], (in_planes,), jnp.float32),
        "bn1_var":   jax.random.uniform(ks[3], (in_planes,), jnp.float32, 0.5, 1.5),
        "conv1_w":   0.1 * jax.random.normal(ks[4], (out_planes, in_planes, 3, 3), jnp.float32),
        "bn2_gamma": jax.random.uniform(ks[5], (out_planes,), jnp.float32, 0.5, 1.5),
        "bn2_beta":  0.1 * jax.random.normal(ks[6], (out_planes,), jnp.float32),
        "bn2_mean":  0.1 * jax.random.normal(ks[7], (out_planes,), jnp.float32),
        "bn2_var":   jax.random.uniform(ks[8], (out_planes,), jnp.float32, 0.5, 1.5),
        "conv2_w":   0.1 * jax.random.normal(ks[9], (out_planes, out_planes, 3, 3), jnp.float32),
    }
    if not (in_planes == out_planes and stride == 1):
        p["convs_w"] = 0.1 * jax.random.normal(
            ks[10], (out_planes, in_planes, 1, 1), jnp.float32)
    return p


def basic_block_forward(params, x_nchw, in_planes, out_planes, stride,
                        droprate=0.0, eps=1e-5):
    assert droprate == 0.0  # TODO(synk): dropout path not implemented
    equal_in_out = (in_planes == out_planes) and (stride == 1)
    N, _, H, W = x_nchw.shape
    Cin_p = _round_up(in_planes, LANE)
    Cout_p = _round_up(out_planes, LANE)
    Ho = (H + 2 - 3) // stride + 1
    Wo = (W + 2 - 3) // stride + 1

    # single layout pass at the block boundary: NCHW f32 -> NHWC bf16, lane-padded.
    x = jnp.transpose(x_nchw, (0, 2, 3, 1))
    x = jnp.pad(x, ((0, 0), (0, 0), (0, 0), (0, Cin_p - in_planes)))
    x = x.astype(jnp.bfloat16)

    # folded (eval-mode) BN affines; zero-padded channels stay exactly zero.
    s1 = params["bn1_gamma"] / jnp.sqrt(params["bn1_var"] + eps)
    b1 = params["bn1_beta"] - params["bn1_mean"] * s1
    s1 = jnp.pad(s1, (0, Cin_p - in_planes))
    b1 = jnp.pad(b1, (0, Cin_p - in_planes))
    s2 = params["bn2_gamma"] / jnp.sqrt(params["bn2_var"] + eps)
    b2 = params["bn2_beta"] - params["bn2_mean"] * s2
    s2 = jnp.pad(s2, (0, Cout_p - out_planes))
    b2 = jnp.pad(b2, (0, Cout_p - out_planes))

    w1 = _prep_conv3x3_weight(params["conv1_w"], Cin_p, Cout_p)
    w2 = _prep_conv3x3_weight(params["conv2_w"], Cout_p, Cout_p)

    # ---- fused bn1 + relu + spatial zero-pad producer (bf16, one HBM pass) ----
    Hp = _round_up(H + 2, stride)
    Wp = _round_up(W + 2, stride)
    act1p = bn_relu_pad(x, s1, b1, Hp, Wp)                 # (N, Hp, Wp, Cin_p) bf16

    if stride == 1:
        xph1 = act1p[:, None]                              # free unit-axis reshape
    else:
        # space-to-depth phase split so in-kernel strided-conv windows are
        # contiguous static slices (strided stage-transition blocks only).
        xph1 = jnp.stack([act1p[:, i::stride, j::stride, :]
                          for i in range(stride) for j in range(stride)], axis=1)

    # ---- conv1 (+ fused bn2+relu, + fused 1x1 shortcut), pre-padded output ----
    if equal_in_out:
        act2p = conv3x3_fused(xph1, w1, stride=stride, Ho=Ho, Wo=Wo,
                              scale=s2, bias=b2, pad_out=True)
        residual = x                                       # identity shortcut (bf16)
    else:
        ws = _prep_conv1x1_weight(params["convs_w"], Cin_p, Cout_p)
        act2p, residual = conv3x3_fused(xph1, w1, stride=stride, Ho=Ho, Wo=Wo,
                                        scale=s2, bias=b2, w_short=ws,
                                        pad_out=True)

    # ---- conv2 (stride 1) with the residual add fused into its epilogue ----
    out = conv3x3_fused(act2p[:, None], w2, stride=1, Ho=Ho, Wo=Wo,
                        residual=residual, pad_out=False,
                        out_dtype=jnp.bfloat16)

    out = out[..., :out_planes]
    return jnp.transpose(out, (0, 3, 1, 2)).astype(jnp.float32)   # back to NCHW f32


# --------------------------- pure-JAX reference ------------------------------

def reference_forward(params, x_nchw, in_planes, out_planes, stride, eps=1e-5):
    x = x_nchw.astype(jnp.float32)

    def bn(v, g, b, m, s):
        return (g[None, :, None, None] * (v - m[None, :, None, None])
                / jnp.sqrt(s[None, :, None, None] + eps) + b[None, :, None, None])

    def conv(v, w, st, pad):
        return lax.conv_general_dilated(
            v, w, (st, st), [(pad, pad), (pad, pad)],
            dimension_numbers=("NCHW", "OIHW", "NCHW"))

    equal = (in_planes == out_planes) and (stride == 1)
    a = jax.nn.relu(bn(x, params["bn1_gamma"], params["bn1_beta"],
                       params["bn1_mean"], params["bn1_var"]))
    short = x if equal else conv(a, params["convs_w"], stride, 0)
    out = conv(a, params["conv1_w"], stride, 1)
    out = jax.nn.relu(bn(out, params["bn2_gamma"], params["bn2_beta"],
                         params["bn2_mean"], params["bn2_var"]))
    out = conv(out, params["conv2_w"], 1, 1)
    return short + out


# ---------------------------------- main -------------------------------------

if __name__ == "__main__":
    key = jax.random.PRNGKey(0)
    k_x1, k_p1, k_x2, k_p2 = jax.random.split(key, 4)

    # bf16 MXU operands / bf16 streamed intermediates vs an all-f32 reference
    ATOL = RTOL = 5e-2
    fwd = jax.jit(basic_block_forward, static_argnums=(2, 3, 4))

    # Case 1: in_planes != out_planes, stride=2 -> fused convShortcut path
    in_p, out_p, stride = 4, 8, 2
    x = jax.random.normal(k_x1, (2, in_p, 16, 16), jnp.float32)
    params = init_basic_block(k_p1, in_p, out_p, stride)
    y = jax.block_until_ready(fwd(params, x, in_p, out_p, stride))
    assert y.shape == (2, out_p, 8, 8)
    y_ref = reference_forward(params, x, in_p, out_p, stride)
    assert jnp.allclose(y, y_ref, atol=ATOL, rtol=RTOL), (
        "mismatch (shortcut case), max err = %e"
        % float(jnp.max(jnp.abs(y - y_ref))))

    # Case 2: equalInOut -> identity shortcut
    in_p2, out_p2, stride2 = 8, 8, 1
    x2 = jax.random.normal(k_x2, (2, in_p2, 16, 16), jnp.float32)
    params2 = init_basic_block(k_p2, in_p2, out_p2, stride2)
    y2 = jax.block_until_ready(fwd(params2, x2, in_p2, out_p2, stride2))
    assert y2.shape == (2, out_p2, 16, 16)
    y2_ref = reference_forward(params2, x2, in_p2, out_p2, stride2)
    assert jnp.allclose(y2, y2_ref, atol=ATOL, rtol=RTOL), (
        "mismatch (identity case), max err = %e"
        % float(jnp.max(jnp.abs(y2 - y2_ref))))

    print("KERNEL_OK")
</pallas_src>

<mosaic_0001>
module attributes {stable_mosaic.version = 11 : i64} {
  func.func @kernel(%arg0: i32, %arg1: memref<1x16x16x128xbf16, #tpu.memory_space<vmem>>, %arg2: memref<1x1x128xf32, #tpu.memory_space<vmem>>, %arg3: memref<1x1x128xf32, #tpu.memory_space<vmem>>, %arg4: memref<1x18x18x128xbf16, #tpu.memory_space<vmem>>) attributes {dimension_semantics = [#tpu.dimension_semantics<parallel>], iteration_bounds = array<i64: 2>, scalar_prefetch = 0 : i64, scratch_operands = 0 : i64, tpu.core_type = #tpu.core_type<tc>, window_params = [{transform_indices = @transform_0, window_bounds = array<i64: 1, 16, 16, 128>}, {pipeline_mode = #tpu.pipeline_mode<synchronous>, transform_indices = @transform_1, window_bounds = array<i64: 1, 1, 128>}, {pipeline_mode = #tpu.pipeline_mode<synchronous>, transform_indices = @transform_2, window_bounds = array<i64: 1, 1, 128>}, {transform_indices = @transform_3, window_bounds = array<i64: 1, 18, 18, 128>}]} {
    %c0 = arith.constant 0 : index
    %c0_0 = arith.constant 0 : index
    %c0_1 = arith.constant 0 : index
    %c0_2 = arith.constant 0 : index
    %0 = vector.load %arg1[%c0, %c0_0, %c0_1, %c0_2] : memref<1x16x16x128xbf16, #tpu.memory_space<vmem>>, vector<1x16x16x128xbf16>
    %1 = vector.shape_cast %0 : vector<1x16x16x128xbf16> to vector<16x16x128xbf16>
    %2 = arith.extf %1 : vector<16x16x128xbf16> to vector<16x16x128xf32>
    %c0_3 = arith.constant 0 : index
    %c0_4 = arith.constant 0 : index
    %c0_5 = arith.constant 0 : index
    %3 = vector.load %arg2[%c0_3, %c0_4, %c0_5] : memref<1x1x128xf32, #tpu.memory_space<vmem>>, vector<1x1x128xf32>
    %4 = vector.broadcast %3 : vector<1x1x128xf32> to vector<16x16x128xf32>
    %5 = arith.mulf %2, %4 : vector<16x16x128xf32>
    %c0_6 = arith.constant 0 : index
    %c0_7 = arith.constant 0 : index
    %c0_8 = arith.constant 0 : index
    %6 = vector.load %arg3[%c0_6, %c0_7, %c0_8] : memref<1x1x128xf32, #tpu.memory_space<vmem>>, vector<1x1x128xf32>
    %7 = vector.broadcast %6 : vector<1x1x128xf32> to vector<16x16x128xf32>
    %8 = arith.addf %5, %7 : vector<16x16x128xf32>
    %cst = arith.constant 0.000000e+00 : f32
    %9 = vector.broadcast %cst : f32 to vector<16x16x128xf32>
    %10 = arith.maximumf %8, %9 : vector<16x16x128xf32>
    %cst_9 = arith.constant 0.000000e+00 : bf16
    %11 = vector.broadcast %cst_9 : bf16 to vector<18x18x128xbf16>
    %c0_10 = arith.constant 0 : index
    %c0_11 = arith.constant 0 : index
    %c0_12 = arith.constant 0 : index
    %c0_13 = arith.constant 0 : index
    %12 = vector.load %arg4[%c0_10, %c0_11, %c0_12, %c0_13] : memref<1x18x18x128xbf16, #tpu.memory_space<vmem>>, vector<1x18x18x128xbf16>
    %13 = vector.shape_cast %12 : vector<1x18x18x128xbf16> to vector<18x18x128xbf16>
    %14 = vector.shape_cast %11 : vector<18x18x128xbf16> to vector<1x18x18x128xbf16>
    tpu.vector_store %arg4[%c0_10, %c0_11, %c0_12, %c0_13], %14 {strides = array<i32>} : memref<1x18x18x128xbf16, #tpu.memory_space<vmem>>, vector<1x18x18x128xbf16>,
    %15 = arith.truncf %10 : vector<16x16x128xf32> to vector<16x16x128xbf16>
    %c0_14 = arith.constant 0 : index
    %c1 = arith.constant 1 : index
    %c1_15 = arith.constant 1 : index
    %c0_16 = arith.constant 0 : index
    %16 = vector.load %arg4[%c0_14, %c1, %c1_15, %c0_16] : memref<1x18x18x128xbf16, #tpu.memory_space<vmem>>, vector<1x16x16x128xbf16>
    %17 = vector.shape_cast %16 : vector<1x16x16x128xbf16> to vector<16x16x128xbf16>
    %18 = vector.shape_cast %15 : vector<16x16x128xbf16> to vector<1x16x16x128xbf16>
    tpu.vector_store %arg4[%c0_14, %c1, %c1_15, %c0_16], %18 {strides = array<i32>} : memref<1x18x18x128xbf16, #tpu.memory_space<vmem>>, vector<1x16x16x128xbf16>,
    return
  }
  func.func @transform_0(%arg0: i32) -> (i32, i32, i32, i32) {
    %c0_i32 = arith.constant 0 : i32
    %c0_i32_0 = arith.constant 0 : i32
    %c0_i32_1 = arith.constant 0 : i32
    %c0_i32_2 = arith.constant 0 : i32
    return %arg0, %c0_i32, %c0_i32_0, %c0_i32_1 : i32, i32, i32, i32
  }
  func.func @transform_1(%arg0: i32) -> (i32, i32, i32) {
    %c0_i32 = arith.constant 0 : i32
    %c0_i32_0 = arith.constant 0 : i32
    %c0_i32_1 = arith.constant 0 : i32
    %c0_i32_2 = arith.constant 0 : i32
    return %c0_i32, %c0_i32_0, %c0_i32_1 : i32, i32, i32
  }
  func.func @transform_2(%arg0: i32) -> (i32, i32, i32) {
    %c0_i32 = arith.constant 0 : i32
    %c0_i32_0 = arith.constant 0 : i32
    %c0_i32_1 = arith.constant 0 : i32
    %c0_i32_2 = arith.constant 0 : i32
    return %c0_i32, %c0_i32_0, %c0_i32_1 : i32, i32, i32
  }
  func.func @transform_3(%arg0: i32) -> (i32, i32, i32, i32) {
    %c0_i32 = arith.constant 0 : i32
    %c0_i32_0 = arith.constant 0 : i32
    %c0_i32_1 = arith.constant 0 : i32
    %c0_i32_2 = arith.constant 0 : i32
    return %arg0, %c0_i32, %c0_i32_0, %c0_i32_1 : i32, i32, i32, i32
  }
}

module attributes {stable_mosaic.version = 11 : i64} {
  func.func @kernel(%arg0: i32, %arg1: i32, %arg2: memref<1x4x9x9x128xbf16, #tpu.memory_space<vmem>>, %arg3: memref<3x384x128xbf16, #tpu.memory_space<vmem>>, %arg4: memref<1x128xf32, #tpu.memory_space<vmem>>, %arg5: memref<1x128xf32, #tpu.memory_space<vmem>>, %arg6: memref<128x128xbf16, #tpu.memory_space<vmem>>, %arg7: memref<1x10x10x128xbf16, #tpu.memory_space<vmem>>, %arg8: memref<1x8x8x128xbf16, #tpu.memory_space<vmem>>) attributes {dimension_semantics = [#tpu.dimension_semantics<parallel>, #tpu.dimension_semantics<parallel>], iteration_bounds = array<i64: 1, 2>, scalar_prefetch = 0 : i64, scratch_operands = 0 : i64, tpu.core_type = #tpu.core_type<tc>, window_params = [{transform_indices = @transform_0, window_bounds = array<i64: 1, 4, 9, 9, 128>}, {transform_indices = @transform_1, window_bounds = array<i64: 3, 384, 128>}, {transform_indices = @transform_2, window_bounds = array<i64: 1, 128>}, {transform_indices = @transform_3, window_bounds = array<i64: 1, 128>}, {transform_indices = @transform_4, window_bounds = array<i64: 128, 128>}, {transform_indices = @transform_5, window_bounds = array<i64: 1, 10, 10, 128>}, {transform_indices = @transform_6, window_bounds = array<i64: 1, 8, 8, 128>}]} {
    %c0 = arith.constant 0 : index
    %c0_0 = arith.constant 0 : index
    %c0_1 = arith.constant 0 : index
    %c0_2 = arith.constant 0 : index
    %c0_3 = arith.constant 0 : index
    %0 = vector.load %arg2[%c0, %c0_0, %c0_1, %c0_2, %c0_3] : memref<1x4x9x9x128xbf16, #tpu.memory_space<vmem>>, vector<1x1x8x8x128xbf16>
    %1 = vector.shape_cast %0 : vector<1x1x8x8x128xbf16> to vector<8x8x128xbf16>
    %2 = vector.shape_cast %1 : vector<8x8x128xbf16> to vector<64x128xbf16>
    %c0_4 = arith.constant 0 : index
    %c1 = arith.constant 1 : index
    %c0_5 = arith.constant 0 : index
    %c0_6 = arith.constant 0 : index
    %c0_7 = arith.constant 0 : index
    %3 = vector.load %arg2[%c0_4, %c1, %c0_5, %c0_6, %c0_7] : memref<1x4x9x9x128xbf16, #tpu.memory_space<vmem>>, vector<1x1x8x8x128xbf16>
    %4 = vector.shape_cast %3 : vector<1x1x8x8x128xbf16> to vector<8x8x128xbf16>
    %5 = vector.shape_cast %4 : vector<8x8x128xbf16> to vector<64x128xbf16>
    %c0_8 = arith.constant 0 : index
    %c0_9 = arith.constant 0 : index
    %c0_10 = arith.constant 0 : index
    %c1_11 = arith.constant 1 : index
    %c0_12 = arith.constant 0 : index
    %6 = vector.load %arg2[%c0_8, %c0_9, %c0_10, %c1_11, %c0_12] : memref<1x4x9x9x128xbf16, #tpu.memory_space<vmem>>, vector<1x1x8x8x128xbf16>
    %7 = vector.shape_cast %6 : vector<1x1x8x8x128xbf16> to vector<8x8x128xbf16>
    %8 = vector.shape_cast %7 : vector<8x8x128xbf16> to vector<64x128xbf16>
    %9 = tpu.concatenate %2, %5, %8 in 1 : vector<64x128xbf16>, vector<64x128xbf16>, vector<64x128xbf16> -> vector<64x384xbf16>
    %c0_13 = arith.constant 0 : index
    %c0_14 = arith.constant 0 : index
    %c0_15 = arith.constant 0 : index
    %10 = vector.load %arg3[%c0_13, %c0_14, %c0_15] : memref<3x384x128xbf16, #tpu.memory_space<vmem>>, vector<1x384x128xbf16>
    %11 = vector.shape_cast %10 : vector<1x384x128xbf16> to vector<384x128xbf16>
    %cst = arith.constant dense<0.000000e+00> : vector<64x128xf32>
    %12 = tpu.matmul %9, %11, %cst {dimension_numbers = #tpu.dot_dimension_numbers<[1], [0], [0], [1], [0, 0, 1, 1], [], []>} : vector<64x384xbf16>, vector<384x128xbf16>, vector<64x128xf32> -> vector<64x128xf32>
    %c0_16 = arith.constant 0 : index
    %c2 = arith.constant 2 : index
    %c0_17 = arith.constant 0 : index
    %c0_18 = arith.constant 0 : index
    %c0_19 = arith.constant 0 : index
    %13 = vector.load %arg2[%c0_16, %c2, %c0_17, %c0_18, %c0_19] : memref<1x4x9x9x128xbf16, #tpu.memory_space<vmem>>, vector<1x1x8x8x128xbf16>
    %14 = vector.shape_cast %13 : vector<1x1x8x8x128xbf16> to vector<8x8x128xbf16>
    %15 = vector.shape_cast %14 : vector<8x8x128xbf16> to vector<64x128xbf16>
    %c0_20 = arith.constant 0 : index
    %c3 = arith.constant 3 : index
    %c0_21 = arith.constant 0 : index
    %c0_22 = arith.constant 0 : index
    %c0_23 = arith.constant 0 : index
    %16 = vector.load %arg2[%c0_20, %c3, %c0_21, %c0_22, %c0_23] : memref<1x4x9x9x128xbf16, #tpu.memory_space<vmem>>, vector<1x1x8x8x128xbf16>
    %17 = vector.shape_cast %16 : vector<1x1x8x8x128xbf16> to vector<8x8x128xbf16>
    %18 = vector.shape_cast %17 : vector<8x8x128xbf16> to vector<64x128xbf16>
    %c0_24 = arith.constant 0 : index
    %c2_25 = arith.constant 2 : index
    %c0_26 = arith.constant 0 : index
    %c1_27 = arith.constant 1 : index
    %c0_28 = arith.constant 0 : index
    %19 = vector.load %arg2[%c0_24, %c2_25, %c0_26, %c1_27, %c0_28] : memref<1x4x9x9x128xbf16, #tpu.memory_space<vmem>>, vector<1x1x8x8x128xbf16>
    %20 = vector.shape_cast %19 : vector<1x1x8x8x128xbf16> to vector<8x8x128xbf16>
    %21 = vector.shape_cast %20 : vector<8x8x128xbf16> to vector<64x128xbf16>
    %22 = tpu.concatenate %15, %18, %21 in 1 : vector<64x128xbf16>, vector<64x128xbf16>, vector<64x128xbf16> -> vector<64x384xbf16>
    %c1_29 = arith.constant 1 : index
    %c0_30 = arith.constant 0 : index
    %c0_31 = arith.constant 0 : index
    %23 = vector.load %arg3[%c1_29, %c0_30, %c0_31] : memref<3x384x128xbf16, #tpu.memory_space<vmem>>, vector<1x384x128xbf16>
    %24 = vector.shape_cast %23 : vector<1x384x128xbf16> to vector<384x128xbf16>
    %cst_32 = arith.constant dense<0.000000e+00> : vector<64x128xf32>
    %25 = tpu.matmul %22, %24, %cst_32 {dimension_numbers = #tpu.dot_dimension_numbers<[1], [0], [0], [1], [0, 0, 1, 1], [], []>} : vector<64x384xbf16>, vector<384x128xbf16>, vector<64x128xf32> -> vector<64x128xf32>
    %26 = arith.addf %12, %25 : vector<64x128xf32>
    %c0_33 = arith.constant 0 : index
    %c0_34 = arith.constant 0 : index
    %c1_35 = arith.constant 1 : index
    %c0_36 = arith.constant 0 : index
    %c0_37 = arith.constant 0 : index
    %27 = vector.load %arg2[%c0_33, %c0_34, %c1_35, %c0_36, %c0_37] : memref<1x4x9x9x128xbf16, #tpu.memory_space<vmem>>, vector<1x1x8x8x128xbf16>
    %28 = vector.shape_cast %27 : vector<1x1x8x8x128xbf16> to vector<8x8x128xbf16>
    %29 = vector.shape_cast %28 : vector<8x8x128xbf16> to vector<64x128xbf16>
    %c0_38 = arith.constant 0 : index
    %c1_39 = arith.constant 1 : index
    %c1_40 = arith.constant 1 : index
    %c0_41 = arith.constant 0 : index
    %c0_42 = arith.constant 0 : index
    %30 = vector.load %arg2[%c0_38, %c1_39, %c1_40, %c0_41, %c0_42] : memref<1x4x9x9x128xbf16, #tpu.memory_space<vmem>>, vector<1x1x8x8x128xbf16>
    %31 = vector.shape_cast %30 : vector<1x1x8x8x128xbf16> to vector<8x8x128xbf16>
    %32 = vector.shape_cast %31 : vector<8x8x128xbf16> to vector<64x128xbf16>
    %c0_43 = arith.constant 0 : index
    %c0_44 = arith.constant 0 : index
    %c1_45 = arith.constant 1 : index
    %c1_46 = arith.constant 1 : index
    %c0_47 = arith.constant 0 : index
    %33 = vector.load %arg2[%c0_43, %c0_44, %c1_45, %c1_46, %c0_47] : memref<1x4x9x9x128xbf16, #tpu.memory_space<vmem>>, vector<1x1x8x8x128xbf16>
    %34 = vector.shape_cast %33 : vector<1x1x8x8x128xbf16> to vector<8x8x128xbf16>
    %35 = vector.shape_cast %34 : vector<8x8x128xbf16> to vector<64x128xbf16>
    %36 = tpu.concatenate %29, %32, %35 in 1 : vector<64x128xbf16>, vector<64x128xbf16>, vector<64x128xbf16> -> vector<64x384xbf16>
    %c2_48 = arith.constant 2 : index
    %c0_49 = arith.constant 0 : index
    %c0_50 = arith.constant 0 : index
    %37 = vector.load %arg3[%c2_48, %c0_49, %c0_50] : memref<3x384x128xbf16, #tpu.memory_space<vmem>>, vector<1x384x128xbf16>
    %38 = vector.shape_cast %37 : vector<1x384x128xbf16> to vector<384x128xbf16>
    %cst_51 = arith.constant dense<0.000000e+00> : vector<64x128xf32>
    %39 = tpu.matmul %36, %38, %cst_51 {dimension_numbers = #tpu.dot_dimension_numbers<[1], [0], [0], [1], [0, 0, 1, 1], [], []>} : vector<64x384xbf16>, vector<384x128xbf16>, vector<64x128xf32> -> vector<64x128xf32>
    %40 = arith.addf %26, %39 : vector<64x128xf32>
    %c0_52 = arith.constant 0 : index
    %c0_53 = arith.constant 0 : index
    %41 = vector.load %arg4[%c0_52, %c0_53] : memref<1x128xf32, #tpu.memory_space<vmem>>, vector<1x128xf32>
    %42 = vector.broadcast %41 : vector<1x128xf32> to vector<64x128xf32>
    %43 = arith.mulf %40, %42 : vector<64x128xf32>
    %c0_54 = arith.constant 0 : index
    %c0_55 = arith.constant 0 : index
    %44 = vector.load %arg5[%c0_54, %c0_55] : memref<1x128xf32, #tpu.memory_space<vmem>>, vector<1x128xf32>
    %45 = vector.broadcast %44 : vector<1x128xf32> to vector<64x128xf32>
    %46 = arith.addf %43, %45 : vector<64x128xf32>
    %cst_56 = arith.constant 0.000000e+00 : f32
    %47 = vector.broadcast %cst_56 : f32 to vector<64x128xf32>
    %48 = arith.maximumf %46, %47 : vector<64x128xf32>
    %49 = vector.shape_cast %48 : vector<64x128xf32> to vector<8x8x128xf32>
    %50 = arith.truncf %49 : vector<8x8x128xf32> to vector<8x8x128xbf16>
    %cst_57 = arith.constant 0.000000e+00 : bf16
    %51 = vector.broadcast %cst_57 : bf16 to vector<10x10x128xbf16>
    %c0_58 = arith.constant 0 : index
    %c0_59 = arith.constant 0 : index
    %c0_60 = arith.constant 0 : index
    %c0_61 = arith.constant 0 : index
    %52 = vector.load %arg7[%c0_58, %c0_59, %c0_60, %c0_61] : memref<1x10x10x128xbf16, #tpu.memory_space<vmem>>, vector<1x10x10x128xbf16>
    %53 = vector.shape_cast %52 : vector<1x10x10x128xbf16> to vector<10x10x128xbf16>
    %54 = vector.shape_cast %51 : vector<10x10x128xbf16> to vector<1x10x10x128xbf16>
    tpu.vector_store %arg7[%c0_58, %c0_59, %c0_60, %c0_61], %54 {strides = array<i32>} : memref<1x10x10x128xbf16, #tpu.memory_space<vmem>>, vector<1x10x10x128xbf16>,
    %c0_62 = arith.constant 0 : index
    %c1_63 = arith.constant 1 : index
    %c1_64 = arith.constant 1 : index
    %c0_65 = arith.constant 0 : index
    %55 = vector.load %arg7[%c0_62, %c1_63, %c1_64, %c0_65] : memref<1x10x10x128xbf16, #tpu.memory_space<vmem>>, vector<1x8x8x128xbf16>
    %56 = vector.shape_cast %55 : vector<1x8x8x128xbf16> to vector<8x8x128xbf16>
    %57 = vector.shape_cast %50 : vector<8x8x128xbf16> to vector<1x8x8x128xbf16>
    tpu.vector_store %arg7[%c0_62, %c1_63, %c1_64, %c0_65], %57 {strides = array<i32>} : memref<1x10x10x128xbf16, #tpu.memory_space<vmem>>, vector<1x8x8x128xbf16>,
    %c0_66 = arith.constant 0 : index
    %c3_67 = arith.constant 3 : index
    %c0_68 = arith.constant 0 : index
    %c0_69 = arith.constant 0 : index
    %c0_70 = arith.constant 0 : index
    %58 = vector.load %arg2[%c0_66, %c3_67, %c0_68, %c0_69, %c0_70] : memref<1x4x9x9x128xbf16, #tpu.memory_space<vmem>>, vector<1x1x8x8x128xbf16>
    %59 = vector.shape_cast %58 : vector<1x1x8x8x128xbf16> to vector<8x8x128xbf16>
    %60 = vector.shape_cast %59 : vector<8x8x128xbf16> to vector<64x128xbf16>
    %c0_71 = arith.constant 0 : index
    %c0_72 = arith.constant 0 : index
    %61 = vector.load %arg6[%c0_71, %c0_72] : memref<128x128xbf16, #tpu.memory_space<vmem>>, vector<128x128xbf16>
    %cst_73 = arith.constant dense<0.000000e+00> : vector<64x128xf32>
    %62 = tpu.matmul %60, %61, %cst_73 {dimension_numbers = #tpu.dot_dimension_numbers<[1], [0], [0], [1], [0, 0, 1, 1], [], []>} : vector<64x128xbf16>, vector<128x128xbf16>, vector<64x128xf32> -> vector<64x128xf32>
    %63 = vector.shape_cast %62 : vector<64x128xf32> to vector<8x8x128xf32>
    %64 = arith.truncf %63 : vector<8x8x128xf32> to vector<8x8x128xbf16>
    %c0_74 = arith.constant 0 : index
    %c0_75 = arith.constant 0 : index
    %c0_76 = arith.constant 0 : index
    %c0_77 = arith.constant 0 : index
    %65 = vector.load %arg8[%c0_74, %c0_75, %c0_76, %c0_77] : memref<1x8x8x128xbf16, #tpu.memory_space<vmem>>, vector<1x8x8x128xbf16>
    %66 = vector.shape_cast %65 : vector<1x8x8x128xbf16> to vector<8x8x128xbf16>
    %67 = vector.shape_cast %64 : vector<8x8x128xbf16> to vector<1x8x8x128xbf16>
    tpu.vector_store %arg8[%c0_74, %c0_75, %c0_76, %c0_77], %67 {strides = array<i32>} : memref<1x8x8x128xbf16, #tpu.memory_space<vmem>>, vector<1x8x8x128xbf16>,
    return
  }
  func.func @transform_0(%arg0: i32, %arg1: i32) -> (i32, i32, i32, i32, i32) {
    %c0_i32 = arith.constant 0 : i32
    %c0_i32_0 = arith.constant 0 : i32
    %c0_i32_1 = arith.constant 0 : i32
    %c0_i32_2 = arith.constant 0 : i32
    %c0_i32_3 = arith.constant 0 : i32
    return %arg1, %c0_i32, %c0_i32_0, %c0_i32_1, %c0_i32_2 : i32, i32, i32, i32, i32
  }
  func.func @transform_1(%arg0: i32, %arg1: i32) -> (i32, i32, i32) {
    %c0_i32 = arith.constant 0 : i32
    %c0_i32_0 = arith.constant 0 : i32
    %c0_i32_1 = arith.constant 0 : i32
    return %c0_i32, %c0_i32_0, %arg0 : i32, i32, i32
  }
  func.func @transform_2(%arg0: i32, %arg1: i32) -> (i32, i32) {
    %c0_i32 = arith.constant 0 : i32
    %c0_i32_0 = arith.constant 0 : i32
    return %c0_i32, %arg0 : i32, i32
  }
  func.func @transform_3(%arg0: i32, %arg1: i32) -> (i32, i32) {
    %c0_i32 = arith.constant 0 : i32
    %c0_i32_0 = arith.constant 0 : i32
    return %c0_i32, %arg0 : i32, i32
  }
  func.func @transform_4(%arg0: i32, %arg1: i32) -> (i32, i32) {
    %c0_i32 = arith.constant 0 : i32
    %c0_i32_0 = arith.constant 0 : i32
    return %c0_i32, %arg0 : i32, i32
  }
  func.func @transform_5(%arg0: i32, %arg1: i32) -> (i32, i32, i32, i32) {
    %c0_i32 = arith.constant 0 : i32
    %c0_i32_0 = arith.constant 0 : i32
    %c0_i32_1 = arith.constant 0 : i32
    return %arg1, %c0_i32, %c0_i32_0, %arg0 : i32, i32, i32, i32
  }
  func.func @transform_6(%arg0: i32, %arg1: i32) -> (i32, i32, i32, i32) {
    %c0_i32 = arith.constant 0 : i32
    %c0_i32_0 = arith.constant 0 : i32
    %c0_i32_1 = arith.constant 0 : i32
    return %arg1, %c0_i32, %c0_i32_0, %arg0 : i32, i32, i32, i32
  }
}

module attributes {stable_mosaic.version = 11 : i64} {
  func.func @kernel(%arg0: i32, %arg1: i32, %arg2: memref<1x1x10x10x128xbf16, #tpu.memory_space<vmem>>, %arg3: memref<3x384x128xbf16, #tpu.memory_space<vmem>>, %arg4: memref<1x8x8x128xbf16, #tpu.memory_space<vmem>>, %arg5: memref<1x8x8x128xbf16, #tpu.memory_space<vmem>>) attributes {dimension_semantics = [#tpu.dimension_semantics<parallel>, #tpu.dimension_semantics<parallel>], iteration_bounds = array<i64: 1, 2>, scalar_prefetch = 0 : i64, scratch_operands = 0 : i64, tpu.core_type = #tpu.core_type<tc>, window_params = [{transform_indices = @transform_0, window_bounds = array<i64: 1, 1, 10, 10, 128>}, {transform_indices = @transform_1, window_bounds = array<i64: 3, 384, 128>}, {transform_indices = @transform_2, window_bounds = array<i64: 1, 8, 8, 128>}, {transform_indices = @transform_3, window_bounds = array<i64: 1, 8, 8, 128>}]} {
    %c0 = arith.constant 0 : index
    %c0_0 = arith.constant 0 : index
    %c0_1 = arith.constant 0 : index
    %c0_2 = arith.constant 0 : index
    %c0_3 = arith.constant 0 : index
    %0 = vector.load %arg2[%c0, %c0_0, %c0_1, %c0_2, %c0_3] : memref<1x1x10x10x128xbf16, #tpu.memory_space<vmem>>, vector<1x1x8x8x128xbf16>
    %1 = vector.shape_cast %0 : vector<1x1x8x8x128xbf16> to vector<8x8x128xbf16>
    %2 = vector.shape_cast %1 : vector<8x8x128xbf16> to vector<64x128xbf16>
    %c0_4 = arith.constant 0 : index
    %c0_5 = arith.constant 0 : index
    %c0_6 = arith.constant 0 : index
    %c1 = arith.constant 1 : index
    %c0_7 = arith.constant 0 : index
    %3 = vector.load %arg2[%c0_4, %c0_5, %c0_6, %c1, %c0_7] : memref<1x1x10x10x128xbf16, #tpu.memory_space<vmem>>, vector<1x1x8x8x128xbf16>
    %4 = vector.shape_cast %3 : vector<1x1x8x8x128xbf16> to vector<8x8x128xbf16>
    %5 = vector.shape_cast %4 : vector<8x8x128xbf16> to vector<64x128xbf16>
    %c0_8 = arith.constant 0 : index
    %c0_9 = arith.constant 0 : index
    %c0_10 = arith.constant 0 : index
    %c2 = arith.constant 2 : index
    %c0_11 = arith.constant 0 : index
    %6 = vector.load %arg2[%c0_8, %c0_9, %c0_10, %c2, %c0_11] : memref<1x1x10x10x128xbf16, #tpu.memory_space<vmem>>, vector<1x1x8x8x128xbf16>
    %7 = vector.shape_cast %6 : vector<1x1x8x8x128xbf16> to vector<8x8x128xbf16>
    %8 = vector.shape_cast %7 : vector<8x8x128xbf16> to vector<64x128xbf16>
    %9 = tpu.concatenate %2, %5, %8 in 1 : vector<64x128xbf16>, vector<64x128xbf16>, vector<64x128xbf16> -> vector<64x384xbf16>
    %c0_12 = arith.constant 0 : index
    %c0_13 = arith.constant 0 : index
    %c0_14 = arith.constant 0 : index
    %10 = vector.load %arg3[%c0_12, %c0_13, %c0_14] : memref<3x384x128xbf16, #tpu.memory_space<vmem>>, vector<1x384x128xbf16>
    %11 = vector.shape_cast %10 : vector<1x384x128xbf16> to vector<384x128xbf16>
    %cst = arith.constant dense<0.000000e+00> : vector<64x128xf32>
    %12 = tpu.matmul %9, %11, %cst {dimension_numbers = #tpu.dot_dimension_numbers<[1], [0], [0], [1], [0, 0, 1, 1], [], []>} : vector<64x384xbf16>, vector<384x128xbf16>, vector<64x128xf32> -> vector<64x128xf32>
    %c0_15 = arith.constant 0 : index
    %c0_16 = arith.constant 0 : index
    %c1_17 = arith.constant 1 : index
    %c0_18 = arith.constant 0 : index
    %c0_19 = arith.constant 0 : index
    %13 = vector.load %arg2[%c0_15, %c0_16, %c1_17, %c0_18, %c0_19] : memref<1x1x10x10x128xbf16, #tpu.memory_space<vmem>>, vector<1x1x8x8x128xbf16>
    %14 = vector.shape_cast %13 : vector<1x1x8x8x128xbf16> to vector<8x8x128xbf16>
    %15 = vector.shape_cast %14 : vector<8x8x128xbf16> to vector<64x128xbf16>
    %c0_20 = arith.constant 0 : index
    %c0_21 = arith.constant 0 : index
    %c1_22 = arith.constant 1 : index
    %c1_23 = arith.constant 1 : index
    %c0_24 = arith.constant 0 : index
    %16 = vector.load %arg2[%c0_20, %c0_21, %c1_22, %c1_23, %c0_24] : memref<1x1x10x10x128xbf16, #tpu.memory_space<vmem>>, vector<1x1x8x8x128xbf16>
    %17 = vector.shape_cast %16 : vector<1x1x8x8x128xbf16> to vector<8x8x128xbf16>
    %18 = vector.shape_cast %17 : vector<8x8x128xbf16> to vector<64x128xbf16>
    %c0_25 = arith.constant 0 : index
    %c0_26 = arith.constant 0 : index
    %c1_27 = arith.constant 1 : index
    %c2_28 = arith.constant 2 : index
    %c0_29 = arith.constant 0 : index
    %19 = vector.load %arg2[%c0_25, %c0_26, %c1_27, %c2_28, %c0_29] : memref<1x1x10x10x128xbf16, #tpu.memory_space<vmem>>, vector<1x1x8x8x128xbf16>
    %20 = vector.shape_cast %19 : vector<1x1x8x8x128xbf16> to vector<8x8x128xbf16>
    %21 = vector.shape_cast %20 : vector<8x8x128xbf16> to vector<64x128xbf16>
    %22 = tpu.concatenate %15, %18, %21 in 1 : vector<64x128xbf16>, vector<64x128xbf16>, vector<64x128xbf16> -> vector<64x384xbf16>
    %c1_30 = arith.constant 1 : index
    %c0_31 = arith.constant 0 : index
    %c0_32 = arith.constant 0 : index
    %23 = vector.load %arg3[%c1_30, %c0_31, %c0_32] : memref<3x384x128xbf16, #tpu.memory_space<vmem>>, vector<1x384x128xbf16>
    %24 = vector.shape_cast %23 : vector<1x384x128xbf16> to vector<384x128xbf16>
    %cst_33 = arith.constant dense<0.000000e+00> : vector<64x128xf32>
    %25 = tpu.matmul %22, %24, %cst_33 {dimension_numbers = #tpu.dot_dimension_numbers<[1], [0], [0], [1], [0, 0, 1, 1], [], []>} : vector<64x384xbf16>, vector<384x128xbf16>, vector<64x128xf32> -> vector<64x128xf32>
    %26 = arith.addf %12, %25 : vector<64x128xf32>
    %c0_34 = arith.constant 0 : index
    %c0_35 = arith.constant 0 : index
    %c2_36 = arith.constant 2 : index
    %c0_37 = arith.constant 0 : index
    %c0_38 = arith.constant 0 : index
    %27 = vector.load %arg2[%c0_34, %c0_35, %c2_36, %c0_37, %c0_38] : memref<1x1x10x10x128xbf16, #tpu.memory_space<vmem>>, vector<1x1x8x8x128xbf16>
    %28 = vector.shape_cast %27 : vector<1x1x8x8x128xbf16> to vector<8x8x128xbf16>
    %29 = vector.shape_cast %28 : vector<8x8x128xbf16> to vector<64x128xbf16>
    %c0_39 = arith.constant 0 : index
    %c0_40 = arith.constant 0 : index
    %c2_41 = arith.constant 2 : index
    %c1_42 = arith.constant 1 : index
    %c0_43 = arith.constant 0 : index
    %30 = vector.load %arg2[%c0_39, %c0_40, %c2_41, %c1_42, %c0_43] : memref<1x1x10x10x128xbf16, #tpu.memory_space<vmem>>, vector<1x1x8x8x128xbf16>
    %31 = vector.shape_cast %30 : vector<1x1x8x8x128xbf16> to vector<8x8x128xbf16>
    %32 = vector.shape_cast %31 : vector<8x8x128xbf16> to vector<64x128xbf16>
    %c0_44 = arith.constant 0 : index
    %c0_45 = arith.constant 0 : index
    %c2_46 = arith.constant 2 : index
    %c2_47 = arith.constant 2 : index
    %c0_48 = arith.constant 0 : index
    %33 = vector.load %arg2[%c0_44, %c0_45, %c2_46, %c2_47, %c0_48] : memref<1x1x10x10x128xbf16, #tpu.memory_space<vmem>>, vector<1x1x8x8x128xbf16>
    %34 = vector.shape_cast %33 : vector<1x1x8x8x128xbf16> to vector<8x8x128xbf16>
    %35 = vector.shape_cast %34 : vector<8x8x128xbf16> to vector<64x128xbf16>
    %36 = tpu.concatenate %29, %32, %35 in 1 : vector<64x128xbf16>, vector<64x128xbf16>, vector<64x128xbf16> -> vector<64x384xbf16>
    %c2_49 = arith.constant 2 : index
    %c0_50 = arith.constant 0 : index
    %c0_51 = arith.constant 0 : index
    %37 = vector.load %arg3[%c2_49, %c0_50, %c0_51] : memref<3x384x128xbf16, #tpu.memory_space<vmem>>, vector<1x384x128xbf16>
    %38 = vector.shape_cast %37 : vector<1x384x128xbf16> to vector<384x128xbf16>
    %cst_52 = arith.constant dense<0.000000e+00> : vector<64x128xf32>
    %39 = tpu.matmul %36, %38, %cst_52 {dimension_numbers = #tpu.dot_dimension_numbers<[1], [0], [0], [1], [0, 0, 1, 1], [], []>} : vector<64x384xbf16>, vector<384x128xbf16>, vector<64x128xf32> -> vector<64x128xf32>
    %40 = arith.addf %26, %39 : vector<64x128xf32>
    %c0_53 = arith.constant 0 : index
    %c0_54 = arith.constant 0 : index
    %c0_55 = arith.constant 0 : index
    %c0_56 = arith.constant 0 : index
    %41 = vector.load %arg4[%c0_53, %c0_54, %c0_55, %c0_56] : memref<1x8x8x128xbf16, #tpu.memory_space<vmem>>, vector<1x8x8x128xbf16>
    %42 = vector.shape_cast %41 : vector<1x8x8x128xbf16> to vector<8x8x128xbf16>
    %43 = vector.shape_cast %42 : vector<8x8x128xbf16> to vector<64x128xbf16>
    %44 = arith.extf %43 : vector<64x128xbf16> to vector<64x128xf32>
    %45 = arith.addf %40, %44 : vector<64x128xf32>
    %46 = vector.shape_cast %45 : vector<64x128xf32> to vector<8x8x128xf32>
    %47 = arith.truncf %46 : vector<8x8x128xf32> to vector<8x8x128xbf16>
    %c0_57 = arith.constant 0 : index
    %c0_58 = arith.constant 0 : index
    %c0_59 = arith.constant 0 : index
    %c0_60 = arith.constant 0 : index
    %48 = vector.load %arg5[%c0_57, %c0_58, %c0_59, %c0_60] : memref<1x8x8x128xbf16, #tpu.memory_space<vmem>>, vector<1x8x8x128xbf16>
    %49 = vector.shape_cast %48 : vector<1x8x8x128xbf16> to vector<8x8x128xbf16>
    %50 = vector.shape_cast %47 : vector<8x8x128xbf16> to vector<1x8x8x128xbf16>
    tpu.vector_store %arg5[%c0_57, %c0_58, %c0_59, %c0_60], %50 {strides = array<i32>} : memref<1x8x8x128xbf16, #tpu.memory_space<vmem>>, vector<1x8x8x128xbf16>,
    return
  }
  func.func @transform_0(%arg0: i32, %arg1: i32) -> (i32, i32, i32, i32, i32) {
    %c0_i32 = arith.constant 0 : i32
    %c0_i32_0 = arith.constant 0 : i32
    %c0_i32_1 = arith.constant 0 : i32
    %c0_i32_2 = arith.constant 0 : i32
    %c0_i32_3 = arith.constant 0 : i32
    return %arg1, %c0_i32, %c0_i32_0, %c0_i32_1, %c0_i32_2 : i32, i32, i32, i32, i32
  }
  func.func @transform_1(%arg0: i32, %arg1: i32) -> (i32, i32, i32) {
    %c0_i32 = arith.constant 0 : i32
    %c0_i32_0 = arith.constant 0 : i32
    %c0_i32_1 = arith.constant 0 : i32
    return %c0_i32, %c0_i32_0, %arg0 : i32, i32, i32
  }
  func.func @transform_2(%arg0: i32, %arg1: i32) -> (i32, i32, i32, i32) {
    %c0_i32 = arith.constant 0 : i32
    %c0_i32_0 = arith.constant 0 : i32
    %c0_i32_1 = arith.constant 0 : i32
    return %arg1, %c0_i32, %c0_i32_0, %arg0 : i32, i32, i32, i32
  }
  func.func @transform_3(%arg0: i32, %arg1: i32) -> (i32, i32, i32, i32) {
    %c0_i32 = arith.constant 0 : i32
    %c0_i32_0 = arith.constant 0 : i32
    %c0_i32_1 = arith.constant 0 : i32
    return %arg1, %c0_i32, %c0_i32_0, %arg0 : i32, i32, i32, i32
  }
}

</mosaic_0001>

<bundles_post_ra>
// kernel: basic_block_forward.3
= control target key start
LH: loop header
LB: loop body
LE: loop exit
PB: predicated region body
PF: predicated region fallthrough
CT: control target
= control target key end

     0   :  { %8 = vsyncpa [#allocation3], 0  ;;  %s2180_s0 = inlined_call_operand.hbm [shape: bf16[2,16,16,128], index: 0, kind: input, shape index: {}]   ;;  %s2181_s1 = inlined_call_operand.hbm [shape: f32[1,1,128], index: 1, kind: input, shape index: {}]   ;;  %s2182_s2 = inlined_call_operand.hbm [shape: f32[1,1,128], index: 2, kind: input, shape index: {}]   ;;  %s2183_s3 = inlined_call_operand.hbm [shape: bf16[2,18,18,128], index: 3, kind: output, shape index: {}]  }
   0x1   :  { %10 = vsyncpa [#allocation3 + $0x1], 0 }
   0x2   :  { %11 = vsyncpa [#allocation6], 0 }
   0x3   :  { %12 = vsyncpa [#allocation4], 0 }
   0x4   :  { %14 = vsyncpa [#allocation4 + $0x1], 0  ;;  %s1588_s12 = smov 0   ;;  %s1590_s13 = smov 0  }
   0x5   :  { %s1592_s14 = smov 0   ;;  %s1594_s15 = smov 0  }
   0x6 LB: > { %s1609_s16 = sadd.s32 4294967295, %s1557_s15   ;;  %s1086_s17 = sadd.s32 4294967294, %s1557_s15   ;;  %s1557_s15 = sphi %s1594_s15, %s2214_s15   ;;  %s1553_s14 = sphi %s1592_s14, %s2213_s14   ;;  %s1549_s13 = sphi %s1590_s13, %s2212_s13   ;;  %s1545_s12 = sphi %s1588_s12, %s2211_s12  }
   0x7   : > { %s1613_s18 = sadd.s32 1, %s1557_s15   ;;  %s27_s19 = sadd.s32 1, %s1553_s14 }
   0x8   : > { %s24_s20 = ssub.s32 %s1557_s15, %s1613_s18  ;;  %p34_p0 = scmp.ne.s32.totalorder %s1553_s14, %s1549_s13 }
   0x9   : > { %p25_p1 = scmp.eq.s32.totalorder %s24_s20, 0  ;;  %p35_p2 = scmp.eq.s32.totalorder %s1557_s15, 0 }
   0xa   : > { %p40_p3 = scmp.ne.s32.totalorder %s1549_s13, %s1545_s12  ;;  %p2184_p4 = scmp.eq.s32.totalorder %s1609_s16, 0 }
   0xb   : > { %s1625_s21 = scalar_select %p25_p1, %s1553_s14, %s27_s19  }
   0xc   : > { %p1627_p5 = por %p35_p2, %p34_p0  ;;  %p1633_p6 = por %p2184_p4, %p40_p3 }
   0xd   : > { %p106_p7 = scmp.eq.s32.totalorder %s1609_s16, 1  ;;  %p112_p8 = scmp.eq.s32.totalorder %s1086_s17, 1 }
   0xe   : > { %s2190_s23 = scalar_select %p1633_p6, 1, 0 }
   0xf   : > { %p1087_p9 = scmp.ge.s32.totalorder %s1557_s15, 1  ;;  %p119_p10 = scmp.lt.s32.totalorder %s1557_s15, 3 }
  0x10   : > { %p1640_p11 = por %p106_p7, %p34_p0  ;;  %p1644_p12 = por %p112_p8, %p40_p3 }
  0x11   : > { %p1648_p13 = pnand %p1087_p9, %p119_p10  ;;  %s1559_s27 = smov [#allocation5]  }
  0x12   : > { %s2191_s24 = scalar_select %p1640_p11, 1, 0 }
  0x13   : > { %s2192_s25 = scalar_select %p1644_p12, 1, 0 }
  0x14   : > { %s2193_s26 = scalar_select %p1648_p13, 1, 0 }
  0x15   : > { %p1341_p2 = pneg %p1648_p13  ;;  %s132_s28 = sshll.u32 %s1559_s27, 4  ;;  %s133_s28 = int_to_ptr.vmem [resolvable:$true] %s132_s28 }
  0x16   : > { %p1358_p4 = scmp.lt.s32.totalorder %s1557_s15, 2  ;;  %p2194_p0 = scmp.eq.s32.totalorder %s1609_s16, 0 }
  0x17   : > { %s1560_s4 = smov [#allocation7]   ;;  %s1401_s8 = scalar_lea.hbm %s2181_s1, 16 }
  0x18   : > { %p1658_p7 = pnand %p1341_p2, %p2194_p0  ;;  %p1664_p3 = pnand %p1358_p4, %p1627_p5 }
  0x19   : > { %s143_s5 = sshll.u32 %s1560_s4, 4  ;;  %p1402_p8 = scmp.ne.s32.totalorder %s2181_s1, %s1401_s8  ;;  %s1668_s5 = int_to_ptr.vmem [resolvable:$true] %s143_s5 }
  0x1a   : > { %s2196_s30 = scalar_select %p1664_p3, 1, 0 }
  0x1b   : > { %p1403_p9 = pneg %p1658_p7  ;;  %p1408_p10 = scmp.lt.u32.totalorder %s1401_s8, %s2181_s1 }
  0x1d   : > { %p1404_p4 = pnand %p1403_p9, %p1402_p8 }
  0x1f   : > { %p1405_p5 = pneg %p1404_p4 }
  0x21   : > { %p1410_p2 = pnand %p1408_p10, %p1405_p5 }
  0x23   : > { %1413 = shalt.err (!%p1410_p2)
}
  0x24   : > { %s1414_s19 = scalar_lea.vmem %s133_s28, 16  ;;  %s1421_s20 = scalar_lea.vmem %s133_s28, 32 }
  0x25   : > { %p1415_p0 = scmp.ne.s32.totalorder %s133_s28, %s1414_s19  ;;  %p1422_p11 = scmp.lt.s32.totalorder %s133_s28, %s133_s28 }
  0x26   : > { %p1423_p6 = scmp.lt.s32.totalorder %s1421_s20, %s1414_s19 }
  0x27   : > { %p1417_p1 = pnand %p1415_p0, %p1403_p9 }
  0x28   : > { %p1424_p13 = por %p1423_p6, %p1422_p11 }
  0x29   : > { %p1418_p12 = pneg %p1417_p1 }
  0x2b   : > { %p1425_p3 = pnand %p1424_p13, %p1418_p12 }
  0x2d   : > { %1428 = shalt.err (!%p1425_p3)
}
  0x2e   : > { %1344 = dma.hbm_to_vmem [thread:$0]  (!%p1658_p7), %s2181_s1, 16, %s133_s28, [#allocation6]  }
  0x2f   : > { %s154_s4 = sand.u32 1, %s1553_s14   ;;  %s1429_s8 = scalar_lea.hbm %s2182_s2, 16 }
  0x30   : > { %p1430_p1 = scmp.ne.s32.totalorder %s2182_s2, %s1429_s8  ;;  %p1436_p12 = scmp.lt.u32.totalorder %s1429_s8, %s2182_s2 }
  0x32   : > { %p1432_p6 = pnand %p1430_p1, %p1403_p9 }
  0x34   : > { %p1433_p11 = pneg %p1432_p6 }
  0x36   : > { %p1438_p13 = pnand %p1436_p12, %p1433_p11 }
  0x38   : > { %1441 = shalt.err (!%p1438_p13)
}
  0x39   : > { %s1442_s28 = scalar_lea.vmem %s1668_s5, 16  ;;  %s1449_s19 = scalar_lea.vmem %s1668_s5, 32 }
  0x3a   : > { %p1443_p3 = scmp.ne.s32.totalorder %s1668_s5, %s1442_s28  ;;  %p1450_p5 = scmp.lt.s32.totalorder %s1668_s5, %s1668_s5 }
  0x3b   : > { %p1451_p10 = scmp.lt.s32.totalorder %s1449_s19, %s1442_s28 }
  0x3c   : > { %p1445_p8 = pnand %p1443_p3, %p1403_p9 }
  0x3d   : > { %p1452_p2 = por %p1451_p10, %p1450_p5 }
  0x3e   : > { %p1446_p4 = pneg %p1445_p8 }
  0x40   : > { %p1453_p0 = pnand %p1452_p2, %p1446_p4 }
  0x42   : > { %1456 = shalt.err (!%p1453_p0)
}
  0x43   : > { %1347 = dma.hbm_to_vmem [thread:$0]  (!%p1658_p7), %s2182_s2, 16, %s1668_s5, [#allocation6]  }
  0x44   : > { %s1091_s27 = sshll.u32 %s154_s4, 7  ;;  %s1215_s6 = sshll.u32 %s1557_s15, 11 }
  0x45   : > { %s1723_s9 = scalar_lea.hbm %s2180_s0, %s1215_s6  ;;  %s158_s29 = scalar_lea.vmem [#allocation2], %s1091_s27 }
  0x46   : > { %s165_s10 = sshll.u32 %s158_s29, 4  ;;  %s1727_s11 = scalar_lea.sflag [#allocation3], %s154_s4  ;;  %s1725_s10 = int_to_ptr.vmem [resolvable:$true] %s165_s10 }
  0x47   : > { %s1457_s17 = scalar_lea.hbm %s1723_s9, 2048  ;;  %p2197_p7 = scmp.ne.s32.totalorder %s2196_s30, 0 }
  0x48   : > { %p1458_p9 = scmp.ne.s32.totalorder %s1723_s9, %s1457_s17  ;;  %s1462_s19 = scalar_lea.hbm %s2180_s0, 4096 }
  0x49   : > { %p1459_p1 = pneg %p2197_p7  ;;  %p1463_p12 = scmp.lt.u32.totalorder %s1723_s9, %s2180_s0 }
  0x4a   : > { %p1464_p13 = scmp.lt.u32.totalorder %s1462_s19, %s1457_s17  ;;  %p1466_p8 = scmp.lt.u32.totalorder %s1457_s17, %s1723_s9 }
  0x4b   : > { %p1460_p6 = pnand %p1459_p1, %p1458_p9 }
  0x4c   : > { %p1465_p3 = por %p1464_p13, %p1463_p12 }
  0x4d   : > { %p1461_p11 = pneg %p1460_p6 }
  0x4e   : > { %p1467_p4 = por %p1466_p8, %p1465_p3 }
  0x50   : > { %p1468_p5 = pnand %p1467_p4, %p1461_p11 }
  0x52   : > { %1471 = shalt.err (!%p1468_p5)
}
  0x53   : > { %s1472_s4 = scalar_lea.vmem %s1725_s10, 2048  ;;  %s1561_s27 = smov [#allocation2]  }
  0x54   : > { %p1473_p10 = scmp.ne.s32.totalorder %s1725_s10, %s1472_s4  ;;  %s1477_s6 = sshll.u32 %s1561_s27, 4  ;;  %s1478_s6 = int_to_ptr.vmem [resolvable:$false] %s1477_s6 }
  0x55   : > { %s1479_s7 = scalar_lea.vmem %s1478_s6, 4096  ;;  %p1480_p9 = scmp.lt.s32.totalorder %s1725_s10, %s1478_s6 }
  0x56   : > { %p1475_p2 = pnand %p1473_p10, %p1459_p1  ;;  %p1481_p6 = scmp.lt.s32.totalorder %s1479_s7, %s1472_s4 }
  0x58   : > { %p1476_p0 = pneg %p1475_p2  ;;  %p1482_p12 = por %p1481_p6, %p1480_p9 }
  0x5a   : > { %p1483_p13 = pnand %p1482_p12, %p1476_p0 }
  0x5c   : > { %1486 = shalt.err (!%p1483_p13)
}
  0x5d   : > { %s1562_s8 = smov 64   ;;  %s1563_s29 = smov 4  }
  0x5e   : > { %1351 = dma.hbm_to_vmem [thread:$0]  (!%p2197_p7), %s1723_s9, 2048, %s1725_s10, %s1727_s11, %s1562_s8, %s1562_s8, %s1563_s29  }
  0x5f   : > { %p2198_p1 = scmp.ne.s32.totalorder %s2193_s26, 0 }
  0x60   : > { %s1758_s17 = sand.u32 (!%p2198_p1), 1, %s1549_s13   ;;  %p2199_p11 = scmp.ne.s32.totalorder (!%p2198_p1), %s2190_s23, 0 }
  0x61   : > { %177 = sbr.rel (%p2198_p1) target bundleno = 231 (0xe7), region = 32  ;;  %s1095_s5 = sshll.u32 (!%p2198_p1), %s1758_s17, 7 }
  0x62   : > { %s180_s28 = scalar_lea.sflag (!%p2198_p1), [#allocation3], %s1758_s17  ;;  %s1762_s19 = scalar_lea.vmem (!%p2198_p1), [#allocation2], %s1095_s5 }
  0x68   : > { %1532 = dma.done.wait (%p2199_p11), %s180_s28, 2048  }
  0x69   : > { %1534 = vsyncadd (%p2199_p11), %s180_s28, 4294965248  ;;  %p2200_p7 = scmp.eq.s32.totalorder %s1609_s16, 0 }
  0x6b   : > { %1536 = dma.done.wait (%p2200_p7), [#allocation6], 32   ;;  %p2201_p3 = pmov %p2200_p7 }
  0x6c   : > { %s1327_s26 = smul.u32 216, %s1758_s17  ;;  %v1564_v0 = vmov 0   ;;  %v1249_v1 = vld [vmem:[%s1762_s19] sm:$0xff]   ;;  %vm863_vm0 = vcmask 1043456   ;;  %vm864_vm1 = vsmask.f32 7938 }
  0x6d   : > { %1538 = vsyncadd (%p2201_p3), [#allocation6], 4294967264  ;;  %v1830_v2 = vld [vmem:[#allocation5] ss:$0 sm:$0xff]  ;;  %v1250_v3 = vunpack.c.l.bf16 %v1249_v1  ;;  %v1251_v4 = vunpack.c.h.bf16 %v1249_v1  ;;  %v1312_v5 = vld [vmem:[%s1762_s19 + $0x8] sm:$0xff]   ;;  %vm870_vm4 = vcmask 1040384  }
  0x6e   : > { %s1773_s30 = scalar_lea.vmem [#allocation8], %s1327_s26  ;;  %v1313_v6 = vld [vmem:[%s1762_s19 + $0x10] sm:$0xff]   ;;  %v1314_v7 = vld [vmem:[%s1762_s19 + $0x18] sm:$0xff]   ;;  %v1835_v8 = vld [vmem:[#allocation7] ss:$0 sm:$0xff]  ;;  %v1254_v9 = vunpack.c.l.bf16 %v1312_v5  ;;  %v1255_v10 = vunpack.c.h.bf16 %v1312_v5  ;;  %s1328_s23 = smul.u32 3456, %s1609_s16 }
  0x6f   : > { %392 = vst [vmem:[%s1773_s30 + $0xc] sm:$0xf] %v1564_v0  ;;  %389 = vst [vmem:[%s1773_s30] sm:$0xf] %v1564_v0  ;;  %vm539_vm2 = vsmask.f32 256  ;;  %v1258_v11 = vunpack.c.l.bf16 %v1313_v6  ;;  %v1259_v12 = vunpack.c.h.bf16 %v1313_v6  ;;  %v286_v13 = vmul.f32 %v1250_v3, %v1830_v2  ;;  %s994_s9 = sshll.u32 %s1773_s30, 4  ;;  %s2116_s9 = int_to_ptr.vmem [resolvable:$true] %s994_s9 }
  0x70   : > { %390 = vst [vmem:[%s1773_s30 + $0x4] sm:$0xf] %v1564_v0  ;;  %391 = vst [vmem:[%s1773_s30 + $0x8] sm:$0x1] %v1564_v0  ;;  %vm540_vm3 = vsmask.f32 4368  ;;  %v287_v14 = vmul.f32 %v1251_v4, %v1830_v2  ;;  %v1262_v15 = vunpack.c.l.bf16 %v1314_v7  ;;  %v1263_v16 = vunpack.c.h.bf16 %v1314_v7  ;;  %s2127_s11 = scalar_lea.hbm %s2183_s3, %s1328_s23 }
  0x71   : > { %393 = vst [vmem:[%s1773_s30 + $0x10] sm:$0xf] %v1564_v0  ;;  %394 = vst [vmem:[%s1773_s30 + $0x14] sm:$0x1] %v1564_v0  ;;  %v288_v17 = vmul.f32 %v1254_v9, %v1830_v2  ;;  %v289_v18 = vmul.f32 %v1255_v10, %v1830_v2  ;;  %v290_v19 = vmul.f32 %v1258_v11, %v1830_v2  ;;  %s981_s20 = scalar_lea.sflag [#allocation4], %s1758_s17  ;;  %s1487_s22 = scalar_lea.vmem %s2116_s9, 3456 }
  0x72   : > { %395 = vst [vmem:[%s1773_s30 + $0x18] sm:$0xf] %v1564_v0  ;;  %396 = vst [vmem:[%s1773_s30 + $0x1c] sm:$0xf] %v1564_v0  ;;  %v291_v20 = vmul.f32 %v1259_v12, %v1830_v2  ;;  %v325_v21 = vadd.f32 %v1835_v8, %v286_v13  ;;  %v326_v22 = vadd.f32 %v1835_v8, %v287_v14  ;;  %p1488_p8 = scmp.ne.s32.totalorder %s2116_s9, %s1487_s22  ;;  %p2208_p4 = scmp.ne.s32.totalorder %s2191_s24, 0 }
  0x73   : > { %397 = vst [vmem:[%s1773_s30 + $0x20] sm:$0x1] %v1564_v0  ;;  %398 = vst [vmem:[%s1773_s30 + $0x24] sm:$0xf] %v1564_v0  ;;  %v292_v23 = vmul.f32 %v1262_v15, %v1830_v2  ;;  %v293_v24 = vmul.f32 %v1263_v16, %v1830_v2  ;;  %v327_v25 = vadd.f32 %v1835_v8, %v288_v17  ;;  %s1565_s4 = smov [#allocation8]  }
  0x74   : > { %399 = vst [vmem:[%s1773_s30 + $0x28] sm:$0xf] %v1564_v0  ;;  %400 = vst [vmem:[%s1773_s30 + $0x2c] sm:$0x1] %v1564_v0  ;;  %v328_v26 = vadd.f32 %v1835_v8, %v289_v18  ;;  %v329_v27 = vadd.f32 %v1835_v8, %v290_v19  ;;  %v330_v28 = vadd.f32 %v1835_v8, %v291_v20  ;;  %v357_v29 = vmax.f32 %v325_v21, 0.0  ;;  %v1315_v18 = vld [vmem:[%s1762_s19 + $0x20] sm:$0xff]   ;;  %p1489_p5 = pnand %p1488_p8, %p2208_p4 }
  0x75   : > { %401 = vst [vmem:[%s1773_s30 + $0x30] sm:$0xf] %v1564_v0  ;;  %402 = vst [vmem:[%s1773_s30 + $0x34] sm:$0xf] %v1564_v0  ;;  %v358_v30 = vmax.f32 %v326_v22, 0.0  ;;  %v1852_v31 = vadd.f32 %v1835_v8, %v292_v23  ;;  %v1855_v32 = vadd.f32 %v1835_v8, %v293_v24  ;;  %v359_v33 = vmax.f32 %v327_v25, 0.0 }
  0x76   : > { %403 = vst [vmem:[%s1773_s30 + $0x38] sm:$0x1] %v1564_v0  ;;  %404 = vst [vmem:[%s1773_s30 + $0x3c] sm:$0xf] %v1564_v0  ;;  %v360_v34 = vmax.f32 %v328_v26, 0.0  ;;  %v361_v35 = vmax.f32 %v329_v27, 0.0  ;;  %v1216_v37 = vpack.c.bf16 %v357_v29, %v357_v29  ;;  %p1490_p10 = pneg %p1489_p5 }
  0x77   : > { %405 = vst [vmem:[%s1773_s30 + $0x40] sm:$0xf] %v1564_v0  ;;  %406 = vst [vmem:[%s1773_s30 + $0x44] sm:$0x1] %v1564_v0  ;;  %v362_v36 = vmax.f32 %v330_v28, 0.0  ;;  %v1217_v38 = vpack.c.bf16 %v358_v30, %v358_v30  ;;  %v363_v39 = vmax.f32 %v1852_v31, 0.0  ;;  %v1218_v41 = vpack.c.bf16 %v359_v33, %v359_v33 }
  0x78   : > { %407 = vst [vmem:[%s1773_s30 + $0x48] sm:$0xf] %v1564_v0  ;;  %408 = vst [vmem:[%s1773_s30 + $0x4c] sm:$0xf] %v1564_v0  ;;  %v364_v40 = vmax.f32 %v1855_v32, 0.0  ;;  %v1219_v42 = vpack.c.bf16 %v360_v34, %v360_v34  ;;  %v1220_v43 = vpack.c.bf16 %v361_v35, %v361_v35  ;;  %v543_v45 = vshrl.u32 %v1216_v37, 16 }
  0x79   : > { %409 = vst [vmem:[%s1773_s30 + $0x50] sm:$0x1] %v1564_v0  ;;  %410 = vst [vmem:[%s1773_s30 + $0x54] sm:$0xf] %v1564_v0  ;;  %v1221_v44 = vpack.c.bf16 %v362_v36, %v362_v36  ;;  %v546_v46 = vshll.u32 %v1216_v37, 16  ;;  %v551_v47 = vshrl.u32 %v1217_v38, 16  ;;  %v1222_v27 = vpack.c.bf16 %v363_v39, %v363_v39 }
  0x7a   : > { %411 = vst [vmem:[%s1773_s30 + $0x58] sm:$0xf] %v1564_v0  ;;  %412 = vst [vmem:[%s1773_s30 + $0x5c] sm:$0x1] %v1564_v0  ;;  %v554_v48 = vshll.u32 %v1217_v38, 16  ;;  %v560_v50 = vshrl.u32 %v1218_v41, 16  ;;  %v1223_v28 = vpack.c.bf16 %v364_v40, %v364_v40  ;;  %v1266_v31 = vunpack.c.l.bf16 %v1315_v18 }
  0x7b   : > { %413 = vst [vmem:[%s1773_s30 + $0x60] sm:$0xf] %v1564_v0  ;;  %414 = vst [vmem:[%s1773_s30 + $0x64] sm:$0xf] %v1564_v0  ;;  %v563_v51 = vshll.u32 %v1218_v41, 16  ;;  %v568_v52 = vshrl.u32 %v1219_v42, 16  ;;  %v1267_v32 = vunpack.c.h.bf16 %v1315_v18 }
  0x7c   : > { %415 = vst [vmem:[%s1773_s30 + $0x68] sm:$0x1] %v1564_v0  ;;  %416 = vst [vmem:[%s1773_s30 + $0x6c] sm:$0xf] %v1564_v0  ;;  %v571_v53 = vshll.u32 %v1219_v42, 16  ;;  %v545_v54 = vrot.slane %v543_v45, 7  ;;  %v294_v42 = vmul.f32 %v1266_v31, %v1830_v2 }
  0x7d   : > { %417 = vst [vmem:[%s1773_s30 + $0x70] sm:$0xf] %v1564_v0  ;;  %418 = vst [vmem:[%s1773_s30 + $0x74] sm:$0x1] %v1564_v0  ;;  %v1132_v55 = vld [vmem:[%s1773_s30 + $0xc] sm:$0xf]  ;;  %v295_v45 = vmul.f32 %v1267_v32, %v1830_v2 }
  0x7e   : > { %419 = vst [vmem:[%s1773_s30 + $0x78] sm:$0xf] %v1564_v0  ;;  %420 = vst [vmem:[%s1773_s30 + $0x7c] sm:$0xf] %v1564_v0  ;;  %v553_v57 = vrot.slane %v551_v47, 7  ;;  %v577_v58 = vshrl.u32 %v1220_v43, 16  ;;  %v548_v3 = vor.u32 %v546_v46, %v545_v54 }
  0x7f   : > { %421 = vst [vmem:[%s1773_s30 + $0x80] sm:$0x1] %v1564_v0  ;;  %422 = vst [vmem:[%s1773_s30 + $0x84] sm:$0xf] %v1564_v0  ;;  %v580_v59 = vshll.u32 %v1220_v43, 16  ;;  %v562_v62 = vrot.slane %v560_v50, 7  ;;  %v333_v50 = vadd.f32 %v1835_v8, %v294_v42 }
  0x80   : > { %423 = vst [vmem:[%s1773_s30 + $0x88] sm:$0xf] %v1564_v0  ;;  %424 = vst [vmem:[%s1773_s30 + $0x8c] sm:$0x1] %v1564_v0  ;;  %v1135_v61 = vld [vmem:[%s1773_s30 + $0x14] sm:$0x1]  ;;  %v556_v5 = vor.u32 %v554_v48, %v553_v57 }
  0x81   : > { %425 = vst [vmem:[%s1773_s30 + $0x90] sm:$0xf] %v1564_v0  ;;  %426 = vst [vmem:[%s1773_s30 + $0x94] sm:$0xf] %v1564_v0  ;;  %v570_v63 = vrot.slane %v568_v52, 7  ;;  %v588_v1 = vshll.u32 %v1221_v44, 16  ;;  %v565_v10 = vor.u32 %v563_v51, %v562_v62 }
  0x82   : > { %427 = vst [vmem:[%s1773_s30 + $0x98] sm:$0x1] %v1564_v0  ;;  %428 = vst [vmem:[%s1773_s30 + $0x9c] sm:$0xf] %v1564_v0  ;;  %v549_v4 = vrot.slane %v545_v54, 4  ;;  %v558_v6 = vrot.slane %v553_v57, 4 }
  0x83   : > { %429 = vst [vmem:[%s1773_s30 + $0xa0] sm:$0xf] %v1564_v0  ;;  %430 = vst [vmem:[%s1773_s30 + $0xa4] sm:$0x1] %v1564_v0  ;;  %v1137_v7 = vld [vmem:[%s1773_s30 + $0x18] sm:$0xf]  ;;  %v573_v12 = vor.u32 %v571_v53, %v570_v63 }
  0x84   : > { %431 = vst [vmem:[%s1773_s30 + $0xa8] sm:$0xf] %v1564_v0  ;;  %432 = vst [vmem:[%s1773_s30 + $0xac] sm:$0xf] %v1564_v0  ;;  %v1140_v9 = vld [vmem:[%s1773_s30 + $0x20] sm:$0x1] }
  0x85   : > { %433 = vst [vmem:[%s1773_s30 + $0xb0] sm:$0x1] %v1564_v0  ;;  %434 = vst [vmem:[%s1773_s30 + $0xb4] sm:$0xf] %v1564_v0  ;;  %v566_v11 = vrot.slane %v562_v62, 4  ;;  %v575_v13 = vrot.slane %v570_v63, 4 }
  0x86   : > { %435 = vst [vmem:[%s1773_s30 + $0xb8] sm:$0xf] %v1564_v0  ;;  %436 = vst [vmem:[%s1773_s30 + $0xbc] sm:$0x1] %v1564_v0  ;;  %v579_v17 = vrot.slane %v577_v58, 7  ;;  %v1316_v33 = vld [vmem:[%s1762_s19 + $0x28] sm:$0xff]  }
  0x87   : > { %437 = vst [vmem:[%s1773_s30 + $0xc0] sm:$0xf] %v1564_v0  ;;  %438 = vst [vmem:[%s1773_s30 + $0xc4] sm:$0xf] %v1564_v0  ;;  %v1142_v22 = vld [vmem:[%s1773_s30 + $0x24] sm:$0xf]  ;;  %v1270_v46 = vunpack.c.l.bf16 %v1316_v33  ;;  %v1271_v51 = vunpack.c.h.bf16 %v1316_v33 }
  0x88   : > { %439 = vst [vmem:[%s1773_s30 + $0xc8] sm:$0x1] %v1564_v0  ;;  %440 = vst [vmem:[%s1773_s30 + $0xcc] sm:$0xf] %v1564_v0  ;;  %v582_v24 = vor.u32 %v580_v59, %v579_v17  ;;  %v583_v25 = vrot.slane %v579_v17, 4  ;;  %v594_v35 = vshrl.u32 %v1222_v27, 16 }
  0x89   : > { %441 = vst [vmem:[%s1773_s30 + $0xd0] sm:$0xf] %v1564_v0  ;;  %442 = vst [vmem:[%s1773_s30 + $0xd4] sm:$0x1] %v1564_v0  ;;  %v585_v0 = vshrl.u32 %v1221_v44, 16  ;;  %v597_v36 = vshll.u32 %v1222_v27, 16  ;;  %v296_v62 = vmul.f32 %v1270_v46, %v1830_v2  ;;  %v297_v63 = vmul.f32 %v1271_v51, %v1830_v2 }
  0x8a   : > { %vm1861_vm5 = vmand %vm863_vm0, %vm864_vm1  ;;  %v1145_v26 = vld [vmem:[%s1773_s30 + $0x2c] sm:$0x1]  ;;  %v602_v37 = vshrl.u32 %v1223_v28, 16  ;;  %v605_v41 = vshll.u32 %v1223_v28, 16  ;;  %v596_v43 = vrot.slane %v594_v35, 7  ;;  %v365_v59 = vmax.f32 %v333_v50, 0.0 }
  0x8b   : > { %vm1868_vm6 = vmor %vm539_vm2, %vm540_vm3  ;;  %v867_v14 = vsel %vm1861_vm5, %v548_v3, %v1132_v55  ;;  %v876_v19 = vsel %vm1861_vm5, %v565_v10, %v1137_v7  ;;  %v587_v23 = vrot.slane %v585_v0, 7  ;;  %v883_v34 = vsel %vm1861_vm5, %v582_v24, %v1142_v22  ;;  %v1317_v38 = vld [vmem:[%s1762_s19 + $0x30] sm:$0xff]   ;;  %v1922_v0 = vld [vmem:[%s1762_s19 + $0x38] sm:$0xff]   ;;  %s1491_s27 = sshll.u32 %s1565_s4, 4  ;;  %s1492_s27 = int_to_ptr.vmem [resolvable:$false] %s1491_s27 }
  0x8c   : > { %vm1874_vm7 = vmand %vm870_vm4, %vm539_vm2  ;;  %v557_v15 = vsel %vm1868_vm6, %v549_v4, %v556_v5  ;;  %1133 = vst [vmem:[%s1773_s30 + $0xc] sm:$0xf] %v867_v14  ;;  %v574_v20 = vsel %vm1868_vm6, %v566_v11, %v573_v12  ;;  %v604_v44 = vrot.slane %v602_v37, 7  ;;  %v1147_v47 = vld [vmem:[%s1773_s30 + $0x30] sm:$0xf]  ;;  %v1274_v52 = vunpack.c.l.bf16 %v1317_v38  ;;  %s1493_s6 = scalar_lea.vmem %s1492_s27, 6912  ;;  %p1494_p2 = scmp.lt.s32.totalorder %s2116_s9, %s1492_s27 }
  0x8d   : > { %v873_v16 = vsel %vm1874_vm7, %v558_v6, %v1135_v61  ;;  %1134 = vst [vmem:[%s1773_s30 + $0x10] sm:$0xf] %v557_v15  ;;  %v880_v21 = vsel %vm1874_vm7, %v575_v13, %v1140_v9  ;;  %1138 = vst [vmem:[%s1773_s30 + $0x18] sm:$0xf] %v876_v19  ;;  %v590_v29 = vor.u32 %v588_v1, %v587_v23  ;;  %v592_v30 = vrot.slane %v587_v23, 4  ;;  %p1495_p0 = scmp.lt.s32.totalorder %s1493_s6, %s1487_s22 }
  0x8e   : > { %1136 = vst [vmem:[%s1773_s30 + $0x14] sm:$0x1] %v873_v16  ;;  %1139 = vst [vmem:[%s1773_s30 + $0x1c] sm:$0xf] %v574_v20  ;;  %v1150_v48 = vld [vmem:[%s1773_s30 + $0x38] sm:$0x1]  ;;  %v1275_v53 = vunpack.c.h.bf16 %v1317_v38  ;;  %v599_v54 = vor.u32 %v597_v36, %v596_v43  ;;  %v607_v57 = vor.u32 %v605_v41, %v604_v44  ;;  %v334_v61 = vadd.f32 %v1835_v8, %v295_v45 }
  0x8f   : > { %1141 = vst [vmem:[%s1773_s30 + $0x20] sm:$0x1] %v880_v21  ;;  %1143 = vst [vmem:[%s1773_s30 + $0x24] sm:$0xf] %v883_v34  ;;  %v591_v39 = vsel %vm1868_vm6, %v583_v25, %v590_v29  ;;  %v887_v40 = vsel %vm1874_vm7, %v592_v30, %v1145_v26  ;;  %v600_v55 = vrot.slane %v596_v43, 4  ;;  %v609_v58 = vrot.slane %v604_v44, 4  ;;  %p1496_p9 = por %p1495_p0, %p1494_p2 }
  0x90   : > { %1144 = vst [vmem:[%s1773_s30 + $0x28] sm:$0xf] %v591_v39  ;;  %1146 = vst [vmem:[%s1773_s30 + $0x2c] sm:$0x1] %v887_v40  ;;  %v890_v1 = vsel %vm1861_vm5, %v599_v54, %v1147_v47  ;;  %v298_v5 = vmul.f32 %v1274_v52, %v1830_v2  ;;  %v1224_v6 = vpack.c.bf16 %v365_v59, %v365_v59  ;;  %v366_v7 = vmax.f32 %v334_v61, 0.0 }
  0x91   : > { %v608_v3 = vsel %vm1868_vm6, %v600_v55, %v607_v57  ;;  %v894_v4 = vsel %vm1874_vm7, %v609_v58, %v1150_v48  ;;  %1148 = vst [vmem:[%s1773_s30 + $0x30] sm:$0xf] %v890_v1  ;;  %v335_v9 = vadd.f32 %v1835_v8, %v296_v62  ;;  %v336_v10 = vadd.f32 %v1835_v8, %v297_v63  ;;  %v1152_v27 = vld [vmem:[%s1773_s30 + $0x3c] sm:$0xf]  ;;  %v1155_v36 = vld [vmem:[%s1773_s30 + $0x44] sm:$0x1]  ;;  %p1497_p6 = pnand %p1496_p9, %p1490_p10 }
  0x92   : > { %1149 = vst [vmem:[%s1773_s30 + $0x34] sm:$0xf] %v608_v3  ;;  %1151 = vst [vmem:[%s1773_s30 + $0x38] sm:$0x1] %v894_v4  ;;  %v337_v11 = vadd.f32 %v1835_v8, %v298_v5  ;;  %v299_v12 = vmul.f32 %v1275_v53, %v1830_v2  ;;  %v1278_v13 = vunpack.c.l.bf16 %v1922_v0  ;;  %v1279_v14 = vunpack.c.h.bf16 %v1922_v0  ;;  %v1157_v45 = vld [vmem:[%s1773_s30 + $0x48] sm:$0xf] }
  0x93   : > { %v611_v15 = vshrl.u32 %v1224_v6, 16  ;;  %v614_v16 = vshll.u32 %v1224_v6, 16  ;;  %v1225_v17 = vpack.c.bf16 %v366_v7, %v366_v7  ;;  %v367_v18 = vmax.f32 %v335_v9, 0.0  ;;  %v1160_v55 = vld [vmem:[%s1773_s30 + $0x50] sm:$0x1]  ;;  %v1319_v63 = vld [vmem:[%s1762_s19 + $0x40] sm:$0xff]  }
  0x94   : > { %v368_v19 = vmax.f32 %v336_v10, 0.0  ;;  %v369_v20 = vmax.f32 %v337_v11, 0.0  ;;  %v338_v21 = vadd.f32 %v1835_v8, %v299_v12  ;;  %v300_v22 = vmul.f32 %v1278_v13, %v1830_v2  ;;  %v1162_v57 = vld [vmem:[%s1773_s30 + $0x54] sm:$0xf]  ;;  %v1320_v5 = vld [vmem:[%s1762_s19 + $0x48] sm:$0xff]  }
  0x95   : > { %v613_v23 = vrot.slane %v611_v15, 7  ;;  %v619_v24 = vshrl.u32 %v1225_v17, 16  ;;  %v622_v25 = vshll.u32 %v1225_v17, 16  ;;  %v1226_v26 = vpack.c.bf16 %v367_v18, %v367_v18  ;;  %v1962_v6 = vld [vmem:[%s1762_s19 + $0x50] sm:$0xff]   ;;  %v1165_v17 = vld [vmem:[%s1773_s30 + $0x5c] sm:$0x1] }
  0x96   : > { %v1227_v28 = vpack.c.bf16 %v368_v19, %v368_v19  ;;  %v1228_v29 = vpack.c.bf16 %v369_v20, %v369_v20  ;;  %v370_v30 = vmax.f32 %v338_v21, 0.0  ;;  %v339_v31 = vadd.f32 %v1835_v8, %v300_v22 }
  0x97   : > { %v616_v32 = vor.u32 %v614_v16, %v613_v23  ;;  %v617_v33 = vrot.slane %v613_v23, 4  ;;  %v621_v34 = vrot.slane %v619_v24, 7  ;;  %v628_v35 = vshrl.u32 %v1226_v26, 16 }
  0x98   : > { %v631_v37 = vshll.u32 %v1226_v26, 16  ;;  %v636_v38 = vshrl.u32 %v1227_v28, 16  ;;  %v639_v39 = vshll.u32 %v1227_v28, 16  ;;  %v645_v40 = vshrl.u32 %v1228_v29, 16 }
  0x99   : > { %v897_v41 = vsel %vm1861_vm5, %v616_v32, %v1152_v27  ;;  %v624_v42 = vor.u32 %v622_v25, %v621_v34  ;;  %v626_v43 = vrot.slane %v621_v34, 4  ;;  %v630_v44 = vrot.slane %v628_v35, 7 }
  0x9a   : > { %1153 = vst [vmem:[%s1773_s30 + $0x3c] sm:$0xf] %v897_v41  ;;  %v638_v46 = vrot.slane %v636_v38, 7  ;;  %v647_v47 = vrot.slane %v645_v40, 7  ;;  %v648_v48 = vshll.u32 %v1228_v29, 16  ;;  %v1229_v50 = vpack.c.bf16 %v370_v30, %v370_v30 }
  0x9b   : > { %v625_v51 = vsel %vm1868_vm6, %v617_v33, %v624_v42  ;;  %v901_v52 = vsel %vm1874_vm7, %v626_v43, %v1155_v36  ;;  %v633_v53 = vor.u32 %v631_v37, %v630_v44  ;;  %v634_v54 = vrot.slane %v630_v44, 4  ;;  %v1167_v33 = vld [vmem:[%s1773_s30 + $0x60] sm:$0xf] }
  0x9c   : > { %1154 = vst [vmem:[%s1773_s30 + $0x40] sm:$0xf] %v625_v51  ;;  %1156 = vst [vmem:[%s1773_s30 + $0x44] sm:$0x1] %v901_v52  ;;  %v641_v58 = vor.u32 %v639_v39, %v638_v46  ;;  %v643_v59 = vrot.slane %v638_v46, 4  ;;  %v650_v61 = vor.u32 %v648_v48, %v647_v47  ;;  %v651_v62 = vrot.slane %v647_v47, 4 }
  0x9d   : > { %v904_v0 = vsel %vm1861_vm5, %v633_v53, %v1157_v45  ;;  %v653_v1 = vshrl.u32 %v1229_v50, 16  ;;  %v656_v3 = vshll.u32 %v1229_v50, 16  ;;  %v371_v4 = vmax.f32 %v339_v31, 0.0  ;;  %v1995_v46 = vld [vmem:[%s1762_s19 + $0x58] sm:$0xff]  }
  0x9e   : > { %1158 = vst [vmem:[%s1773_s30 + $0x48] sm:$0xf] %v904_v0  ;;  %v642_v7 = vsel %vm1868_vm6, %v634_v54, %v641_v58  ;;  %v908_v9 = vsel %vm1874_vm7, %v643_v59, %v1160_v55  ;;  %v911_v10 = vsel %vm1861_vm5, %v650_v61, %v1162_v57  ;;  %v301_v11 = vmul.f32 %v1279_v14, %v1830_v2  ;;  %v1170_v57 = vld [vmem:[%s1773_s30 + $0x68] sm:$0x1] }
  0x9f   : > { %1159 = vst [vmem:[%s1773_s30 + $0x4c] sm:$0xf] %v642_v7  ;;  %1161 = vst [vmem:[%s1773_s30 + $0x50] sm:$0x1] %v908_v9  ;;  %v655_v12 = vrot.slane %v653_v1, 7  ;;  %v1230_v13 = vpack.c.bf16 %v371_v4, %v371_v4  ;;  %v1282_v15 = vunpack.c.l.bf16 %v1319_v63  ;;  %v1283_v16 = vunpack.c.h.bf16 %v1319_v63 }
  0xa0   : > { %1163 = vst [vmem:[%s1773_s30 + $0x54] sm:$0xf] %v911_v10  ;;  %v340_v18 = vadd.f32 %v1835_v8, %v301_v11  ;;  %v1286_v19 = vunpack.c.l.bf16 %v1320_v5  ;;  %v1287_v20 = vunpack.c.h.bf16 %v1320_v5  ;;  %v1290_v21 = vunpack.c.l.bf16 %v1962_v6 }
  0xa1   : > { %v658_v22 = vor.u32 %v656_v3, %v655_v12  ;;  %v660_v23 = vrot.slane %v655_v12, 4  ;;  %v662_v14 = vshrl.u32 %v1230_v13, 16  ;;  %v665_v24 = vshll.u32 %v1230_v13, 16  ;;  %v1172_v13 = vld [vmem:[%s1773_s30 + $0x6c] sm:$0xf] }
  0xa2   : > { %v372_v25 = vmax.f32 %v340_v18, 0.0  ;;  %v302_v26 = vmul.f32 %v1282_v15, %v1830_v2  ;;  %v303_v27 = vmul.f32 %v1283_v16, %v1830_v2  ;;  %v304_v28 = vmul.f32 %v1286_v19, %v1830_v2 }
  0xa3   : > { %v659_v29 = vsel %vm1868_vm6, %v651_v62, %v658_v22  ;;  %v915_v30 = vsel %vm1874_vm7, %v660_v23, %v1165_v17  ;;  %v664_v31 = vrot.slane %v662_v14, 7  ;;  %v305_v32 = vmul.f32 %v1287_v20, %v1830_v2  ;;  %v1177_v22 = vld [vmem:[%s1773_s30 + $0x78] sm:$0xf] }
  0xa4   : > { %1164 = vst [vmem:[%s1773_s30 + $0x58] sm:$0xf] %v659_v29  ;;  %1166 = vst [vmem:[%s1773_s30 + $0x5c] sm:$0x1] %v915_v30  ;;  %v1231_v34 = vpack.c.bf16 %v372_v25, %v372_v25  ;;  %v341_v35 = vadd.f32 %v1835_v8, %v302_v26  ;;  %v342_v36 = vadd.f32 %v1835_v8, %v303_v27  ;;  %v1291_v55 = vunpack.c.h.bf16 %v1962_v6 }
  0xa5   : > { %v343_v37 = vadd.f32 %v1835_v8, %v304_v28  ;;  %v667_v38 = vor.u32 %v665_v24, %v664_v31  ;;  %v668_v39 = vrot.slane %v664_v31, 4  ;;  %v344_v40 = vadd.f32 %v1835_v8, %v305_v32  ;;  %v1180_v28 = vld [vmem:[%s1773_s30 + $0x80] sm:$0x1] }
  0xa6   : > { %v306_v41 = vmul.f32 %v1290_v21, %v1830_v2  ;;  %v670_v42 = vshrl.u32 %v1231_v34, 16  ;;  %v673_v43 = vshll.u32 %v1231_v34, 16  ;;  %v373_v44 = vmax.f32 %v341_v35, 0.0  ;;  %v1175_v21 = vld [vmem:[%s1773_s30 + $0x74] sm:$0x1] }
  0xa7   : > { %v374_v45 = vmax.f32 %v342_v36, 0.0  ;;  %v918_v47 = vsel %vm1861_vm5, %v667_v38, %v1167_v33  ;;  %v375_v48 = vmax.f32 %v343_v37, 0.0  ;;  %v376_v50 = vmax.f32 %v344_v40, 0.0  ;;  %v1323_v33 = vld [vmem:[%s1762_s19 + $0x60] sm:$0xff]   ;;  %v1324_v38 = vld [vmem:[%s1762_s19 + $0x68] sm:$0xff]  }
  0xa8   : > { %v345_v51 = vadd.f32 %v1835_v8, %v306_v41  ;;  %1168 = vst [vmem:[%s1773_s30 + $0x60] sm:$0xf] %v918_v47  ;;  %v672_v52 = vrot.slane %v670_v42, 7  ;;  %v1232_v53 = vpack.c.bf16 %v373_v44, %v373_v44  ;;  %v1294_v62 = vunpack.c.l.bf16 %v1995_v46 }
  0xa9   : > { %v1233_v54 = vpack.c.bf16 %v374_v45, %v374_v45  ;;  %v1234_v58 = vpack.c.bf16 %v375_v48, %v375_v48  ;;  %v1235_v59 = vpack.c.bf16 %v376_v50, %v376_v50  ;;  %v307_v14 = vmul.f32 %v1291_v55, %v1830_v2 }
  0xaa   : > { %v377_v61 = vmax.f32 %v345_v51, 0.0  ;;  %v675_v63 = vor.u32 %v673_v43, %v672_v52  ;;  %v677_v0 = vrot.slane %v672_v52, 4  ;;  %v679_v1 = vshrl.u32 %v1232_v53, 16  ;;  %v1182_v43 = vld [vmem:[%s1773_s30 + $0x84] sm:$0xf] }
  0xab   : > { %v682_v3 = vshll.u32 %v1232_v53, 16  ;;  %v687_v4 = vshrl.u32 %v1233_v54, 16  ;;  %v690_v5 = vshll.u32 %v1233_v54, 16  ;;  %v696_v7 = vshrl.u32 %v1234_v58, 16 }
  0xac   : > { %v699_v9 = vshll.u32 %v1234_v58, 16  ;;  %v676_v6 = vsel %vm1868_vm6, %v668_v39, %v675_v63  ;;  %v922_v10 = vsel %vm1874_vm7, %v677_v0, %v1170_v57  ;;  %v681_v11 = vrot.slane %v679_v1, 7 }
  0xad   : > { %v704_v12 = vshrl.u32 %v1235_v59, 16  ;;  %1169 = vst [vmem:[%s1773_s30 + $0x64] sm:$0xf] %v676_v6  ;;  %1171 = vst [vmem:[%s1773_s30 + $0x68] sm:$0x1] %v922_v10  ;;  %v689_v15 = vrot.slane %v687_v4, 7  ;;  %v1236_v18 = vpack.c.bf16 %v377_v61, %v377_v61  ;;  %v346_v42 = vadd.f32 %v1835_v8, %v307_v14 }
  0xae   : > { %v698_v16 = vrot.slane %v696_v7, 7  ;;  %v707_v17 = vshll.u32 %v1235_v59, 16  ;;  %v684_v19 = vor.u32 %v682_v3, %v681_v11  ;;  %v685_v20 = vrot.slane %v681_v11, 4  ;;  %v2051_v4 = vld [vmem:[%s1762_s19 + $0x70] sm:$0xff]  }
  0xaf   : > { %v706_v23 = vrot.slane %v704_v12, 7  ;;  %v692_v24 = vor.u32 %v690_v5, %v689_v15  ;;  %v694_v25 = vrot.slane %v689_v15, 4  ;;  %v713_v32 = vshrl.u32 %v1236_v18, 16 }
  0xb0   : > { %v701_v26 = vor.u32 %v699_v9, %v698_v16  ;;  %v702_v27 = vrot.slane %v698_v16, 4  ;;  %v925_v29 = vsel %vm1861_vm5, %v684_v19, %v1172_v13  ;;  %v716_v37 = vshll.u32 %v1236_v18, 16  ;;  %v1185_v19 = vld [vmem:[%s1773_s30 + $0x8c] sm:$0x1] }
  0xb1   : > { %v709_v30 = vor.u32 %v707_v17, %v706_v23  ;;  %v711_v31 = vrot.slane %v706_v23, 4  ;;  %1173 = vst [vmem:[%s1773_s30 + $0x6c] sm:$0xf] %v925_v29  ;;  %v693_v34 = vsel %vm1868_vm6, %v685_v20, %v692_v24  ;;  %v929_v35 = vsel %vm1874_vm7, %v694_v25, %v1175_v21 }
  0xb2   : > { %v932_v36 = vsel %vm1861_vm5, %v701_v26, %v1177_v22  ;;  %1174 = vst [vmem:[%s1773_s30 + $0x70] sm:$0xf] %v693_v34  ;;  %1176 = vst [vmem:[%s1773_s30 + $0x74] sm:$0x1] %v929_v35  ;;  %v715_v41 = vrot.slane %v713_v32, 7  ;;  %v308_v44 = vmul.f32 %v1294_v62, %v1830_v2  ;;  %v1295_v45 = vunpack.c.h.bf16 %v1995_v46 }
  0xb3   : > { %1178 = vst [vmem:[%s1773_s30 + $0x78] sm:$0xf] %v932_v36  ;;  %v710_v39 = vsel %vm1868_vm6, %v702_v27, %v709_v30  ;;  %v936_v40 = vsel %vm1874_vm7, %v711_v31, %v1180_v28  ;;  %v1298_v47 = vunpack.c.l.bf16 %v1323_v33  ;;  %v1299_v48 = vunpack.c.h.bf16 %v1323_v33  ;;  %v1187_v33 = vld [vmem:[%s1773_s30 + $0x90] sm:$0xf] }
  0xb4   : > { %1179 = vst [vmem:[%s1773_s30 + $0x7c] sm:$0xf] %v710_v39  ;;  %1181 = vst [vmem:[%s1773_s30 + $0x80] sm:$0x1] %v936_v40  ;;  %v718_v50 = vor.u32 %v716_v37, %v715_v41  ;;  %v378_v51 = vmax.f32 %v346_v42, 0.0  ;;  %v719_v52 = vrot.slane %v715_v41, 4  ;;  %v1302_v53 = vunpack.c.l.bf16 %v1324_v38 }
  0xb5   : > { %v347_v54 = vadd.f32 %v1835_v8, %v308_v44  ;;  %v309_v55 = vmul.f32 %v1295_v45, %v1830_v2  ;;  %v310_v57 = vmul.f32 %v1298_v47, %v1830_v2  ;;  %v311_v58 = vmul.f32 %v1299_v48, %v1830_v2  ;;  %v1190_v39 = vld [vmem:[%s1773_s30 + $0x98] sm:$0x1]  ;;  %v1192_v41 = vld [vmem:[%s1773_s30 + $0x9c] sm:$0xf] }
  0xb6   : > { %v939_v59 = vsel %vm1861_vm5, %v718_v50, %v1182_v43  ;;  %v1237_v61 = vpack.c.bf16 %v378_v51, %v378_v51  ;;  %v312_v46 = vmul.f32 %v1302_v53, %v1830_v2  ;;  %v1303_v62 = vunpack.c.h.bf16 %v1324_v38 }
  0xb7   : > { %1183 = vst [vmem:[%s1773_s30 + $0x84] sm:$0xf] %v939_v59  ;;  %v379_v63 = vmax.f32 %v347_v54, 0.0  ;;  %v348_v0 = vadd.f32 %v1835_v8, %v309_v55  ;;  %v349_v1 = vadd.f32 %v1835_v8, %v310_v57  ;;  %v350_v3 = vadd.f32 %v1835_v8, %v311_v58  ;;  %v1326_v58 = vld [vmem:[%s1762_s19 + $0x78] sm:$0xff]  }
  0xb8   : > { %v721_v5 = vshrl.u32 %v1237_v61, 16  ;;  %v724_v7 = vshll.u32 %v1237_v61, 16  ;;  %v351_v9 = vadd.f32 %v1835_v8, %v312_v46  ;;  %v313_v6 = vmul.f32 %v1303_v62, %v1830_v2  ;;  %v1197_v62 = vld [vmem:[%s1773_s30 + $0xa8] sm:$0xf] }
  0xb9   : > { %v1238_v10 = vpack.c.bf16 %v379_v63, %v379_v63  ;;  %v380_v11 = vmax.f32 %v348_v0, 0.0  ;;  %v381_v12 = vmax.f32 %v349_v1, 0.0  ;;  %v382_v13 = vmax.f32 %v350_v3, 0.0 }
  0xba   : > { %v723_v15 = vrot.slane %v721_v5, 7  ;;  %v383_v16 = vmax.f32 %v351_v9, 0.0  ;;  %v352_v17 = vadd.f32 %v1835_v8, %v313_v6  ;;  %v1306_v18 = vunpack.c.l.bf16 %v2051_v4 }
  0xbb   : > { %v730_v20 = vshrl.u32 %v1238_v10, 16  ;;  %v733_v21 = vshll.u32 %v1238_v10, 16  ;;  %v1239_v22 = vpack.c.bf16 %v380_v11, %v380_v11  ;;  %v1240_v23 = vpack.c.bf16 %v381_v12, %v381_v12 }
  0xbc   : > { %v726_v14 = vor.u32 %v724_v7, %v723_v15  ;;  %v728_v24 = vrot.slane %v723_v15, 4  ;;  %v1241_v25 = vpack.c.bf16 %v382_v13, %v382_v13  ;;  %v1242_v26 = vpack.c.bf16 %v383_v16, %v383_v16 }
  0xbd   : > { %v732_v27 = vrot.slane %v730_v20, 7  ;;  %v738_v28 = vshrl.u32 %v1239_v22, 16  ;;  %v741_v29 = vshll.u32 %v1239_v22, 16  ;;  %v747_v30 = vshrl.u32 %v1240_v23, 16  ;;  %v1200_v22 = vld [vmem:[%s1773_s30 + $0xb0] sm:$0x1] }
  0xbe   : > { %v727_v31 = vsel %vm1868_vm6, %v719_v52, %v726_v14  ;;  %v943_v32 = vsel %vm1874_vm7, %v728_v24, %v1185_v19  ;;  %v750_v34 = vshll.u32 %v1240_v23, 16  ;;  %v755_v35 = vshrl.u32 %v1241_v25, 16  ;;  %v1195_v52 = vld [vmem:[%s1773_s30 + $0xa4] sm:$0x1] }
  0xbf   : > { %1184 = vst [vmem:[%s1773_s30 + $0x88] sm:$0xf] %v727_v31  ;;  %1186 = vst [vmem:[%s1773_s30 + $0x8c] sm:$0x1] %v943_v32  ;;  %v735_v36 = vor.u32 %v733_v21, %v732_v27  ;;  %v736_v37 = vrot.slane %v732_v27, 4  ;;  %v740_v38 = vrot.slane %v738_v28, 7  ;;  %v314_v7 = vmul.f32 %v1306_v18, %v1830_v2 }
  0xc0   : > { %v749_v40 = vrot.slane %v747_v30, 7  ;;  %v757_v42 = vrot.slane %v755_v35, 7  ;;  %v758_v43 = vshll.u32 %v1241_v25, 16  ;;  %v764_v44 = vshrl.u32 %v1242_v26, 16 }
  0xc1   : > { %v767_v45 = vshll.u32 %v1242_v26, 16  ;;  %v946_v47 = vsel %vm1861_vm5, %v735_v36, %v1187_v33  ;;  %v743_v48 = vor.u32 %v741_v29, %v740_v38  ;;  %v745_v50 = vrot.slane %v740_v38, 4  ;;  %v1202_v36 = vld [vmem:[%s1773_s30 + $0xb4] sm:$0xf] }
  0xc2   : > { %v752_v51 = vor.u32 %v750_v34, %v749_v40  ;;  %1188 = vst [vmem:[%s1773_s30 + $0x90] sm:$0xf] %v946_v47  ;;  %v753_v53 = vrot.slane %v749_v40, 4  ;;  %v760_v54 = vor.u32 %v758_v43, %v757_v42  ;;  %v762_v55 = vrot.slane %v757_v42, 4 }
  0xc3   : > { %v766_v57 = vrot.slane %v764_v44, 7  ;;  %v744_v59 = vsel %vm1868_vm6, %v736_v37, %v743_v48  ;;  %v950_v61 = vsel %vm1874_vm7, %v745_v50, %v1190_v39  ;;  %v384_v63 = vmax.f32 %v352_v17, 0.0  ;;  %v1205_v50 = vld [vmem:[%s1773_s30 + $0xbc] sm:$0x1] }
  0xc4   : > { %v953_v46 = vsel %vm1861_vm5, %v752_v51, %v1192_v41  ;;  %1189 = vst [vmem:[%s1773_s30 + $0x94] sm:$0xf] %v744_v59  ;;  %1191 = vst [vmem:[%s1773_s30 + $0x98] sm:$0x1] %v950_v61  ;;  %v761_v0 = vsel %vm1868_vm6, %v753_v53, %v760_v54  ;;  %v957_v1 = vsel %vm1874_vm7, %v762_v55, %v1195_v52  ;;  %v1307_v9 = vunpack.c.h.bf16 %v2051_v4  ;;  %v1207_v51 = vld [vmem:[%s1773_s30 + $0xc0] sm:$0xf] }
  0xc5   : > { %1193 = vst [vmem:[%s1773_s30 + $0x9c] sm:$0xf] %v953_v46  ;;  %v769_v3 = vor.u32 %v767_v45, %v766_v57  ;;  %1194 = vst [vmem:[%s1773_s30 + $0xa0] sm:$0xf] %v761_v0  ;;  %v1243_v5 = vpack.c.bf16 %v384_v63, %v384_v63  ;;  %v1310_v6 = vunpack.c.l.bf16 %v1326_v58  ;;  %v1311_v11 = vunpack.c.h.bf16 %v1326_v58  ;;  %v1210_v58 = vld [vmem:[%s1773_s30 + $0xc8] sm:$0x1] }
  0xc6   : > { %1196 = vst [vmem:[%s1773_s30 + $0xa4] sm:$0x1] %v957_v1  ;;  %v353_v15 = vadd.f32 %v1835_v8, %v314_v7  ;;  %v315_v16 = vmul.f32 %v1307_v9, %v1830_v2  ;;  %v770_v18 = vrot.slane %v766_v57, 4 }
  0xc7   : > { %v960_v10 = vsel %vm1861_vm5, %v769_v3, %v1197_v62  ;;  %v772_v12 = vshrl.u32 %v1243_v5, 16  ;;  %v775_v13 = vshll.u32 %v1243_v5, 16  ;;  %v316_v17 = vmul.f32 %v1310_v6, %v1830_v2 }
  0xc8   : > { %1198 = vst [vmem:[%s1773_s30 + $0xa8] sm:$0xf] %v960_v10  ;;  %v317_v19 = vmul.f32 %v1311_v11, %v1830_v2  ;;  %v385_v4 = vmax.f32 %v353_v15, 0.0  ;;  %v354_v21 = vadd.f32 %v1835_v8, %v315_v16 }
  0xc9   : > { %v774_v20 = vrot.slane %v772_v12, 7  ;;  %v355_v23 = vadd.f32 %v1835_v8, %v316_v17 }
  0xca   : > { %v356_v14 = vadd.f32 %v1835_v8, %v317_v19  ;;  %v1244_v26 = vpack.c.bf16 %v385_v4, %v385_v4  ;;  %v386_v27 = vmax.f32 %v354_v21, 0.0 }
  0xcb   : > { %v777_v24 = vor.u32 %v775_v13, %v774_v20  ;;  %v779_v25 = vrot.slane %v774_v20, 4  ;;  %v387_v28 = vmax.f32 %v355_v23, 0.0 }
  0xcc   : > { %v388_v29 = vmax.f32 %v356_v14, 0.0  ;;  %v781_v31 = vshrl.u32 %v1244_v26, 16  ;;  %v784_v32 = vshll.u32 %v1244_v26, 16  ;;  %v1245_v33 = vpack.c.bf16 %v386_v27, %v386_v27 }
  0xcd   : > { %v778_v2 = vsel %vm1868_vm6, %v770_v18, %v777_v24  ;;  %v964_v30 = vsel %vm1874_vm7, %v779_v25, %v1200_v22  ;;  %v1246_v8 = vpack.c.bf16 %v387_v28, %v387_v28 }
  0xce   : > { %1199 = vst [vmem:[%s1773_s30 + $0xac] sm:$0xf] %v778_v2  ;;  %1201 = vst [vmem:[%s1773_s30 + $0xb0] sm:$0x1] %v964_v30  ;;  %v1247_v34 = vpack.c.bf16 %v388_v29, %v388_v29  ;;  %v783_v35 = vrot.slane %v781_v31, 7  ;;  %v789_v37 = vshrl.u32 %v1245_v33, 16 }
  0xcf   : > { %v792_v38 = vshll.u32 %v1245_v33, 16  ;;  %v798_v39 = vshrl.u32 %v1246_v8, 16  ;;  %v801_v40 = vshll.u32 %v1246_v8, 16 }
  0xd0   : > { %v786_v41 = vor.u32 %v784_v32, %v783_v35  ;;  %v806_v42 = vshrl.u32 %v1247_v34, 16  ;;  %v809_v43 = vshll.u32 %v1247_v34, 16  ;;  %v787_v44 = vrot.slane %v783_v35, 4 }
  0xd1   : > { %v791_v45 = vrot.slane %v789_v37, 7  ;;  %v800_v47 = vrot.slane %v798_v39, 7 }
  0xd2   : > { %v967_v48 = vsel %vm1861_vm5, %v786_v41, %v1202_v36  ;;  %v808_v52 = vrot.slane %v806_v42, 7 }
  0xd3   : > { %1203 = vst [vmem:[%s1773_s30 + $0xb4] sm:$0xf] %v967_v48  ;;  %v794_v53 = vor.u32 %v792_v38, %v791_v45  ;;  %v796_v54 = vrot.slane %v791_v45, 4  ;;  %v803_v55 = vor.u32 %v801_v40, %v800_v47  ;;  %v804_v57 = vrot.slane %v800_v47, 4 }
  0xd4   : > { %v811_v59 = vor.u32 %v809_v43, %v808_v52  ;;  %v813_v61 = vrot.slane %v808_v52, 4 }
  0xd5   : > { %v795_v46 = vsel %vm1868_vm6, %v787_v44, %v794_v53  ;;  %v971_v62 = vsel %vm1874_vm7, %v796_v54, %v1205_v50  ;;  %v974_v63 = vsel %vm1861_vm5, %v803_v55, %v1207_v51 }
  0xd6   : > { %1204 = vst [vmem:[%s1773_s30 + $0xb8] sm:$0xf] %v795_v46  ;;  %1206 = vst [vmem:[%s1773_s30 + $0xbc] sm:$0x1] %v971_v62  ;;  %v812_v0 = vsel %vm1868_vm6, %v804_v57, %v811_v59  ;;  %v978_v1 = vsel %vm1874_vm7, %v813_v61, %v1210_v58 }
  0xd7   : > { %1208 = vst [vmem:[%s1773_s30 + $0xc0] sm:$0xf] %v974_v63  ;;  %1209 = vst [vmem:[%s1773_s30 + $0xc4] sm:$0xf] %v812_v0 }
  0xd8   : > { %1211 = vst [vmem:[%s1773_s30 + $0xc8] sm:$0x1] %v978_v1 }
  0xd9   : > { %1500 = shalt.err (!%p1497_p6)
}
  0xda   : > { %s1501_s7 = scalar_lea.hbm %s2127_s11, 3456  ;;  %s1505_s5 = scalar_lea.hbm %s2183_s3, 6912 }
  0xdb   : > { %p1502_p12 = scmp.ne.s32.totalorder %s2127_s11, %s1501_s7  ;;  %p1506_p11 = scmp.lt.u32.totalorder %s2127_s11, %s2183_s3 }
  0xdc   : > { %p1507_p7 = scmp.lt.u32.totalorder %s1505_s5, %s1501_s7  ;;  %p1509_p8 = scmp.lt.u32.totalorder %s1501_s7, %s2127_s11 }
  0xdd   : > { %p1503_p13 = pnand %p1502_p12, %p2208_p4 }
  0xde   : > { %p1508_p3 = por %p1507_p7, %p1506_p11 }
  0xdf   : > { %p1504_p1 = pneg %p1503_p13 }
  0xe0   : > { %p1510_p5 = por %p1509_p8, %p1508_p3 }
  0xe2   : > { %p1511_p10 = pnand %p1510_p5, %p1504_p1 }
  0xe4   : > { %1514 = shalt.err (!%p1511_p10)
}
  0xe5   : > { %s1566_s26 = smov 64   ;;  %s1567_s30 = smov 4  }
  0xe6   : > { %1339 = dma.vmem_to_hbm [thread:$0]  (%p2208_p4), %s2116_s9, 3456, %s2127_s11, %s981_s20, %s1566_s26, %s1566_s26, %s1567_s30  }
  0xe7 PF: > { %s1009_s23 = sand.u32 1, %s1545_s12   ;;  %p2209_p2 = scmp.ne.s32.totalorder %s2192_s25, 0 }
  0xe8   : > { %p2210_p0 = scmp.ge.s32.totalorder %s1557_s15, 2  ;;  %s1010_s16 = scalar_lea.sflag [#allocation4], %s1009_s23 }
  0xea   : > { %p1353_p9 = pnand %p2210_p0, %p2209_p2 }
  0xec   : > { %1540 = dma.done.wait (!%p1353_p9), %s1010_s16, 3456  }
  0xed   : > { %1542 = vsyncadd (!%p1353_p9), %s1010_s16, 4294963840  ;;  %p17_p6 = scmp.ge.s32.totalorder %s1613_s18, 4   ;;  %s2211_s12 = smov %s1549_s13 }
  0xee   : > { %s2212_s13 = smov %s1553_s14  ;;  %s2213_s14 = smov %s1625_s21 }
  0xef   : > { %s2214_s15 = smov %s1613_s18  ;;  %19 = sbr.rel (!%p17_p6) target bundleno = 6 (0x6), region = 86 }
  0xf6   :  { %1015 = vsyncpa [#allocation3], 1 }
  0xf7   :  { %1017 = vsyncpa [#allocation3 + $0x1], 1 }
  0xf8   :  { %1018 = vsyncpa [#allocation6], 1 }
  0xf9   :  { %1019 = vsyncpa [#allocation4], 1 }
  0xfa   :  { %1021 = vsyncpa [#allocation4 + $0x1], 1 }

// kernel: basic_block_forward.5
= control target key start
LH: loop header
LB: loop body
LE: loop exit
PB: predicated region body
PF: predicated region fallthrough
CT: control target
= control target key end

     0   :  { %s3632_s0 = inlined_call_operand.hbm [shape: bf16[2,1,10,10,128], index: 0, kind: input, shape index: {}]   ;;  %s3633_s1 = inlined_call_operand.hbm [shape: bf16[3,384,128], index: 1, kind: input, shape index: {}]   ;;  %s3634_s2 = inlined_call_operand.hbm [shape: bf16[2,8,8,128], index: 2, kind: input, shape index: {}]   ;;  %s3635_s3 = inlined_call_operand.hbm [shape: bf16[2,8,8,128], index: 3, kind: output, shape index: {}]  }
   0x1   :  { %3642 = sst [smem:[#allocation13_spill]] %s3632_s0 }
   0x2   :  { %8 = vsyncpa [#allocation3], 0 }
   0x3   :  { %10 = vsyncpa [#allocation3 + $0x1], 0 }
   0x4   :  { %11 = vsyncpa [#allocation6], 0 }
   0x5   :  { %12 = vsyncpa [#allocation4], 0 }
   0x6   :  { %14 = vsyncpa [#allocation4 + $0x1], 0  ;;  %s3029_s12 = smov 0   ;;  %s3031_s13 = smov 0  }
   0x7   :  { %s3033_s14 = smov 0   ;;  %s3035_s15 = smov 0  }
   0x8   :  { %s3037_s16 = smov 0   ;;  %s3039_s17 = smov 0  }
   0x9 LB: > { %s29_s18 = sadd.s32 1, %s2995_s16  ;;  %s39_s19 = sadd.s32 1, %s2987_s14  ;;  %s2999_s17 = sphi %s3039_s17, %s20_s17   ;;  %s2995_s16 = sphi %s3037_s16, %s3666_s16   ;;  %s2991_s15 = sphi %s3035_s15, %s3665_s15   ;;  %s2987_s14 = sphi %s3033_s14, %s3664_s14   ;;  %s2983_s13 = sphi %s3031_s13, %s3663_s13   ;;  %s2979_s12 = sphi %s3029_s12, %s3662_s12  }
   0xa   : > { %p30_p0 = scmp.ge.s32.totalorder %s29_s18, 2  ;;  %p46_p1 = scmp.ne.s32.totalorder %s2987_s14, %s2983_s13 }
   0xb   : > { %p47_p2 = scmp.eq.s32.totalorder %s2999_s17, 0  ;;  %p2681_p6 = scmp.lt.s32.totalorder %s2999_s17, 2 }
   0xc   : > { %s3668_s18 = smov (%p30_p0, %s29_s18), 0  ;;  %s173_s21 = sand.u32 1, %s2999_s17  }
   0xd   : > { %p48_p3 = por %p47_p2, %p46_p1  ;;  %s36_s20 = ssub.s32 %s2995_s16, %s3668_s18 }
   0xe   : > { %p37_p5 = scmp.eq.s32.totalorder %s36_s20, 0  ;;  %s175_s22 = sand.u32 1, %s2987_s14  }
   0xf   : > { %s2652_s24 = smul.u32 80, %s175_s22  ;;  %p3079_p7 = pnand %p2681_p6, %p48_p3 }
  0x10   : > { %s3076_s23 = scalar_select %p37_p5, %s2987_s14, %s39_s19  }
  0x11   : > { %s2653_s25 = smul.u32 1280, %s2995_s16  ;;  %s3083_s27 = sshll.u32 %s175_s22, 5 }
  0x12   : > { %s3644_s0 = sld [smem:[#allocation13_spill]]  ;;  %s177_s4 = scalar_lea.vmem [#allocation2], %s2652_s24 }
  0x13   : > { %s184_s5 = sshll.u32 %s177_s4, 4  ;;  %s3092_s6 = scalar_lea.sflag [#allocation3], %s173_s21  ;;  %s3090_s5 = int_to_ptr.vmem [resolvable:$true] %s184_s5 }
  0x14   : > { %p2823_p9 = pneg %p3079_p7 }
  0x18   : > { %s3088_s30 = scalar_lea.hbm %s3644_s0, %s2653_s25  ;;  %s2826_s10 = scalar_lea.hbm %s3644_s0, 2560 }
  0x19   : > { %s2821_s7 = scalar_lea.hbm %s3088_s30, 1280  ;;  %p2827_p12 = scmp.lt.u32.totalorder %s3088_s30, %s3644_s0 }
  0x1a   : > { %p2822_p8 = scmp.ne.s32.totalorder %s3088_s30, %s2821_s7  ;;  %p2828_p13 = scmp.lt.u32.totalorder %s2826_s10, %s2821_s7 }
  0x1b   : > { %p2830_p2 = scmp.lt.u32.totalorder %s2821_s7, %s3088_s30 }
  0x1c   : > { %p2824_p10 = pnand %p2823_p9, %p2822_p8  ;;  %p2829_p0 = por %p2828_p13, %p2827_p12 }
  0x1e   : > { %p2825_p11 = pneg %p2824_p10  ;;  %p2831_p3 = por %p2830_p2, %p2829_p0 }
  0x20   : > { %p2832_p5 = pnand %p2831_p3, %p2825_p11 }
  0x22   : > { %2835 = shalt.err (!%p2832_p5)
}
  0x23   : > { %s2836_s20 = scalar_lea.vmem %s3090_s5, 1280  ;;  %s3001_s21 = smov [#allocation2]  }
  0x24   : > { %p2837_p6 = scmp.ne.s32.totalorder %s3090_s5, %s2836_s20  ;;  %s2841_s22 = sshll.u32 %s3001_s21, 4  ;;  %s2842_s22 = int_to_ptr.vmem [resolvable:$false] %s2841_s22 }
  0x25   : > { %s2843_s24 = scalar_lea.vmem %s2842_s22, 2560  ;;  %p2844_p4 = scmp.lt.s32.totalorder %s3090_s5, %s2842_s22 }
  0x26   : > { %p2839_p8 = pnand %p2837_p6, %p2823_p9  ;;  %p2845_p12 = scmp.lt.s32.totalorder %s2843_s24, %s2836_s20 }
  0x28   : > { %p2840_p10 = pneg %p2839_p8  ;;  %p2846_p13 = por %p2845_p12, %p2844_p4 }
  0x2a   : > { %p2847_p0 = pnand %p2846_p13, %p2840_p10 }
  0x2c   : > { %2850 = shalt.err (!%p2847_p0)
}
  0x2d   : > { %s3636_s25 = smov 64   ;;  %s3003_s28 = smov 4  }
  0x2e   : > { %2672 = dma.hbm_to_vmem [thread:$0]  (!%p3079_p7), %s3088_s30, 1280, %s3090_s5, %s3092_s6, %s3636_s25, %s3636_s25, %s3003_s28  }
  0x2f   : > { %s3124_s29 = sadd.s32 4294967295, %s2999_s17   ;;  %s2143_s4 = sadd.s32 4294967294, %s2999_s17  }
  0x30   : > { %p52_p4 = scmp.ne.s32.totalorder %s2983_s13, %s2979_s12  ;;  %p3638_p11 = scmp.eq.s32.totalorder %s3124_s29, 0 }
  0x31   : > { %p132_p2 = scmp.eq.s32.totalorder %s3124_s29, 1  ;;  %p138_p3 = scmp.eq.s32.totalorder %s2143_s4, 1 }
  0x32   : > { %p2144_p5 = scmp.ge.s32.totalorder %s2999_s17, 1  ;;  %p3134_p6 = por %p3638_p11, %p52_p4 }
  0x33   : > { %p3141_p8 = por %p132_p2, %p46_p1  ;;  %p3145_p10 = por %p138_p3, %p52_p4 }
  0x34   : > { %s3645_s7 = scalar_select %p3134_p6, 1, 0 }
  0x35   : > { %s3646_s30 = scalar_select %p3141_p8, 1, 0 }
  0x36   : > { %s3647_s5 = scalar_select %p3145_p10, 1, 0 }
  0x37   : > { %p145_p12 = scmp.lt.s32.totalorder %s2999_s17, 3  ;;  %s3004_s9 = smov [#allocation5]  }
  0x38   : > { %s159_s10 = sshll.u32 %s3004_s9, 4  ;;  %s2340_s11 = sshll.u32 %s2995_s16, 9  ;;  %s3162_s10 = int_to_ptr.vmem [resolvable:$true] %s159_s10 }
  0x39   : > { %p3150_p13 = pnand %p2144_p5, %p145_p12  ;;  %s3160_s21 = scalar_lea.hbm %s3634_s2, %s2340_s11 }
  0x3a   : > { %s198_s22 = scalar_lea.vmem [#allocation7], %s3083_s27  ;;  %s2851_s9 = scalar_lea.hbm %s3160_s21, 512 }
  0x3b   : > { %s3648_s8 = scalar_select %p3150_p13, 1, 0 }
  0x3c   : > { %p2665_p0 = pneg %p3150_p13  ;;  %s206_s24 = sshll.u32 %s198_s22, 4  ;;  %s3171_s24 = int_to_ptr.vmem [resolvable:$true] %s206_s24 }
  0x3d   : > { %p2852_p4 = scmp.ne.s32.totalorder %s3160_s21, %s2851_s9  ;;  %s2856_s20 = scalar_lea.hbm %s3634_s2, 1024 }
  0x3e   : > { %p3167_p1 = pnand %p2665_p0, %p3638_p11  ;;  %p2857_p5 = scmp.lt.u32.totalorder %s3160_s21, %s3634_s2 }
  0x3f   : > { %p2854_p2 = pnand %p2852_p4, %p2823_p9  ;;  %p2858_p12 = scmp.lt.u32.totalorder %s2856_s20, %s2851_s9 }
  0x40   : > { %p2860_p11 = scmp.lt.u32.totalorder %s2851_s9, %s3160_s21 }
  0x41   : > { %p2855_p3 = pneg %p2854_p2  ;;  %p2859_p0 = por %p2858_p12, %p2857_p5 }
  0x43   : > { %p2861_p10 = por %p2860_p11, %p2859_p0 }
  0x45   : > { %p2862_p8 = pnand %p2861_p10, %p2855_p3 }
  0x47   : > { %2865 = shalt.err (!%p2862_p8)
}
  0x48   : > { %s2866_s22 = scalar_lea.vmem %s3171_s24, 512  ;;  %s3005_s11 = smov [#allocation7]  }
  0x49   : > { %p2867_p4 = scmp.ne.s32.totalorder %s3171_s24, %s2866_s22  ;;  %s2871_s19 = sshll.u32 %s3005_s11, 4  ;;  %s2872_s19 = int_to_ptr.vmem [resolvable:$false] %s2871_s19 }
  0x4a   : > { %s2873_s25 = scalar_lea.vmem %s2872_s19, 1024  ;;  %p2874_p13 = scmp.lt.s32.totalorder %s3171_s24, %s2872_s19 }
  0x4b   : > { %p2869_p2 = pnand %p2867_p4, %p2823_p9  ;;  %p2875_p5 = scmp.lt.s32.totalorder %s2873_s25, %s2866_s22 }
  0x4d   : > { %p2870_p6 = pneg %p2869_p2  ;;  %p2876_p12 = por %p2875_p5, %p2874_p13 }
  0x4f   : > { %p2877_p11 = pnand %p2876_p12, %p2870_p6 }
  0x51   : > { %2880 = shalt.err (!%p2877_p11)
}
  0x52   : > { %s3650_s9 = smov 64   ;;  %s2881_s11 = scalar_lea.hbm %s3633_s1, 9216 }
  0x53   : > { %2675 = dma.hbm_to_vmem [thread:$0]  (!%p3079_p7), %s3160_s21, 512, %s3171_s24, %s3092_s6, %s3650_s9, %s3650_s9, %s3003_s28  }
  0x54   : > { %p2882_p9 = scmp.ne.s32.totalorder %s3633_s1, %s2881_s11  ;;  %p2883_p6 = pneg %p3167_p1 }
  0x55   : > { %p2888_p13 = scmp.lt.u32.totalorder %s2881_s11, %s3633_s1 }
  0x56   : > { %p2884_p8 = pnand %p2883_p6, %p2882_p9 }
  0x58   : > { %p2885_p10 = pneg %p2884_p8 }
  0x5a   : > { %p2890_p3 = pnand %p2888_p13, %p2885_p10 }
  0x5c   : > { %2893 = shalt.err (!%p2890_p3)
}
  0x5d   : > { %s2894_s6 = scalar_lea.vmem %s3162_s10, 9216  ;;  %p2902_p2 = scmp.lt.s32.totalorder %s3162_s10, %s3162_s10 }
  0x5e   : > { %p2895_p7 = scmp.ne.s32.totalorder %s3162_s10, %s2894_s6  ;;  %p2903_p5 = scmp.lt.s32.totalorder %s2894_s6, %s2894_s6 }
  0x60   : > { %p2897_p0 = pnand %p2895_p7, %p2883_p6  ;;  %p2904_p12 = por %p2903_p5, %p2902_p2 }
  0x62   : > { %p2898_p4 = pneg %p2897_p0 }
  0x64   : > { %p2905_p11 = pnand %p2904_p12, %p2898_p4 }
  0x66   : > { %2908 = shalt.err (!%p2905_p11)
}
  0x67   : > { %2668 = dma.hbm_to_vmem [thread:$0]  (!%p3167_p1), %s3633_s1, 9216, %s3162_s10, [#allocation6], %s3650_s9, %s3650_s9, %s3003_s28  }
  0x68   : > { %p3651_p9 = scmp.ne.s32.totalorder %s3648_s8, 0 }
  0x69   : > { %s220_s24 = sand.u32 (!%p3651_p9), 1, %s3124_s29   ;;  %s3228_s25 = sand.u32 (!%p3651_p9), 1, %s2983_s13  }
  0x6a   : > { %218 = sbr.rel (%p3651_p9) target bundleno = 483 (0x1e3), region = 32  ;;  %s221_s4 = scalar_lea.sflag (!%p3651_p9), [#allocation3], %s220_s24 }
  0x6b   : > { %s2654_s20 = smul.u32 (!%p3651_p9), 80, %s3228_s25  ;;  %p3652_p6 = scmp.ne.s32.totalorder (!%p3651_p9), %s3645_s7, 0 }
  0x6d   : > { %s3231_s27 = scalar_lea.vmem (!%p3651_p9), [#allocation2], %s2654_s20 }
  0x71   : > { %2962 = dma.done.wait (%p3652_p6), %s221_s4, 1280  }
  0x72   : > { %2964 = vsyncadd (%p3652_p6), %s221_s4, 4294966016  ;;  %p3653_p1 = scmp.eq.s32.totalorder %s3124_s29, 0 }
  0x74   : > { %2966 = dma.done.wait (%p3653_p1), [#allocation6], 9216   ;;  %p3654_p8 = pmov %p3653_p1 }
  0x75   : > { %s2153_s28 = sshll.u32 %s3228_s25, 5 }
  0x76   : > { %2968 = vsyncadd (%p3654_p8), [#allocation6], 4294958080  ;;  %s3244_s8 = scalar_lea.vmem [#allocation7], %s2153_s28 }
  0x77   : > { %2970 = dma.done.wait (%p3652_p6), %s221_s4, 512  }
  0x78   : > { %2972 = vsyncadd (%p3652_p6), %s221_s4, 4294966784  ;;  %v2737_v0 = vld [vmem:[#allocation5 + $0x100] sm:$0xff]   ;;  %v2740_v3 = vld [vmem:[#allocation5 + $0x108] sm:$0xff]   ;;  %vm282_vm0 = vsmask.f32 3328  ;;  %vm421_vm2 = vcmask 1042432  }
  0x79   : > { %v2738_v1 = vld [vmem:[#allocation5 + $0x140] sm:$0xff]   ;;  %2384 = vmatprep.subr.bf16.mxu0 %v2737_v0  ;;  %v2741_v4 = vld [vmem:[#allocation5 + $0x148] sm:$0xff]   ;;  %v2743_v6 = vld [vmem:[#allocation5 + $0x110] sm:$0xff]   ;;  %vm283_vm1 = vsmask.f32 7440  ;;  %vm422_vm3 = vcmask 1046532  }
  0x7a   : > { %v2739_v2 = vld [vmem:[#allocation5 + $0xc0] sm:$0xff]   ;;  %2540 = vmatprep.subr.bf16.mxu1 %v2738_v1  ;;  %v2742_v5 = vld [vmem:[#allocation5 + $0xc8] sm:$0xff]   ;;  %v2744_v7 = vld [vmem:[#allocation5 + $0x150] sm:$0xff]   ;;  %s3566_s29 = scalar_lea.vmem [#allocation8], %s2153_s28  ;;  %s2341_s10 = sshll.u32 %s2991_s15, 9 }
  0x7b   : > { %2385 = vmatpush3.bf16.msra.mxu0 %v2739_v2  ;;  %2541 = vmatpush3.bf16.msra.mxu1 %v2738_v1  ;;  %v2745_v8 = vld [vmem:[#allocation5 + $0xd0] sm:$0xff]   ;;  %v2746_v9 = vld [vmem:[#allocation5 + $0x118] sm:$0xff]   ;;  %v2749_v12 = vld [vmem:[#allocation5 + $0x120] sm:$0xff]   ;;  %s2025_s7 = sshll.u32 %s3566_s29, 4  ;;  %s3582_s19 = scalar_lea.hbm %s3635_s3, %s2341_s10  ;;  %s3577_s7 = int_to_ptr.vmem [resolvable:$true] %s2025_s7 }
  0x7c   : > { %2386 = vmatprep.subr.bf16.mxu0 %v2740_v3  ;;  %2542 = vmatprep.subr.bf16.mxu1 %v2741_v4  ;;  %v2747_v10 = vld [vmem:[#allocation5 + $0x158] sm:$0xff]   ;;  %v2750_v13 = vld [vmem:[#allocation5 + $0x160] sm:$0xff]   ;;  %v2752_v15 = vld [vmem:[#allocation5 + $0x128] sm:$0xff]   ;;  %s2011_s26 = scalar_lea.sflag [#allocation4], %s3228_s25  ;;  %s2909_s22 = scalar_lea.vmem %s3577_s7, 512 }
  0x7d   : > { %v2748_v11 = vld [vmem:[#allocation5 + $0xd8] sm:$0xff]   ;;  %v2751_v14 = vld [vmem:[#allocation5 + $0xe0] sm:$0xff]   ;;  %v2753_v16 = vld [vmem:[#allocation5 + $0x168] sm:$0xff]   ;;  %p2910_p10 = scmp.ne.s32.totalorder %s3577_s7, %s2909_s22  ;;  %p3659_p13 = scmp.ne.s32.totalorder %s3646_s30, 0 }
  0x7e   : > { %v2754_v17 = vld [vmem:[#allocation5 + $0xe8] sm:$0xff]   ;;  %v2755_v18 = vld [vmem:[#allocation5 + $0x130] sm:$0xff]   ;;  %v2758_v21 = vld [vmem:[#allocation5 + $0x138] sm:$0xff]   ;;  %s3006_s15 = smov [#allocation8]  }
  0x7f   : > { %2387 = vmatpush3.bf16.msra.mxu0 %v2742_v5  ;;  %2543 = vmatpush3.bf16.msra.mxu1 %v2741_v4  ;;  %v2756_v19 = vld [vmem:[#allocation5 + $0x170] sm:$0xff]   ;;  %v2759_v22 = vld [vmem:[#allocation5 + $0x178] sm:$0xff]   ;;  %vm3266_vm4 = vmor %vm421_vm2, %vm422_vm3  ;;  %p2911_p3 = pnand %p2910_p10, %p3659_p13  ;;  %s2913_s6 = sshll.u32 %s3006_s15, 4  ;;  %s2914_s6 = int_to_ptr.vmem [resolvable:$false] %s2913_s6 }
  0x80   : > { %2388 = vmatprep.subr.bf16.mxu0 %v2743_v6  ;;  %2544 = vmatprep.subr.bf16.mxu1 %v2744_v7  ;;  %v2757_v20 = vld [vmem:[#allocation5 + $0xf0] sm:$0xff]   ;;  %v3251_v23 = vld [vmem:[%s3231_s27 + $0x8] sm:$0xf]  ;;  %v2183_v25 = vld [vmem:[%s3231_s27 + $0xc] sm:$0x1]  ;;  %s2915_s0 = scalar_lea.vmem %s2914_s6, 1024  ;;  %p2916_p0 = scmp.lt.s32.totalorder %s3577_s7, %s2914_s6 }
  0x81   : > { %v3254_v24 = vld [vmem:[%s3231_s27 + $0x10] sm:$0xf]  ;;  %v2184_v26 = vld [vmem:[%s3231_s27 + $0x14] sm:$0x1]  ;;  %v578_v27 = vshrl.u32 %v3251_v23, 16  ;;  %v581_v28 = vshll.u32 %v3251_v23, 16  ;;  %vm3272_vm5 = vmor %vm282_vm0, %vm283_vm1  ;;  %p2912_p7 = pneg %p2911_p3  ;;  %p2917_p4 = scmp.lt.s32.totalorder %s2915_s0, %s2909_s22 }
  0x82   : > { %v587_v29 = vshll.u32 %v2183_v25, 16  ;;  %v592_v30 = vshrl.u32 %v3254_v24, 16  ;;  %v2760_v31 = vld [vmem:[#allocation5 + $0xf8] sm:$0xff]   ;;  %v595_v32 = vshll.u32 %v3254_v24, 16  ;;  %v601_v33 = vshll.u32 %v2184_v26, 16  ;;  %v2762_v49 = vld [vmem:[#allocation5 + $0x40] sm:$0xff]  }
  0x83   : > { %2389 = vmatpush3.bf16.msra.mxu0 %v2745_v8  ;;  %2545 = vmatpush3.bf16.msra.mxu1 %v2744_v7  ;;  %v2191_v34 = vld [vmem:[%s3231_s27 + $0x8] sm:$0xe]  ;;  %v2192_v35 = vld [vmem:[%s3231_s27 + $0x10] sm:$0xe]  ;;  %v580_v36 = vrot.slane %v578_v27, 4  ;;  %v583_v37 = vrot.slane %v581_v28, 5  ;;  %v2207_v4 = vcombine.low %v3251_v23, %v3254_v24  ;;  %p2918_p2 = por %p2917_p4, %p2916_p0 }
  0x84   : > { %2390 = vmatprep.subr.bf16.mxu0 %v2746_v9  ;;  %2546 = vmatprep.subr.bf16.mxu1 %v2747_v10  ;;  %v589_v38 = vrot.slane %v587_v29, 5  ;;  %v594_v39 = vrot.slane %v592_v30, 4  ;;  %v597_v42 = vrot.slane %v595_v32, 5  ;;  %v603_v43 = vrot.slane %v601_v33, 5  ;;  %v2763_v50 = vld [vmem:[#allocation5 + $0x80] sm:$0xff]   ;;  %v2765_v8 = vld [vmem:[#allocation5 + $0x48] sm:$0xff]  }
  0x85   : > { %v2199_v44 = vrot.slane %v2191_v34, 9  ;;  %v715_v45 = vrot.slane %v2183_v25, 5  ;;  %v584_v46 = vor.u32 %v583_v37, %v580_v36  ;;  %v2200_v47 = vrot.slane %v2192_v35, 9  ;;  %v2185_v53 = vld [vmem:[%s3231_s27 + $0x1c] sm:$0x1]  ;;  %v2764_v2 = vld [vmem:[#allocation5] sm:$0xff]   ;;  %p2919_p5 = pnand %p2918_p2, %p2912_p7 }
  0x86   : > { %v719_v48 = vrot.slane %v2184_v26, 5  ;;  %v598_v51 = vor.u32 %v597_v42, %v594_v39  ;;  %v2186_v54 = vld [vmem:[%s3231_s27 + $0x24] sm:$0x1]  ;;  %v2193_v57 = vld [vmem:[%s3231_s27 + $0x18] sm:$0xe]  ;;  %v723_v59 = vrot.slane %v2185_v53, 5 }
  0x87   : > { %2391 = vmatpush3.bf16.msra.mxu0 %v2748_v11  ;;  %2547 = vmatpush3.bf16.msra.mxu1 %v2747_v10  ;;  %v716_v52 = vsel %vm3266_vm4, %v2199_v44, %v715_v45  ;;  %v585_v55 = vrot.slane %v584_v46, 4  ;;  %v2194_v58 = vld [vmem:[%s3231_s27 + $0x20] sm:$0xe]  ;;  %v2201_v62 = vrot.slane %v2193_v57, 9  ;;  %v727_v1 = vrot.slane %v2186_v54, 5  ;;  %v2766_v11 = vld [vmem:[#allocation5 + $0x88] sm:$0xff]  }
  0x88   : > { %2392 = vmatprep.subr.bf16.mxu0 %v2749_v12  ;;  %2548 = vmatprep.subr.bf16.mxu1 %v2750_v13  ;;  %v720_v56 = vsel %vm3266_vm4, %v2200_v47, %v719_v48  ;;  %v599_v60 = vrot.slane %v598_v51, 4  ;;  %v2202_v63 = vrot.slane %v2194_v58, 9  ;;  %v615_v9 = vshll.u32 %v2185_v53, 16  ;;  %v3295_v12 = vld [vmem:[%s3231_s27 + $0x18] sm:$0xf]  ;;  %v2769_v24 = vld [vmem:[#allocation5 + $0x50] sm:$0xff]  }
  0x89   : > { %v2215_v61 = vcombine.low %v716_v52, %v720_v56  ;;  %v590_v0 = vsel %vm3272_vm5, %v585_v55, %v589_v38  ;;  %v724_v5 = vsel %vm3266_vm4, %v2201_v62, %v723_v59  ;;  %v2770_v26 = vld [vmem:[#allocation5 + $0x90] sm:$0xff]   ;;  %v2772_v32 = vld [vmem:[#allocation5 + $0x58] sm:$0xff]   ;;  %v2776_v56 = vld [vmem:[#allocation5 + $0x60] sm:$0xff]  }
  0x8a   : > { %v604_v3 = vsel %vm3272_vm5, %v599_v60, %v603_v43  ;;  %v728_v7 = vsel %vm3266_vm4, %v2202_v63, %v727_v1  ;;  %v2771_v30 = vld [vmem:[#allocation5 + $0x10] sm:$0xff]   ;;  %v2773_v34 = vld [vmem:[#allocation5 + $0x98] sm:$0xff]   ;;  %v2777_v57 = vld [vmem:[#allocation5 + $0xa0] sm:$0xff]  }
  0x8b   : > { %2393 = vmatpush3.bf16.msra.mxu0 %v2751_v14  ;;  %2549 = vmatpush3.bf16.msra.mxu1 %v2750_v13  ;;  %v2211_v6 = vcombine.low %v590_v0, %v604_v3  ;;  %v2216_v10 = vcombine.low %v724_v5, %v728_v7  ;;  %v3298_v13 = vld [vmem:[%s3231_s27 + $0x20] sm:$0xf]  ;;  %v606_v14 = vshrl.u32 %v3295_v12, 16  ;;  %v3305_v35 = vld [vmem:[%s3231_s27 + $0x28] sm:$0xf] }
  0x8c   : > { %2394 = vmatprep.subr.bf16.mxu0 %v2752_v15  ;;  %2550 = vmatprep.subr.bf16.mxu1 %v2753_v16  ;;  %v609_v15 = vshll.u32 %v3295_v12, 16  ;;  %v3308_v36 = vld [vmem:[%s3231_s27 + $0x30] sm:$0xf]  ;;  %v2208_v38 = vcombine.low %v3295_v12, %v3298_v13  ;;  %v3315_v39 = vld [vmem:[%s3231_s27 + $0x2c] sm:$0x1]  ;;  %v634_v43 = vshrl.u32 %v3305_v35, 16 }
  0x8d   : > { %2556 = vmatprep.mubr.bf16.mxu1 %v2215_v61  ;;  %1026 = vmatprep.mubr.bf16.mxu0 %v2211_v6  ;;  %v3318_v42 = vld [vmem:[%s3231_s27 + $0x34] sm:$0x1]  ;;  %v637_v44 = vshll.u32 %v3305_v35, 16  ;;  %v643_v46 = vshll.u32 %v3315_v39, 16  ;;  %v648_v47 = vshrl.u32 %v3308_v36, 16  ;;  %v651_v48 = vshll.u32 %v3308_v36, 16 }
  0x8e   : > { %v636_v51 = vrot.slane %v634_v43, 4  ;;  %v657_v53 = vshll.u32 %v3318_v42, 16  ;;  %v2778_v61 = vld [vmem:[#allocation5 + $0x20] sm:$0xff]   ;;  %v2779_v63 = vld [vmem:[#allocation5 + $0x68] sm:$0xff]   ;;  %v731_v3 = vrot.slane %v3315_v39, 5  ;;  %v2209_v5 = vcombine.low %v3305_v35, %v3308_v36 }
  0x8f   : > { %2395 = vmatpush3.bf16.msra.mxu0 %v2754_v17  ;;  %2551 = vmatpush3.bf16.msra.mxu1 %v2753_v16  ;;  %v620_v16 = vshrl.u32 %v3298_v13, 16  ;;  %v2767_v17 = vld [vmem:[#allocation5 + $0x8] sm:$0xff]   ;;  %v639_v52 = vrot.slane %v637_v44, 5  ;;  %v653_v55 = vrot.slane %v651_v48, 5  ;;  %v645_v59 = vrot.slane %v643_v46, 5 }
  0x90   : > { %2396 = vmatprep.subr.bf16.mxu0 %v2755_v18  ;;  %2552 = vmatprep.subr.bf16.mxu1 %v2756_v19  ;;  %v617_v18 = vrot.slane %v615_v9, 5  ;;  %v659_v60 = vrot.slane %v657_v53, 5  ;;  %v2780_v1 = vld [vmem:[#allocation5 + $0xa8] sm:$0xff]   ;;  %v3337_v7 = vld [vmem:[%s3231_s27 + $0x40] sm:$0xf] }
  0x91   : > { %v622_v23 = vrot.slane %v620_v16, 4  ;;  %v640_v58 = vor.u32 %v639_v52, %v636_v51  ;;  %v3334_v6 = vld [vmem:[%s3231_s27 + $0x38] sm:$0xf]  ;;  %v676_v16 = vshrl.u32 %v3337_v7, 16 }
  0x92   : > { %v662_v12 = vshrl.u32 %v3334_v6, 16  ;;  %v2197_v36 = vld [vmem:[%s3231_s27 + $0x38] sm:$0xe]  ;;  %v2210_v53 = vcombine.low %v3334_v6, %v3337_v7 }
  0x93   : > { %2397 = vmatpush3.bf16.msra.mxu0 %v2757_v20  ;;  %2553 = vmatpush3.bf16.msra.mxu1 %v2756_v19  ;;  %v623_v19 = vshll.u32 %v3298_v13, 16  ;;  %v629_v20 = vshll.u32 %v2186_v54, 16  ;;  %v650_v54 = vrot.slane %v648_v47, 4  ;;  %v641_v0 = vrot.slane %v640_v58, 4  ;;  %v3367_v58 = vld [vmem:[%s3231_s27] sm:$0xf] }
  0x94   : > { %2398 = vmatprep.subr.bf16.mxu0 %v2758_v21  ;;  %2554 = vmatprep.subr.bf16.mxu1 %v2759_v22  ;;  %v608_v21 = vrot.slane %v606_v14, 4  ;;  %v665_v13 = vshll.u32 %v3334_v6, 16  ;;  %v2205_v43 = vrot.slane %v2197_v36, 9 }
  0x95   : > { %v625_v25 = vrot.slane %v623_v19, 5  ;;  %v631_v29 = vrot.slane %v629_v20, 5  ;;  %v654_v62 = vor.u32 %v653_v55, %v650_v54  ;;  %v2195_v19 = vld [vmem:[%s3231_s27 + $0x28] sm:$0xe]  ;;  %v2783_v20 = vld [vmem:[#allocation5 + $0x70] sm:$0xff]  }
  0x97   : > { %2399 = vmatpush3.bf16.msra.mxu0 %v2760_v31  ;;  %2555 = vmatpush3.bf16.msra.mxu1 %v2759_v22  ;;  %v611_v22 = vrot.slane %v609_v15, 5  ;;  %v626_v28 = vor.u32 %v625_v25, %v622_v23  ;;  %v2784_v25 = vld [vmem:[#allocation5 + $0xb0] sm:$0xff]  }
  0x98   : > { %2436 = vmatprep.subr.bf16.mxu0 %v2762_v49  ;;  %2564 = vmatprep.subr.bf16.mxu1 %v2763_v50 }
  0x99   : > { %v612_v27 = vor.u32 %v611_v22, %v608_v21  ;;  %v627_v33 = vrot.slane %v626_v28, 4  ;;  %v664_v21 = vrot.slane %v662_v12, 4  ;;  %v667_v22 = vrot.slane %v665_v13, 5 }
  0x9a   : > { %1027 = vmatmul.mubr.bf16.vlgmr.msra.gmra.mrb[0].mxu0 %v2207_v4  ;;  %2557 = vmatmul.mubr.bf16.vlgmr.msra.gmra.mrb[0].mxu1 %v2216_v10  ;;  %v646_v4 = vsel %vm3272_vm5, %v641_v0, %v645_v59  ;;  %v2781_v10 = vld [vmem:[#allocation5 + $0x28] sm:$0xff]  }
  0x9b   : > { %2437 = vmatpush3.bf16.msra.mxu0 %v2764_v2  ;;  %2565 = vmatpush3.bf16.msra.mxu1 %v2763_v50  ;;  %v613_v31 = vrot.slane %v612_v27, 4  ;;  %v632_v45 = vsel %vm3272_vm5, %v627_v33, %v631_v29  ;;  %v2774_v50 = vld [vmem:[#allocation5 + $0x18] sm:$0xff]   ;;  %v655_v2 = vrot.slane %v654_v62, 4  ;;  %v2203_v29 = vrot.slane %v2195_v19, 9  ;;  %v2791_v19 = vld [vmem:[#allocation5 + $0x200] sm:$0xff]  }
  0x9c   : > { %2438 = vmatprep.subr.bf16.mxu0 %v2765_v8  ;;  %2566 = vmatprep.subr.bf16.mxu1 %v2766_v11  ;;  %v2189_v8 = vld [vmem:[%s3231_s27 + $0x3c] sm:$0x1]  ;;  %v735_v33 = vrot.slane %v3318_v42, 5  ;;  %v3370_v59 = vld [vmem:[%s3231_s27 + $0x8] sm:$0xf]  ;;  %v286_v62 = vshrl.u32 %v3367_v58, 16 }
  0x9d   : > { %v618_v37 = vsel %vm3272_vm5, %v613_v31, %v617_v18  ;;  %v660_v9 = vsel %vm3272_vm5, %v655_v2, %v659_v60  ;;  %v671_v14 = vshll.u32 %v2189_v8, 16  ;;  %v668_v31 = vor.u32 %v667_v22, %v664_v21  ;;  %v274_v60 = vld [vmem:[%s3231_s27 + $0x4] sm:$0x1]  ;;  %v276_v21 = vld [vmem:[%s3231_s27 + $0x14] sm:$0x1] }
  0x9e   : > { %v2212_v49 = vcombine.low %v618_v37, %v632_v45  ;;  %v2213_v15 = vcombine.low %v646_v4, %v660_v9  ;;  %v732_v35 = vsel %vm3266_vm4, %v2203_v29, %v731_v3  ;;  %v2198_v37 = vld [vmem:[%s3231_s27 + $0x40] sm:$0xe]  ;;  %v739_v44 = vrot.slane %v2189_v8, 5  ;;  %v2786_v45 = vld [vmem:[#allocation5 + $0x78] sm:$0xff]  }
  0x9f   : > { %2439 = vmatpush3.bf16.msra.mxu0 %v2767_v17  ;;  %2567 = vmatpush3.bf16.msra.mxu1 %v2766_v11  ;;  %v2190_v11 = vld [vmem:[%s3231_s27 + $0x44] sm:$0x1]  ;;  %v679_v17 = vshll.u32 %v3337_v7, 16  ;;  %v673_v23 = vrot.slane %v671_v14, 5  ;;  %v2206_v42 = vrot.slane %v2198_v37, 9  ;;  %v295_v0 = vshll.u32 %v274_v60, 16 }
  0xa0   : > { %2440 = vmatprep.subr.bf16.mxu0 %v2769_v24  ;;  %2568 = vmatprep.subr.bf16.mxu1 %v2770_v26  ;;  %v685_v18 = vshll.u32 %v2190_v11, 16  ;;  %v2196_v24 = vld [vmem:[%s3231_s27 + $0x30] sm:$0xe]  ;;  %v743_v48 = vrot.slane %v2190_v11, 5  ;;  %v740_v51 = vsel %vm3266_vm4, %v2205_v43, %v739_v44  ;;  %v303_v2 = vshll.u32 %v3370_v59, 16  ;;  %v2793_v43 = vld [vmem:[#allocation5 + $0x1c8] sm:$0xff]  }
  0xa1   : > { %1034 = vmatprep.mubr.bf16.mxu0 %v2212_v49  ;;  %v681_v27 = vrot.slane %v679_v17, 5  ;;  %v2787_v49 = vld [vmem:[#allocation5 + $0xb8] sm:$0xff]   ;;  %v397_v4 = vld [vmem:[%s3231_s27] sm:$0xe]  ;;  %v426_v9 = vrot.slane %v274_v60, 5  ;;  %v2163_v36 = vcombine.low %v3367_v58, %v3370_v59 }
  0xa2   : > { %1035 = vmatmul.mubr.bf16.gmra.mrb[4].mxu0 %v2208_v38  ;;  %v687_v28 = vrot.slane %v685_v18, 5  ;;  %v669_v38 = vrot.slane %v668_v31, 4  ;;  %v744_v54 = vsel %vm3266_vm4, %v2206_v42, %v743_v48  ;;  %v398_v7 = vld [vmem:[%s3231_s27 + $0x8] sm:$0xe]  ;;  %v2155_v8 = vrot.slane %v397_v4, 9  ;;  %v2790_v18 = vld [vmem:[#allocation5 + $0x1c0] sm:$0xff]  }
  0xa3   : > { %2441 = vmatpush3.bf16.msra.mxu0 %v2771_v30  ;;  %2569 = vmatpush3.bf16.msra.mxu1 %v2770_v26  ;;  %v678_v26 = vrot.slane %v676_v16, 4  ;;  %v2785_v30 = vld [vmem:[#allocation5 + $0x30] sm:$0xff]   ;;  %v305_v12 = vrot.slane %v303_v2, 5  ;;  %v2156_v16 = vrot.slane %v398_v7, 9  ;;  %v400_v29 = vld [vmem:[%s3231_s27 + $0x18] sm:$0xe] }
  0xa4   : > { %2442 = vmatprep.subr.bf16.mxu0 %v2772_v32  ;;  %2570 = vmatprep.subr.bf16.mxu1 %v2773_v34  ;;  %v2204_v32 = vrot.slane %v2196_v24, 9  ;;  %v277_v24 = vld [vmem:[%s3231_s27 + $0x1c] sm:$0x1]  ;;  %v269_v48 = vld [vmem:[%s3231_s27 + $0x18] sm:$0xf] }
  0xa5   : > { %1042 = vmatprep.mubr.bf16.mxu0 %v2213_v15  ;;  %v427_v15 = vsel %vm3266_vm4, %v2155_v8, %v426_v9  ;;  %v438_v31 = vrot.slane %v277_v24, 5  ;;  %v2795_v42 = vld [vmem:[#allocation5 + $0x188] sm:$0xff]   ;;  %v2800_v2 = vld [vmem:[#allocation5 + $0x1d8] sm:$0xff]   ;;  %v3414_v9 = vld [vmem:[%s3231_s27 + $0x24] sm:$0x1] }
  0xa6   : > { %v736_v39 = vsel %vm3266_vm4, %v2204_v32, %v735_v33  ;;  %v2158_v33 = vrot.slane %v400_v29, 9  ;;  %v2801_v4 = vld [vmem:[#allocation5 + $0x218] sm:$0xff]  }
  0xa7   : > { %2443 = vmatpush3.bf16.msra.mxu0 %v2774_v50  ;;  %2571 = vmatpush3.bf16.msra.mxu1 %v2773_v34  ;;  %v682_v34 = vor.u32 %v681_v27, %v678_v26  ;;  %v2217_v47 = vcombine.low %v732_v35, %v736_v39  ;;  %v674_v50 = vsel %vm3272_vm5, %v669_v38, %v673_v23  ;;  %v434_v26 = vrot.slane %v276_v21, 5  ;;  %v3411_v8 = vld [vmem:[%s3231_s27 + $0x28] sm:$0xf] }
  0xa8   : > { %2444 = vmatprep.subr.bf16.mxu0 %v2776_v56  ;;  %2572 = vmatprep.subr.bf16.mxu1 %v2777_v57  ;;  %v2218_v56 = vcombine.low %v740_v51, %v744_v54  ;;  %v439_v39 = vsel %vm3266_vm4, %v2158_v33, %v438_v31  ;;  %v337_v51 = vshll.u32 %v277_v24, 16  ;;  %v2797_v54 = vld [vmem:[#allocation5 + $0x1d0] sm:$0xff]   ;;  %v2805_v24 = vld [vmem:[#allocation5 + $0x220] sm:$0xff]   ;;  %v2808_v33 = vld [vmem:[#allocation5 + $0x228] sm:$0xff]  }
  0xa9   : > { %v683_v46 = vrot.slane %v682_v34, 4  ;;  %2560 = vmatprep.mubr.bf16.mxu1 %v2217_v47  ;;  %v2792_v34 = vld [vmem:[#allocation5 + $0x180] sm:$0xff]   ;;  %v323_v47 = vshll.u32 %v276_v21, 16 }
  0xaa   : > { %1043 = vmatmul.mubr.bf16.gmra.mrb[8].mxu0 %v2209_v5  ;;  %2561 = vmatmul.mubr.bf16.gmra.mrb[4].mxu1 %v2218_v56  ;;  %v288_v5 = vrot.slane %v286_v62, 4 }
  0xab   : > { %2445 = vmatpush3.bf16.msra.mxu0 %v2778_v61  ;;  %2573 = vmatpush3.bf16.msra.mxu1 %v2777_v57  ;;  %v688_v52 = vsel %vm3272_vm5, %v683_v46, %v687_v28  ;;  %v2788_v57 = vld [vmem:[#allocation5 + $0x38] sm:$0xff]   ;;  %v3399_v46 = vld [vmem:[%s3231_s27 + $0x10] sm:$0xf] }
  0xac   : > { %2446 = vmatprep.subr.bf16.mxu0 %v2779_v63  ;;  %2574 = vmatprep.subr.bf16.mxu1 %v2780_v1  ;;  %v2214_v55 = vcombine.low %v674_v50, %v688_v52  ;;  %v275_v61 = vld [vmem:[%s3231_s27 + $0xc] sm:$0x1]  ;;  %v289_v63 = vshll.u32 %v3367_v58, 16  ;;  %v317_v50 = vshll.u32 %v3399_v46, 16  ;;  %v328_v52 = vshrl.u32 %v269_v48, 16 }
  0xad   : > { %v309_v3 = vshll.u32 %v275_v61, 16  ;;  %v430_v17 = vrot.slane %v275_v61, 5  ;;  %v325_v61 = vrot.slane %v323_v47, 5  ;;  %v2164_v7 = vcombine.low %v3399_v46, %v269_v48 }
  0xae   : > { %1050 = vmatprep.mubr.bf16.mxu0 %v2214_v55  ;;  %v291_v6 = vrot.slane %v289_v63, 5  ;;  %v2798_v55 = vld [vmem:[#allocation5 + $0x210] sm:$0xff]   ;;  %v330_v58 = vrot.slane %v328_v52, 4  ;;  %v339_v63 = vrot.slane %v337_v51, 5 }
  0xaf   : > { %2447 = vmatpush3.bf16.msra.mxu0 %v2781_v10  ;;  %2575 = vmatpush3.bf16.msra.mxu1 %v2780_v1  ;;  %v300_v1 = vshrl.u32 %v3370_v59, 16  ;;  %v297_v10 = vrot.slane %v295_v0, 5  ;;  %v311_v13 = vrot.slane %v309_v3, 5  ;;  %v431_v23 = vsel %vm3266_vm4, %v2156_v16, %v430_v17  ;;  %v2799_v0 = vld [vmem:[#allocation5 + $0x190] sm:$0xff]  }
  0xb0   : > { %2448 = vmatprep.subr.bf16.mxu0 %v2783_v20  ;;  %2576 = vmatprep.subr.bf16.mxu1 %v2784_v25  ;;  %v292_v14 = vor.u32 %v291_v6, %v288_v5  ;;  %v2171_v28 = vcombine.low %v427_v15, %v431_v23  ;;  %v3405_v5 = vld [vmem:[%s3231_s27 + $0x20] sm:$0xf]  ;;  %v351_v15 = vshll.u32 %v3414_v9, 16  ;;  %v356_v17 = vshrl.u32 %v3411_v8, 16 }
  0xb1   : > { %v302_v11 = vrot.slane %v300_v1, 4  ;;  %v2811_v51 = vld [vmem:[#allocation5 + $0x1f0] sm:$0xff]  }
  0xb2   : > { %1051 = vmatmul.mubr.bf16.gmra.mrb[12].mxu0 %v2210_v53  ;;  %v293_v22 = vrot.slane %v292_v14, 4  ;;  %2580 = vmatprep.mubr.bf16.mxu1 %v2171_v28  ;;  %v331_v53 = vshll.u32 %v269_v48, 16  ;;  %v345_v14 = vshll.u32 %v3405_v5, 16  ;;  %v353_v23 = vrot.slane %v351_v15, 5  ;;  %v2806_v28 = vld [vmem:[#allocation5 + $0x1a0] sm:$0xff]   ;;  %v2814_v15 = vld [vmem:[#allocation5 + $0x1f8] sm:$0xff]  }
  0xb3   : > { %2449 = vmatpush3.bf16.msra.mxu0 %v2785_v30  ;;  %2577 = vmatpush3.bf16.msra.mxu1 %v2784_v25  ;;  %v306_v20 = vor.u32 %v305_v12, %v302_v11  ;;  %v399_v25 = vld [vmem:[%s3231_s27 + $0x10] sm:$0xe]  ;;  %v2802_v12 = vld [vmem:[#allocation5 + $0x198] sm:$0xff]  }
  0xb4   : > { %2450 = vmatprep.subr.bf16.mxu0 %v2786_v45  ;;  %2578 = vmatprep.subr.bf16.mxu1 %v2787_v49  ;;  %v2157_v30 = vrot.slane %v399_v25, 9  ;;  %v298_v32 = vsel %vm3272_vm5, %v293_v22, %v297_v10  ;;  %v2794_v45 = vld [vmem:[#allocation5 + $0x208] sm:$0xff]   ;;  %v333_v59 = vrot.slane %v331_v53, 5  ;;  %v347_v22 = vrot.slane %v345_v14, 5 }
  0xb5   : > { %v307_v27 = vrot.slane %v306_v20, 4  ;;  %v3417_v10 = vld [vmem:[%s3231_s27 + $0x2c] sm:$0x1]  ;;  %v2804_v20 = vld [vmem:[#allocation5 + $0x1e0] sm:$0xff]   ;;  %v358_v25 = vrot.slane %v356_v17, 4 }
  0xb6   : > { %v435_v37 = vsel %vm3266_vm4, %v2157_v30, %v434_v26  ;;  %v334_v62 = vor.u32 %v333_v59, %v330_v58  ;;  %v2807_v30 = vld [vmem:[#allocation5 + $0x1e8] sm:$0xff]   ;;  %v2815_v17 = vld [vmem:[#allocation5 + $0x238] sm:$0xff]  }
  0xb7   : > { %2451 = vmatpush3.bf16.msra.mxu0 %v2788_v57  ;;  %2579 = vmatpush3.bf16.msra.mxu1 %v2787_v49  ;;  %v312_v35 = vsel %vm3272_vm5, %v307_v27, %v311_v13  ;;  %v2172_v44 = vcombine.low %v435_v37, %v439_v39  ;;  %v314_v49 = vshrl.u32 %v3399_v46, 16  ;;  %v319_v57 = vrot.slane %v317_v50, 5  ;;  %v2809_v39 = vld [vmem:[#allocation5 + $0x1a8] sm:$0xff]   ;;  %v401_v50 = vld [vmem:[%s3231_s27 + $0x20] sm:$0xe] }
  0xb8   : > { %2488 = vmatprep.subr.bf16.mxu0 %v2790_v18  ;;  %2588 = vmatprep.subr.bf16.mxu1 %v2791_v19  ;;  %v2167_v38 = vcombine.low %v298_v32, %v312_v35  ;;  %v335_v3 = vrot.slane %v334_v62, 4  ;;  %v342_v13 = vshrl.u32 %v3405_v5, 16  ;;  %v359_v18 = vshll.u32 %v3411_v8, 16  ;;  %v3428_v35 = vld [vmem:[%s3231_s27 + $0x30] sm:$0xf] }
  0xb9   : > { %v316_v56 = vrot.slane %v314_v49, 4  ;;  %v373_v46 = vshll.u32 %v3428_v35, 16  ;;  %v403_v62 = vld [vmem:[%s3231_s27 + $0x30] sm:$0xe] }
  0xba   : > { %1300 = vmatprep.mubr.bf16.mxu0 %v2167_v38  ;;  %2581 = vmatmul.mubr.bf16.vlgmr.msra.gmra.mrb[0].mxu1 %v2172_v44  ;;  %v340_v11 = vsel %vm3272_vm5, %v335_v3, %v339_v63  ;;  %v344_v21 = vrot.slane %v342_v13, 4  ;;  %v361_v26 = vrot.slane %v359_v18, 5  ;;  %v2165_v38 = vcombine.low %v3405_v5, %v3411_v8  ;;  %v281_v44 = vld [vmem:[%s3231_s27 + $0x3c] sm:$0x1]  ;;  %v404_v3 = vld [vmem:[%s3231_s27 + $0x38] sm:$0xe] }
  0xbb   : > { %1301 = vmatmul.mubr.bf16.vlgmr.msra.gmra.mrb[16].mxu0 %v2163_v36  ;;  %2589 = vmatpush3.bf16.msra.mxu1 %v2791_v19  ;;  %v320_v60 = vor.u32 %v319_v57, %v316_v56  ;;  %v365_v19 = vshll.u32 %v3417_v10, 16  ;;  %v3431_v36 = vld [vmem:[%s3231_s27 + $0x38] sm:$0xf]  ;;  %v402_v56 = vld [vmem:[%s3231_s27 + $0x28] sm:$0xe]  ;;  %v2812_v57 = vld [vmem:[#allocation5 + $0x230] sm:$0xff]  }
  0xbc   : > { %2489 = vmatpush3.bf16.msra.mxu0 %v2792_v34  ;;  %2590 = vmatprep.subr.bf16.mxu1 %v2794_v45  ;;  %v348_v29 = vor.u32 %v347_v22, %v344_v21  ;;  %v362_v31 = vor.u32 %v361_v26, %v358_v25  ;;  %v384_v48 = vshrl.u32 %v3431_v36, 16  ;;  %v387_v49 = vshll.u32 %v3431_v36, 16  ;;  %v2813_v8 = vld [vmem:[#allocation5 + $0x1b0] sm:$0xff]   ;;  %v2816_v21 = vld [vmem:[#allocation5 + $0x1b8] sm:$0xff]  }
  0xbd   : > { %2490 = vmatprep.subr.bf16.mxu0 %v2793_v43  ;;  %v321_v1 = vrot.slane %v320_v60, 4  ;;  %v367_v27 = vrot.slane %v365_v19, 5  ;;  %v280_v43 = vld [vmem:[%s3231_s27 + $0x34] sm:$0x1]  ;;  %v446_v5 = vrot.slane %v3417_v10, 5  ;;  %v2162_v13 = vrot.slane %v404_v3, 9 }
  0xbe   : > { %v349_v32 = vrot.slane %v348_v29, 4  ;;  %v363_v34 = vrot.slane %v362_v31, 4  ;;  %v386_v59 = vrot.slane %v384_v48, 4  ;;  %v389_v60 = vrot.slane %v387_v49, 5  ;;  %v3466_v26 = vld [vmem:[%s3231_s27 + $0x10] sm:$0xf] }
  0xbf   : > { %2591 = vmatpush3.bf16.msra.mxu1 %v2794_v45  ;;  %v326_v6 = vsel %vm3272_vm5, %v321_v1, %v325_v61  ;;  %v370_v45 = vshrl.u32 %v3428_v35, 16  ;;  %v2159_v61 = vrot.slane %v401_v50, 9  ;;  %v442_v1 = vrot.slane %v3414_v9, 5  ;;  %v2276_v29 = vld [vmem:[%s3231_s27 + $0x1c] sm:$0x1] }
  0xc0   : > { %2491 = vmatpush3.bf16.msra.mxu0 %v2795_v42  ;;  %2592 = vmatprep.subr.bf16.mxu1 %v2798_v55  ;;  %v2168_v16 = vcombine.low %v326_v6, %v340_v11  ;;  %v354_v37 = vsel %vm3272_vm5, %v349_v32, %v353_v23  ;;  %v368_v47 = vsel %vm3272_vm5, %v363_v34, %v367_v27  ;;  %v379_v42 = vshll.u32 %v280_v43, 16  ;;  %v3469_v27 = vld [vmem:[%s3231_s27 + $0x18] sm:$0xf]  ;;  %v2283_v34 = vld [vmem:[%s3231_s27 + $0x10] sm:$0xe] }
  0xc1   : > { %2492 = vmatprep.subr.bf16.mxu0 %v2797_v54  ;;  %v2169_v52 = vcombine.low %v354_v37, %v368_v47  ;;  %v372_v53 = vrot.slane %v370_v45, 4  ;;  %v375_v54 = vrot.slane %v373_v46, 5  ;;  %v2161_v6 = vrot.slane %v403_v62, 9  ;;  %v2284_v37 = vld [vmem:[%s3231_s27 + $0x18] sm:$0xe] }
  0xc2   : > { %1308 = vmatprep.mubr.bf16.mxu0 %v2168_v16  ;;  %v381_v58 = vrot.slane %v379_v42, 5  ;;  %v454_v14 = vrot.slane %v281_v44, 5  ;;  %v2166_v23 = vcombine.low %v3428_v35, %v3431_v36  ;;  %v1419_v31 = vshll.u32 %v3466_v26, 16  ;;  %v2277_v47 = vld [vmem:[%s3231_s27 + $0x24] sm:$0x1] }
  0xc3   : > { %2593 = vmatpush3.bf16.msra.mxu1 %v2798_v55  ;;  %1309 = vmatmul.mubr.bf16.gmra.mrb[20].mxu0 %v2164_v7  ;;  %v393_v55 = vshll.u32 %v281_v44, 16  ;;  %v376_v63 = vor.u32 %v375_v54, %v372_v53  ;;  %v450_v7 = vrot.slane %v280_v43, 5  ;;  %v1433_v35 = vshll.u32 %v3469_v27, 16  ;;  %v3488_v62 = vld [vmem:[%s3231_s27 + $0x20] sm:$0xf] }
  0xc4   : > { %2493 = vmatpush3.bf16.msra.mxu0 %v2799_v0  ;;  %2594 = vmatprep.subr.bf16.mxu1 %v2801_v4  ;;  %v1439_v36 = vshll.u32 %v2276_v29, 16  ;;  %v1421_v44 = vrot.slane %v1419_v31, 5  ;;  %v2292_v50 = vrot.slane %v2284_v37, 9  ;;  %v1557_v53 = vrot.slane %v2276_v29, 5  ;;  %v2290_v31 = vld [vmem:[%s3231_s27 + $0x48] sm:$0xe] }
  0xc5   : > { %2494 = vmatprep.subr.bf16.mxu0 %v2800_v2  ;;  %1316 = vmatprep.mubr.bf16.mxu0 %v2169_v52  ;;  %v395_v0 = vrot.slane %v393_v55, 5  ;;  %v2160_v2 = vrot.slane %v402_v56, 9  ;;  %v377_v11 = vrot.slane %v376_v63, 4  ;;  %v451_v10 = vsel %vm3266_vm4, %v2161_v6, %v450_v7  ;;  %v2285_v55 = vld [vmem:[%s3231_s27 + $0x20] sm:$0xe] }
  0xc6   : > { %v1435_v42 = vrot.slane %v1433_v35, 5  ;;  %v1441_v48 = vrot.slane %v1439_v36, 5  ;;  %v2299_v54 = vcombine.low %v3466_v26, %v3469_v27  ;;  %v2286_v56 = vld [vmem:[%s3231_s27 + $0x28] sm:$0xe]  ;;  %v1447_v3 = vshll.u32 %v3488_v62, 16 }
  0xc7   : > { %2595 = vmatpush3.bf16.msra.mxu1 %v2801_v4  ;;  %v390_v4 = vor.u32 %v389_v60, %v386_v59  ;;  %v447_v16 = vsel %vm3266_vm4, %v2160_v2, %v446_v5  ;;  %v382_v18 = vsel %vm3272_vm5, %v377_v11, %v381_v58  ;;  %v2293_v59 = vrot.slane %v2285_v55, 9  ;;  %v3503_v11 = vld [vmem:[%s3231_s27 + $0x3c] sm:$0x1]  ;;  %v3523_v36 = vld [vmem:[%s3231_s27 + $0x30] sm:$0xf] }
  0xc8   : > { %2495 = vmatpush3.bf16.msra.mxu0 %v2802_v12  ;;  %2596 = vmatprep.subr.bf16.mxu1 %v2805_v24  ;;  %v443_v12 = vsel %vm3266_vm4, %v2159_v61, %v442_v1  ;;  %v2294_v60 = vrot.slane %v2286_v56, 9  ;;  %v3493_v1 = vld [vmem:[%s3231_s27 + $0x28] sm:$0xf]  ;;  %v1444_v2 = vshrl.u32 %v3488_v62, 16  ;;  %v1573_v35 = vrot.slane %v3503_v11, 5 }
  0xc9   : > { %2496 = vmatprep.subr.bf16.mxu0 %v2804_v20  ;;  %v391_v9 = vrot.slane %v390_v4, 4  ;;  %v2173_v19 = vcombine.low %v443_v12, %v447_v16  ;;  %v455_v20 = vsel %vm3266_vm4, %v2162_v13, %v454_v14  ;;  %v2288_v16 = vld [vmem:[%s3231_s27 + $0x38] sm:$0xe] }
  0xca   : > { %v1446_v14 = vrot.slane %v1444_v2, 4 }
  0xcb   : > { %2597 = vmatpush3.bf16.msra.mxu1 %v2805_v24  ;;  %1317 = vmatmul.mubr.bf16.gmra.mrb[24].mxu0 %v2165_v38  ;;  %v396_v22 = vsel %vm3272_vm5, %v391_v9, %v395_v0  ;;  %v2174_v24 = vcombine.low %v451_v10, %v455_v20  ;;  %v2291_v38 = vrot.slane %v2283_v34, 9  ;;  %v1558_v0 = vsel %vm3266_vm4, %v2292_v50, %v1557_v53  ;;  %v2287_v9 = vld [vmem:[%s3231_s27 + $0x30] sm:$0xe]  ;;  %v3514_v20 = vld [vmem:[%s3231_s27 + $0x44] sm:$0x1] }
  0xcc   : > { %2497 = vmatpush3.bf16.msra.mxu0 %v2806_v28  ;;  %2598 = vmatprep.subr.bf16.mxu1 %v2808_v33  ;;  %v2170_v25 = vcombine.low %v382_v18, %v396_v22  ;;  %v2275_v28 = vld [vmem:[%s3231_s27 + $0x14] sm:$0x1]  ;;  %v1458_v18 = vshrl.u32 %v3493_v1, 16  ;;  %v2296_v34 = vrot.slane %v2288_v16, 9  ;;  %v1475_v53 = vshll.u32 %v3523_v36, 16 }
  0xcd   : > { %2498 = vmatprep.subr.bf16.mxu0 %v2807_v30  ;;  %2584 = vmatprep.mubr.bf16.mxu1 %v2173_v19  ;;  %v1416_v30 = vshrl.u32 %v3466_v26, 16  ;;  %v1425_v32 = vshll.u32 %v2275_v28, 16  ;;  %v1461_v19 = vshll.u32 %v3493_v1, 16  ;;  %v2289_v26 = vld [vmem:[%s3231_s27 + $0x40] sm:$0xe]  ;;  %v1509_v40 = vshll.u32 %v3514_v20, 16 }
  0xce   : > { %2585 = vmatmul.mubr.bf16.gmra.mrb[4].mxu1 %v2174_v24  ;;  %1324 = vmatprep.mubr.bf16.mxu0 %v2170_v25  ;;  %v2295_v24 = vrot.slane %v2287_v9, 9  ;;  %v3517_v25 = vld [vmem:[%s3231_s27 + $0x4c] sm:$0x1] }
  0xcf   : > { %2599 = vmatpush3.bf16.msra.mxu1 %v2808_v33  ;;  %v1430_v33 = vshrl.u32 %v3469_v27, 16  ;;  %v1418_v43 = vrot.slane %v1416_v30, 4  ;;  %v1427_v45 = vrot.slane %v1425_v32, 5  ;;  %v1463_v29 = vrot.slane %v1461_v19, 5 }
  0xd0   : > { %2499 = vmatpush3.bf16.msra.mxu0 %v2809_v39  ;;  %2600 = vmatprep.subr.bf16.mxu1 %v2812_v57  ;;  %v1553_v39 = vrot.slane %v2275_v28, 5  ;;  %v1460_v28 = vrot.slane %v1458_v18, 4  ;;  %v1581_v50 = vrot.slane %v3517_v25, 5 }
  0xd1   : > { %2500 = vmatprep.subr.bf16.mxu0 %v2811_v51  ;;  %v1432_v46 = vrot.slane %v1430_v33, 4  ;;  %v2278_v51 = vld [vmem:[%s3231_s27 + $0x2c] sm:$0x1]  ;;  %v1422_v52 = vor.u32 %v1421_v44, %v1418_v43  ;;  %v2297_v43 = vrot.slane %v2289_v26, 9  ;;  %v2272_v44 = vld [vmem:[%s3231_s27 + $0x38] sm:$0xf] }
  0xd2   : > { %v1554_v49 = vsel %vm3266_vm4, %v2291_v38, %v1553_v39  ;;  %v1565_v61 = vrot.slane %v2278_v51, 5  ;;  %v1464_v37 = vor.u32 %v1463_v29, %v1460_v28  ;;  %v2300_v39 = vcombine.low %v3488_v62, %v3493_v1 }
  0xd3   : > { %2601 = vmatpush3.bf16.msra.mxu1 %v2812_v57  ;;  %1325 = vmatmul.mubr.bf16.gmra.mrb[28].mxu0 %v2166_v23  ;;  %v1561_v57 = vrot.slane %v2277_v47, 5  ;;  %v1436_v58 = vor.u32 %v1435_v42, %v1432_v46  ;;  %v1423_v63 = vrot.slane %v1422_v52, 4  ;;  %v2307_v5 = vcombine.low %v1554_v49, %v1558_v0  ;;  %v2274_v0 = vld [vmem:[%s3231_s27 + $0x48] sm:$0xf] }
  0xd4   : > { %2501 = vmatpush3.bf16.msra.mxu0 %v2813_v8  ;;  %2602 = vmatprep.subr.bf16.mxu1 %v2815_v17  ;;  %v1566_v7 = vsel %vm3266_vm4, %v2294_v60, %v1565_v61  ;;  %v2279_v8 = vld [vmem:[%s3231_s27 + $0x34] sm:$0x1]  ;;  %v1467_v23 = vshll.u32 %v2278_v51, 16  ;;  %v1574_v46 = vsel %vm3266_vm4, %v2296_v34, %v1573_v35  ;;  %v2298_v42 = vrot.slane %v2290_v31, 9  ;;  %v2273_v60 = vld [vmem:[%s3231_s27 + $0x40] sm:$0xf] }
  0xd5   : > { %2502 = vmatprep.subr.bf16.mxu0 %v2814_v15  ;;  %v1437_v4 = vrot.slane %v1436_v58, 4  ;;  %v1562_v6 = vsel %vm3266_vm4, %v2293_v59, %v1561_v57  ;;  %v1428_v12 = vsel %vm3272_vm5, %v1423_v63, %v1427_v45  ;;  %v1449_v15 = vrot.slane %v1447_v3, 5  ;;  %2604 = vmatprep.mubr.bf16.mxu1 %v2307_v5 }
  0xd6   : > { %v2308_v13 = vcombine.low %v1562_v6, %v1566_v7  ;;  %v1569_v30 = vrot.slane %v2279_v8, 5  ;;  %v1469_v33 = vrot.slane %v1467_v23, 5  ;;  %v1472_v51 = vshrl.u32 %v3523_v36, 16 }
  0xd7   : > { %2603 = vmatpush3.bf16.msra.mxu1 %v2815_v17  ;;  %v1442_v10 = vsel %vm3272_vm5, %v1437_v4, %v1441_v48  ;;  %v1453_v17 = vshll.u32 %v2277_v47, 16  ;;  %v1450_v22 = vor.u32 %v1449_v15, %v1446_v14  ;;  %v1577_v47 = vrot.slane %v3514_v20, 5 }
  0xd8   : > { %2503 = vmatpush3.bf16.msra.mxu0 %v2816_v21  ;;  %v2303_v21 = vcombine.low %v1428_v12, %v1442_v10  ;;  %v1570_v38 = vsel %vm3266_vm4, %v2295_v24, %v1569_v30  ;;  %v1465_v48 = vrot.slane %v1464_v37, 4  ;;  %v1486_v55 = vshrl.u32 %v2272_v44, 16 }
  0xd9   : > { %v1455_v27 = vrot.slane %v1453_v17, 5  ;;  %v1451_v32 = vrot.slane %v1450_v22, 4  ;;  %v2309_v49 = vcombine.low %v1570_v38, %v1574_v46  ;;  %v1578_v52 = vsel %vm3266_vm4, %v2297_v43, %v1577_v47 }
  0xda   : > { %2605 = vmatmul.mubr.bf16.vlgmr.msra.gmra.mrb[0].mxu1 %v2308_v13  ;;  %1864 = vmatprep.mubr.bf16.mxu0 %v2303_v21  ;;  %v1470_v56 = vsel %vm3272_vm5, %v1465_v48, %v1469_v33  ;;  %v1582_v57 = vsel %vm3266_vm4, %v2298_v42, %v1581_v50  ;;  %v1474_v58 = vrot.slane %v1472_v51, 4  ;;  %v1489_v59 = vshll.u32 %v2272_v44, 16 }
  0xdb   : > { %1865 = vmatmul.mubr.bf16.vlgmr.msra.gmra.mrb[32].mxu0 %v2299_v54  ;;  %v1456_v45 = vsel %vm3272_vm5, %v1451_v32, %v1455_v27  ;;  %v1481_v54 = vshll.u32 %v2279_v8, 16  ;;  %2608 = vmatprep.mubr.bf16.mxu1 %v2309_v49  ;;  %v2310_v62 = vcombine.low %v1578_v52, %v1582_v57  ;;  %v1477_v63 = vrot.slane %v1475_v53, 5 }
  0xdc   : > { %v2304_v61 = vcombine.low %v1456_v45, %v1470_v56  ;;  %v1488_v2 = vrot.slane %v1486_v55, 4  ;;  %v1491_v3 = vrot.slane %v1489_v59, 5  ;;  %v1495_v4 = vshll.u32 %v3503_v11, 16 }
  0xdd   : > { %v1483_v1 = vrot.slane %v1481_v54, 5  ;;  %v1478_v5 = vor.u32 %v1477_v63, %v1474_v58  ;;  %v1500_v6 = vshrl.u32 %v2273_v60, 16  ;;  %v1503_v7 = vshll.u32 %v2273_v60, 16 }
  0xde   : > { %1872 = vmatprep.mubr.bf16.mxu0 %v2304_v61  ;;  %v1492_v8 = vor.u32 %v1491_v3, %v1488_v2  ;;  %v1497_v12 = vrot.slane %v1495_v4, 5  ;;  %v1514_v13 = vshrl.u32 %v2274_v0, 16  ;;  %v1517_v14 = vshll.u32 %v2274_v0, 16 }
  0xdf   : > { %v1479_v15 = vrot.slane %v1478_v5, 4  ;;  %v1502_v9 = vrot.slane %v1500_v6, 4  ;;  %v1505_v16 = vrot.slane %v1503_v7, 5  ;;  %v1523_v11 = vshll.u32 %v3517_v25, 16 }
  0xe0   : > { %v1493_v10 = vrot.slane %v1492_v8, 4  ;;  %v1516_v17 = vrot.slane %v1514_v13, 4  ;;  %v1519_v18 = vrot.slane %v1517_v14, 5  ;;  %v1511_v22 = vrot.slane %v1509_v40, 5 }
  0xe1   : > { %v1484_v19 = vsel %vm3272_vm5, %v1479_v15, %v1483_v1  ;;  %v1506_v21 = vor.u32 %v1505_v16, %v1502_v9  ;;  %v2301_v23 = vcombine.low %v3523_v36, %v2272_v44  ;;  %v1525_v26 = vrot.slane %v1523_v11, 5 }
  0xe2   : > { %2609 = vmatmul.mubr.bf16.gmra.mrb[4].mxu1 %v2310_v62  ;;  %v1498_v20 = vsel %vm3272_vm5, %v1493_v10, %v1497_v12  ;;  %v1520_v24 = vor.u32 %v1519_v18, %v1516_v17  ;;  %v2302_v32 = vcombine.low %v2273_v60, %v2274_v0 }
  0xe3   : > { %1873 = vmatmul.mubr.bf16.gmra.mrb[36].mxu0 %v2300_v39  ;;  %v2305_v27 = vcombine.low %v1484_v19, %v1498_v20  ;;  %v1507_v28 = vrot.slane %v1506_v21, 4 }
  0xe4   : > { %v1521_v29 = vrot.slane %v1520_v24, 4 }
  0xe5   : > { %1880 = vmatprep.mubr.bf16.mxu0 %v2305_v27  ;;  %v1512_v30 = vsel %vm3272_vm5, %v1507_v28, %v1511_v22 }
  0xe6   : > { %v1526_v25 = vsel %vm3272_vm5, %v1521_v29, %v1525_v26 }
  0xe7   : > { %v2306_v31 = vcombine.low %v1512_v30, %v1526_v25 }
  0xeb   : > { %1881 = vmatmul.mubr.bf16.gmra.mrb[40].mxu0 %v2301_v23 }
  0xec   : > { %1888 = vmatprep.mubr.bf16.mxu0 %v2306_v31 }
  0xf3   : > { %1889 = vmatmul.mubr.bf16.gmra.mrb[44].mxu0 %v2302_v32 }
 0x16d   : > { %v2400_v33 = vpop.f32.mrb[0].mxu0 }
 0x16e   : > { %v2401_v34 = vpop.f32.mrb[1].mxu0 }
 0x16f   : > { %v2402_v35 = vadd.f32 %v2401_v34, %v2400_v33  ;;  %v2403_v36 = vpop.f32.mrb[2].mxu0  ;;  %v2343_v33 = vld [vmem:[%s3244_s8] sm:$0xff]  }
 0x170   : > { %v2404_v37 = vpop.f32.mrb[3].mxu0 }
 0x171   : > { %v2405_v38 = vadd.f32 %v2404_v37, %v2403_v36 }
 0x175   : > { %v2406_v39 = vpop.f32.mrb[4].mxu0 }
 0x176   : > { %v2407_v43 = vpop.f32.mrb[5].mxu0 }
 0x177   : > { %v2408_v44 = vadd.f32 %v2407_v43, %v2406_v39  ;;  %v2409_v45 = vpop.f32.mrb[6].mxu0  ;;  %v2345_v43 = vunpack.c.h.bf16 %v2343_v33 }
 0x178   : > { %v2410_v46 = vpop.f32.mrb[7].mxu0 }
 0x179   : > { %v2411_v47 = vadd.f32 %v2410_v46, %v2409_v45 }
 0x17d   : > { %v2412_v42 = vpop.f32.mrb[8].mxu0 }
 0x17e   : > { %v2413_v48 = vpop.f32.mrb[9].mxu0 }
 0x17f   : > { %v2414_v41 = vadd.f32 %v2413_v48, %v2412_v42  ;;  %v2415_v49 = vpop.f32.mrb[10].mxu0 }
 0x180   : > { %v2416_v50 = vpop.f32.mrb[11].mxu0 }
 0x181   : > { %v2417_v51 = vadd.f32 %v2416_v50, %v2415_v49 }
 0x185   : > { %v2418_v52 = vpop.f32.mrb[12].mxu0 }
 0x186   : > { %v2419_v53 = vpop.f32.mrb[13].mxu0 }
 0x187   : > { %v2420_v54 = vadd.f32 %v2419_v53, %v2418_v52  ;;  %v2421_v55 = vpop.f32.mrb[14].mxu0  ;;  %v2378_v53 = vld [vmem:[%s3244_s8 + $0x8] sm:$0xff]  }
 0x188   : > { %v2422_v56 = vpop.f32.mrb[15].mxu0 }
 0x189   : > { %v2423_v57 = vadd.f32 %v2422_v56, %v2421_v55 }
 0x18e   : > { %v2452_v58 = vpop.f32.mrb[16].mxu0 }
 0x18f   : > { %v2453_v59 = vpop.f32.mrb[17].mxu0 }
 0x190   : > { %v2454_v60 = vadd.f32 %v2453_v59, %v2452_v58  ;;  %v2455_v61 = vpop.f32.mrb[18].mxu0  ;;  %v2348_v59 = vunpack.c.l.bf16 %v2378_v53 }
 0x191   : > { %v2456_v62 = vpop.f32.mrb[19].mxu0 }
 0x192   : > { %v2615_v63 = vadd.f32 %v2454_v60, %v2402_v35  ;;  %v2457_v0 = vadd.f32 %v2456_v62, %v2455_v61  ;;  %v2349_v61 = vunpack.c.h.bf16 %v2378_v53 }
 0x194   : > { %v2621_v1 = vadd.f32 %v2457_v0, %v2405_v38  ;;  %v2344_v38 = vunpack.c.l.bf16 %v2343_v33 }
 0x196   : > { %v2458_v2 = vpop.f32.mrb[20].mxu0 }
 0x197   : > { %v2459_v3 = vpop.f32.mrb[21].mxu0 }
 0x198   : > { %v2460_v4 = vadd.f32 %v2459_v3, %v2458_v2  ;;  %v2461_v5 = vpop.f32.mrb[22].mxu0 }
 0x199   : > { %v2462_v6 = vpop.f32.mrb[23].mxu0 }
 0x19a   : > { %v2612_v7 = vadd.f32 %v2460_v4, %v2408_v44  ;;  %v2463_v40 = vadd.f32 %v2462_v6, %v2461_v5  ;;  %v2379_v5 = vld [vmem:[%s3244_s8 + $0x10] sm:$0xff]  }
 0x19c   : > { %v2618_v8 = vadd.f32 %v2463_v40, %v2411_v47 }
 0x19e   : > { %v2464_v12 = vpop.f32.mrb[24].mxu0 }
 0x19f   : > { %v2465_v13 = vpop.f32.mrb[25].mxu0 }
 0x1a0   : > { %v2466_v14 = vadd.f32 %v2465_v13, %v2464_v12  ;;  %v2467_v15 = vpop.f32.mrb[26].mxu0 }
 0x1a1   : > { %v2468_v9 = vpop.f32.mrb[27].mxu0 }
 0x1a2   : > { %v2627_v16 = vadd.f32 %v2466_v14, %v2414_v41  ;;  %v2469_v10 = vadd.f32 %v2468_v9, %v2467_v15  ;;  %v2352_v14 = vunpack.c.l.bf16 %v2379_v5 }
 0x1a4   : > { %v2633_v17 = vadd.f32 %v2469_v10, %v2417_v51 }
 0x1a6   : > { %v2470_v18 = vpop.f32.mrb[28].mxu0 }
 0x1a7   : > { %v2471_v11 = vpop.f32.mrb[29].mxu0 }
 0x1a8   : > { %v2472_v19 = vadd.f32 %v2471_v11, %v2470_v18  ;;  %v2473_v21 = vpop.f32.mrb[30].mxu0 }
 0x1a9   : > { %v2474_v22 = vpop.f32.mrb[31].mxu0 }
 0x1aa   : > { %v3558_v20 = vadd.f32 %v2472_v19, %v2420_v54  ;;  %v2475_v23 = vadd.f32 %v2474_v22, %v2473_v21 }
 0x1ac   : > { %v3560_v24 = vadd.f32 %v2475_v23, %v2423_v57  ;;  %v2380_v23 = vld [vmem:[%s3244_s8 + $0x18] sm:$0xff]  }
 0x1ad   : > { %v2606_v26 = vpop.f32.mrb[0].mxu1 }
 0x1ae   : > { %v1931_v27 = vpop.f32.mrb[1].mxu1  ;;  %v2504_v29 = vpop.f32.mrb[32].mxu0 }
 0x1af   : > { %v2607_v28 = vpop.f32.mrb[2].mxu1  ;;  %v2505_v25 = vpop.f32.mrb[33].mxu0 }
 0x1b0   : > { %v1934_v30 = vpop.f32.mrb[3].mxu1  ;;  %v2506_v31 = vadd.f32 %v2505_v25, %v2504_v29  ;;  %v2507_v32 = vpop.f32.mrb[34].mxu0  ;;  %v2356_v29 = vunpack.c.l.bf16 %v2380_v23  ;;  %v2357_v25 = vunpack.c.h.bf16 %v2380_v23 }
 0x1b1   : > { %v2508_v34 = vpop.f32.mrb[35].mxu0 }
 0x1b2   : > { %v2616_v35 = vadd.f32 %v2615_v63, %v2506_v31  ;;  %v2509_v36 = vadd.f32 %v2508_v34, %v2507_v32 }
 0x1b4   : > { %v2617_v37 = vadd.f32 %v2616_v35, %v1931_v27  ;;  %v2622_v39 = vadd.f32 %v2621_v1, %v2509_v36 }
 0x1b5   : > { %v2610_v44 = vpop.f32.mrb[4].mxu1 }
 0x1b6   : > { %v2623_v45 = vadd.f32 %v2622_v39, %v1934_v30  ;;  %v2510_v46 = vpop.f32.mrb[36].mxu0  ;;  %v1947_v47 = vpop.f32.mrb[5].mxu1  ;;  %v1986_v41 = vadd.f32 %v2617_v37, %v2344_v38 }
 0x1b7   : > { %v2511_v42 = vpop.f32.mrb[37].mxu0  ;;  %v2611_v48 = vpop.f32.mrb[6].mxu1 }
 0x1b8   : > { %v1987_v49 = vadd.f32 %v2623_v45, %v2345_v43  ;;  %v2512_v50 = vadd.f32 %v2511_v42, %v2510_v46  ;;  %v2513_v51 = vpop.f32.mrb[38].mxu0  ;;  %v1950_v52 = vpop.f32.mrb[7].mxu1 }
 0x1b9   : > { %v2514_v54 = vpop.f32.mrb[39].mxu0 }
 0x1ba   : > { %v2361_v55 = vpack.c.bf16 %v1987_v49, %v1986_v41  ;;  %v2613_v56 = vadd.f32 %v2612_v7, %v2512_v50  ;;  %v2515_v57 = vadd.f32 %v2514_v54, %v2513_v51 }
 0x1bc   : > { %2362 = vst [vmem:[%s3566_s29] sm:$0xff] %v2361_v55   ;;  %v2614_v58 = vadd.f32 %v2613_v56, %v2606_v26  ;;  %v2619_v60 = vadd.f32 %v2618_v8, %v2515_v57  ;;  %v2353_v8 = vunpack.c.h.bf16 %v2379_v5 }
 0x1be   : > { %v2620_v62 = vadd.f32 %v2619_v60, %v2607_v28  ;;  %v2516_v63 = vpop.f32.mrb[40].mxu0  ;;  %v1988_v1 = vadd.f32 %v2614_v58, %v2348_v59 }
 0x1bf   : > { %v2517_v0 = vpop.f32.mrb[41].mxu0 }
 0x1c0   : > { %v1989_v2 = vadd.f32 %v2620_v62, %v2349_v61  ;;  %v2518_v3 = vadd.f32 %v2517_v0, %v2516_v63  ;;  %v2519_v4 = vpop.f32.mrb[42].mxu0 }
 0x1c1   : > { %v2520_v6 = vpop.f32.mrb[43].mxu0 }
 0x1c2   : > { %v2366_v7 = vpack.c.bf16 %v1989_v2, %v1988_v1  ;;  %v2628_v40 = vadd.f32 %v2627_v16, %v2518_v3  ;;  %v2521_v12 = vadd.f32 %v2520_v6, %v2519_v4 }
 0x1c4   : > { %2381 = vst [vmem:[%s3566_s29 + $0x8] sm:$0xff] %v2366_v7   ;;  %v2629_v13 = vadd.f32 %v2628_v40, %v1947_v47  ;;  %v2634_v15 = vadd.f32 %v2633_v17, %v2521_v12 }
 0x1c6   : > { %v2635_v9 = vadd.f32 %v2634_v15, %v1950_v52  ;;  %v2522_v10 = vpop.f32.mrb[44].mxu0  ;;  %v1990_v11 = vadd.f32 %v2629_v13, %v2352_v14 }
 0x1c7   : > { %v2523_v18 = vpop.f32.mrb[45].mxu0 }
 0x1c8   : > { %v1991_v19 = vadd.f32 %v2635_v9, %v2353_v8  ;;  %v2524_v21 = vadd.f32 %v2523_v18, %v2522_v10  ;;  %v2525_v22 = vpop.f32.mrb[46].mxu0 }
 0x1c9   : > { %v2526_v26 = vpop.f32.mrb[47].mxu0 }
 0x1ca   : > { %v2371_v27 = vpack.c.bf16 %v1991_v19, %v1990_v11  ;;  %v2625_v16 = vadd.f32 %v3558_v20, %v2524_v21  ;;  %v2527_v28 = vadd.f32 %v2526_v26, %v2525_v22 }
 0x1cc   : > { %2382 = vst [vmem:[%s3566_s29 + $0x10] sm:$0xff] %v2371_v27   ;;  %v2626_v17 = vadd.f32 %v2625_v16, %v2610_v44  ;;  %v2631_v30 = vadd.f32 %v3560_v24, %v2527_v28 }
 0x1ce   : > { %v2632_v31 = vadd.f32 %v2631_v30, %v2611_v48  ;;  %v1992_v32 = vadd.f32 %v2626_v17, %v2356_v29 }
 0x1d0   : > { %v1993_v33 = vadd.f32 %v2632_v31, %v2357_v25 }
 0x1d2   : > { %v2376_v20 = vpack.c.bf16 %v1993_v33, %v1992_v32 }
 0x1d4   : > { %2383 = vst [vmem:[%s3566_s29 + $0x18] sm:$0xff] %v2376_v20  }
 0x1d5   : > { %2922 = shalt.err (!%p2919_p5)
}
 0x1d6   : > { %s2923_s21 = scalar_lea.hbm %s3582_s19, 512  ;;  %s2927_s4 = scalar_lea.hbm %s3635_s3, 1024 }
 0x1d7   : > { %p2924_p12 = scmp.ne.s32.totalorder %s3582_s19, %s2923_s21  ;;  %p2928_p6 = scmp.lt.u32.totalorder %s3582_s19, %s3635_s3 }
 0x1d8   : > { %p2929_p1 = scmp.lt.u32.totalorder %s2927_s4, %s2923_s21  ;;  %p2931_p10 = scmp.lt.u32.totalorder %s2923_s21, %s3582_s19 }
 0x1d9   : > { %p2925_p11 = pnand %p2924_p12, %p3659_p13 }
 0x1da   : > { %p2930_p8 = por %p2929_p1, %p2928_p6 }
 0x1db   : > { %p2926_p9 = pneg %p2925_p11 }
 0x1dc   : > { %p2932_p3 = por %p2931_p10, %p2930_p8 }
 0x1de   : > { %p2933_p7 = pnand %p2932_p3, %p2926_p9 }
 0x1e0   : > { %2936 = shalt.err (!%p2933_p7)
}
 0x1e1   : > { %s3007_s8 = smov 64   ;;  %s3008_s29 = smov 4  }
 0x1e2   : > { %2663 = dma.vmem_to_hbm [thread:$0]  (%p3659_p13), %s3577_s7, 512, %s3582_s19, %s2011_s26, %s3007_s8, %s3007_s8, %s3008_s29  }
 0x1e3 PF: > { %s2040_s10 = sand.u32 1, %s2979_s12   ;;  %p3660_p0 = scmp.ne.s32.totalorder %s3647_s5, 0 }
 0x1e4   : > { %p3661_p4 = scmp.ge.s32.totalorder %s2999_s17, 2  ;;  %s2041_s9 = scalar_lea.sflag [#allocation4], %s2040_s10 }
 0x1e6   : > { %p2677_p2 = pnand %p3661_p4, %p3660_p0 }
 0x1e8   : > { %2974 = dma.done.wait (!%p2677_p2), %s2041_s9, 512  }
 0x1e9   : > { %2976 = vsyncadd (!%p2677_p2), %s2041_s9, 4294966784  ;;  %s20_s17 = sadd.s32 1, %s2999_s17   ;;  %s3662_s12 = smov %s2983_s13 }
 0x1ea   : > { %p17_p5 = scmp.ge.s32.totalorder %s20_s17, 4   ;;  %s3663_s13 = smov %s2987_s14 }
 0x1eb   : > { %s3664_s14 = smov %s3076_s23  ;;  %s3665_s15 = smov %s2995_s16 }
 0x1ec   : > { %s3666_s16 = smov %s3668_s18  ;;  %19 = sbr.rel (!%p17_p5) target bundleno = 9 (0x9), region = 97 }
 0x1f3   :  { %2046 = vsyncpa [#allocation3], 1 }
 0x1f4   :  { %2048 = vsyncpa [#allocation3 + $0x1], 1 }
 0x1f5   :  { %2049 = vsyncpa [#allocation6], 1 }
 0x1f6   :  { %2050 = vsyncpa [#allocation4], 1 }
 0x1f7   :  { %2052 = vsyncpa [#allocation4 + $0x1], 1 }

// kernel: basic_block_forward.4
= control target key start
LH: loop header
LB: loop body
LE: loop exit
PB: predicated region body
PF: predicated region fallthrough
CT: control target
= control target key end

     0   :  { %s4370_s0 = inlined_call_operand.hbm [shape: bf16[2,4,9,9,128], index: 0, kind: input, shape index: {}]   ;;  %s4371_s1 = inlined_call_operand.hbm [shape: bf16[3,384,128], index: 1, kind: input, shape index: {}]   ;;  %s4372_s2 = inlined_call_operand.hbm [shape: f32[1,128], index: 2, kind: input, shape index: {}]   ;;  %s4373_s3 = inlined_call_operand.hbm [shape: f32[1,128], index: 3, kind: input, shape index: {}]   ;;  %s4374_s4 = inlined_call_operand.hbm [shape: bf16[128,128], index: 4, kind: input, shape index: {}]   ;;  %s4375_s5 = inlined_call_operand.hbm [shape: bf16[2,10,10,128], index: 5, kind: output, shape index: {0}]   ;;  %s4376_s6 = inlined_call_operand.hbm [shape: bf16[2,8,8,128], index: 6, kind: output, shape index: {1}]  }
   0x1   :  { %4384 = sst [smem:[#allocation21_spill]] %s4375_s5 }
   0x2   :  { %12 = vsyncpa [#allocation3], 0 }
   0x3   :  { %14 = vsyncpa [#allocation3 + $0x1], 0 }
   0x4   :  { %15 = vsyncpa [#allocation6], 0 }
   0x5   :  { %16 = vsyncpa [#allocation9], 0 }
   0x6   :  { %17 = vsyncpa [#allocation4], 0 }
   0x7   :  { %19 = vsyncpa [#allocation4 + $0x1], 0 }
   0x8   :  { %20 = vsyncpa [#allocation13], 0 }
   0x9   :  { %22 = vsyncpa [#allocation13 + $0x1], 0  ;;  %s3704_s21 = smov 0   ;;  %s3706_s22 = smov 0  }
   0xa   :  { %s3708_s23 = smov 0   ;;  %s3710_s24 = smov 0  }
   0xb   :  { %s3712_s25 = smov 0   ;;  %s3714_s26 = smov 0  }
   0xc LB: > { %4385 = sst [smem:[#allocation19_spill]] %s3635_s21  ;;  %s2566_s27 = sadd.s32 4294967295, %s3655_s26   ;;  %s3655_s26 = sphi %s3714_s26, %s28_s26   ;;  %s3651_s25 = sphi %s3712_s25, %s4415_s25   ;;  %s3647_s24 = sphi %s3710_s24, %s4414_s24   ;;  %s3643_s23 = sphi %s3708_s23, %s4413_s23   ;;  %s3639_s22 = sphi %s3706_s22, %s4412_s22   ;;  %s3635_s21 = sphi %s3704_s21, %s4411_s21  }
   0xd   : > { %s2567_s28 = sadd.s32 4294967294, %s3655_s26   ;;  %p60_p0 = scmp.ne.s32.totalorder %s3639_s22, %s3635_s21 }
   0xe   : > { %p3738_p1 = scmp.eq.s32.totalorder %s2566_s27, 0  ;;  %p3742_p2 = scmp.eq.s32.totalorder %s2566_s27, 1 }
   0xf   : > { %p196_p3 = scmp.eq.s32.totalorder %s2567_s28, 1  ;;  %p2568_p5 = scmp.ge.s32.totalorder %s3655_s26, 1 }
  0x10   : > { %s4386_s29 = scalar_select %p3738_p1, 1, 0 }
  0x11   : > { %s4387_s30 = scalar_select %p3742_p2, 1, 0 }
  0x12   : > { %p3748_p4 = por %p3738_p1, %p60_p0  ;;  %p3753_p6 = por %p196_p3, %p60_p0 }
  0x13   : > { %p231_p7 = scmp.lt.s32.totalorder %s3655_s26, 3  ;;  %s3657_s10 = smov [#allocation5]  }
  0x14   : > { %s4388_s7 = scalar_select %p3748_p4, 1, 0 }
  0x15   : > { %s4389_s8 = scalar_select %p3753_p6, 1, 0 }
  0x16   : > { %p3758_p8 = pnand %p2568_p5, %p231_p7  ;;  %s245_s11 = sshll.u32 %s3657_s10, 4  ;;  %s3762_s11 = int_to_ptr.vmem [resolvable:$true] %s245_s11 }
  0x17   : > { %4390 = sst [smem:[#allocation20_spill]] %s4389_s8  ;;  %s3658_s13 = smov [#allocation8]  }
  0x18   : > { %s4391_s9 = scalar_select %p3758_p8, 1, 0 }
  0x19   : > { %p3192_p9 = pneg %p3758_p8  ;;  %s274_s14 = sshll.u32 %s3658_s13, 4  ;;  %s3773_s14 = int_to_ptr.vmem [resolvable:$true] %s274_s14 }
  0x1a   : > { %s3659_s15 = smov [#allocation7]   ;;  %s3391_s19 = scalar_lea.hbm %s4371_s1, 9216 }
  0x1b   : > { %p3769_p11 = pnand %p3192_p9, %p3738_p1  ;;  %s3775_s16 = sshll.u32 %s3659_s15, 4  ;;  %s262_s16 = int_to_ptr.vmem [resolvable:$true] %s3775_s16 }
  0x1c   : > { %p3392_p12 = scmp.ne.s32.totalorder %s4371_s1, %s3391_s19  ;;  %p3398_p5 = scmp.lt.u32.totalorder %s3391_s19, %s4371_s1 }
  0x1d   : > { %p3785_p13 = pneg %p3769_p11 }
  0x1f   : > { %p3394_p0 = pnand %p3785_p13, %p3392_p12 }
  0x21   : > { %p3395_p3 = pneg %p3394_p0 }
  0x23   : > { %p3400_p7 = pnand %p3398_p5, %p3395_p3 }
  0x25   : > { %3403 = shalt.err (!%p3400_p7)
}
  0x26   : > { %s3404_s15 = scalar_lea.vmem %s3762_s11, 9216  ;;  %p3412_p1 = scmp.lt.s32.totalorder %s3762_s11, %s3762_s11 }
  0x27   : > { %p3405_p9 = scmp.ne.s32.totalorder %s3762_s11, %s3404_s15  ;;  %p3413_p4 = scmp.lt.s32.totalorder %s3404_s15, %s3404_s15 }
  0x29   : > { %p3407_p10 = pnand %p3405_p9, %p3785_p13  ;;  %p3414_p12 = por %p3413_p4, %p3412_p1 }
  0x2b   : > { %p3408_p6 = pneg %p3407_p10 }
  0x2d   : > { %p3415_p0 = pnand %p3414_p12, %p3408_p6 }
  0x2f   : > { %3418 = shalt.err (!%p3415_p0)
}
  0x30   : > { %s3660_s17 = smov 64   ;;  %s3661_s18 = smov 4  }
  0x31   : > { %3195 = dma.hbm_to_vmem [thread:$0]  (!%p3769_p11), %s4371_s1, 9216, %s3762_s11, [#allocation6], %s3660_s17, %s3660_s17, %s3661_s18  }
  0x32   : > { %s3419_s13 = scalar_lea.hbm %s4373_s3, 16 }
  0x33   : > { %p3420_p1 = scmp.ne.s32.totalorder %s4373_s3, %s3419_s13  ;;  %p3426_p10 = scmp.lt.u32.totalorder %s3419_s13, %s4373_s3 }
  0x35   : > { %p3422_p4 = pnand %p3420_p1, %p3785_p13 }
  0x37   : > { %p3423_p6 = pneg %p3422_p4 }
  0x39   : > { %p3428_p3 = pnand %p3426_p10, %p3423_p6 }
  0x3b   : > { %3431 = shalt.err (!%p3428_p3)
}
  0x3c   : > { %s3432_s11 = scalar_lea.vmem %s3773_s14, 16  ;;  %s3439_s8 = scalar_lea.vmem %s3773_s14, 32 }
  0x3d   : > { %p3433_p5 = scmp.ne.s32.totalorder %s3773_s14, %s3432_s11  ;;  %p3440_p12 = scmp.lt.s32.totalorder %s3773_s14, %s3773_s14 }
  0x3e   : > { %p3441_p0 = scmp.lt.s32.totalorder %s3439_s8, %s3432_s11 }
  0x3f   : > { %p3435_p7 = pnand %p3433_p5, %p3785_p13 }
  0x40   : > { %p3442_p1 = por %p3441_p0, %p3440_p12 }
  0x41   : > { %p3436_p9 = pneg %p3435_p7 }
  0x43   : > { %p3443_p4 = pnand %p3442_p1, %p3436_p9 }
  0x45   : > { %3446 = shalt.err (!%p3443_p4)
}
  0x46   : > { %3201 = dma.hbm_to_vmem [thread:$0]  (!%p3769_p11), %s4373_s3, 16, %s3773_s14, [#allocation9]  }
  0x47   : > { %s3447_s27 = scalar_lea.hbm %s4372_s2, 16 }
  0x48   : > { %p3448_p6 = scmp.ne.s32.totalorder %s4372_s2, %s3447_s27  ;;  %p3454_p5 = scmp.lt.u32.totalorder %s3447_s27, %s4372_s2 }
  0x4a   : > { %p3450_p10 = pnand %p3448_p6, %p3785_p13 }
  0x4c   : > { %p3451_p3 = pneg %p3450_p10 }
  0x4e   : > { %p3456_p7 = pnand %p3454_p5, %p3451_p3 }
  0x50   : > { %3459 = shalt.err (!%p3456_p7)
}
  0x51   : > { %s3460_s8 = scalar_lea.vmem %s262_s16, 16  ;;  %s3467_s14 = scalar_lea.vmem %s262_s16, 32 }
  0x52   : > { %p3461_p9 = scmp.ne.s32.totalorder %s262_s16, %s3460_s8  ;;  %p3468_p1 = scmp.lt.s32.totalorder %s262_s16, %s262_s16 }
  0x53   : > { %p3469_p4 = scmp.lt.s32.totalorder %s3467_s14, %s3460_s8 }
  0x54   : > { %p3463_p12 = pnand %p3461_p9, %p3785_p13 }
  0x55   : > { %p3470_p8 = por %p3469_p4, %p3468_p1 }
  0x56   : > { %p3464_p0 = pneg %p3463_p12 }
  0x58   : > { %p3471_p2 = pnand %p3470_p8, %p3464_p0 }
  0x5a   : > { %3474 = shalt.err (!%p3471_p2)
}
  0x5b   : > { %3198 = dma.hbm_to_vmem [thread:$0]  (!%p3769_p11), %s4372_s2, 16, %s262_s16, [#allocation6]  }
  0x5c   : > { %s3662_s19 = smov [#allocation10]   ;;  %s3475_s13 = scalar_lea.hbm %s4374_s4, 1024 }
  0x5d   : > { %s286_s20 = sshll.u32 %s3662_s19, 4  ;;  %p3476_p6 = scmp.ne.s32.totalorder %s4374_s4, %s3475_s13  ;;  %s287_s20 = int_to_ptr.vmem [resolvable:$true] %s286_s20 }
  0x5e   : > { %p3482_p10 = scmp.lt.u32.totalorder %s3475_s13, %s4374_s4 }
  0x5f   : > { %p3478_p2 = pnand %p3476_p6, %p3785_p13 }
  0x61   : > { %p3479_p8 = pneg %p3478_p2 }
  0x63   : > { %p3484_p3 = pnand %p3482_p10, %p3479_p8 }
  0x65   : > { %3487 = shalt.err (!%p3484_p3)
}
  0x66   : > { %s3488_s16 = scalar_lea.vmem %s287_s20, 1024  ;;  %p3496_p12 = scmp.lt.s32.totalorder %s287_s20, %s287_s20 }
  0x67   : > { %p3489_p5 = scmp.ne.s32.totalorder %s287_s20, %s3488_s16  ;;  %p3497_p0 = scmp.lt.s32.totalorder %s3488_s16, %s3488_s16 }
  0x69   : > { %p3491_p7 = pnand %p3489_p5, %p3785_p13  ;;  %p3498_p1 = por %p3497_p0, %p3496_p12 }
  0x6b   : > { %p3492_p9 = pneg %p3491_p7 }
  0x6d   : > { %p3499_p4 = pnand %p3498_p1, %p3492_p9 }
  0x6f   : > { %3502 = shalt.err (!%p3499_p4)
}
  0x70   : > { %3204 = dma.hbm_to_vmem [thread:$0]  (!%p3769_p11), %s4374_s4, 1024, %s287_s20, [#allocation9], %s3660_s17, %s3660_s17, %s3661_s18  }
  0x71   : > { %s37_s28 = sadd.s32 1, %s3651_s25  ;;  %s47_s12 = sadd.s32 1, %s3643_s23 }
  0x72   : > { %p38_p13 = scmp.ge.s32.totalorder %s37_s28, 2  ;;  %p54_p6 = scmp.ne.s32.totalorder %s3643_s23, %s3639_s22 }
  0x73   : > { %p55_p2 = scmp.eq.s32.totalorder %s3655_s26, 0  ;;  %p3220_p8 = scmp.lt.s32.totalorder %s3655_s26, 2 }
  0x74   : > { %s4417_s28 = smov (%p38_p13, %s37_s28), 0  ;;  %p4394_p3 = scmp.ne.s32.totalorder %s4387_s30, 0 }
  0x75   : > { %p56_p10 = por %p55_p2, %p54_p6  ;;  %s44_s27 = ssub.s32 %s3651_s25, %s4417_s28 }
  0x76   : > { %p3883_p5 = por %p4394_p3, %p54_p6  ;;  %s300_s10 = sand.u32 1, %s3643_s23  }
  0x77   : > { %p45_p7 = scmp.eq.s32.totalorder %s44_s27, 0  ;;  %s3165_s20 = smul.u32 288, %s300_s10 }
  0x78   : > { %p3890_p11 = pnand %p3220_p8, %p56_p10  ;;  %s3166_s11 = smul.u32 4608, %s3651_s25 }
  0x79   : > { %s3895_s15 = scalar_select %p45_p7, %s3643_s23, %s47_s12  }
  0x7a   : > { %s304_s8 = scalar_lea.vmem [#allocation2], %s3165_s20  ;;  %s3901_s5 = scalar_lea.hbm %s4370_s0, %s3166_s11 }
  0x7b   : > { %s311_s14 = sshll.u32 %s304_s8, 4  ;;  %s3905_s21 = scalar_lea.sflag [#allocation3], %s300_s10  ;;  %s3903_s14 = int_to_ptr.vmem [resolvable:$true] %s311_s14 }
  0x7c   : > { %s3503_s27 = scalar_lea.hbm %s3901_s5, 4608  ;;  %p3505_p12 = pneg %p3890_p11 }
  0x7d   : > { %p3504_p9 = scmp.ne.s32.totalorder %s3901_s5, %s3503_s27  ;;  %s3508_s11 = scalar_lea.hbm %s4370_s0, 9216 }
  0x7e   : > { %p3509_p4 = scmp.lt.u32.totalorder %s3901_s5, %s4370_s0  ;;  %p3510_p13 = scmp.lt.u32.totalorder %s3508_s11, %s3503_s27 }
  0x7f   : > { %p3506_p0 = pnand %p3505_p12, %p3504_p9  ;;  %p3512_p2 = scmp.lt.u32.totalorder %s3503_s27, %s3901_s5 }
  0x80   : > { %p3511_p6 = por %p3510_p13, %p3509_p4 }
  0x81   : > { %p3507_p1 = pneg %p3506_p0 }
  0x82   : > { %p3513_p8 = por %p3512_p2, %p3511_p6 }
  0x84   : > { %p3514_p10 = pnand %p3513_p8, %p3507_p1 }
  0x86   : > { %3517 = shalt.err (!%p3514_p10)
}
  0x87   : > { %s3518_s10 = scalar_lea.vmem %s3903_s14, 4608  ;;  %s3663_s16 = smov [#allocation2]  }
  0x88   : > { %p3519_p3 = scmp.ne.s32.totalorder %s3903_s14, %s3518_s10  ;;  %s3523_s12 = sshll.u32 %s3663_s16, 4  ;;  %s3524_s12 = int_to_ptr.vmem [resolvable:$false] %s3523_s12 }
  0x89   : > { %s3525_s20 = scalar_lea.vmem %s3524_s12, 9216  ;;  %p3526_p0 = scmp.lt.s32.totalorder %s3903_s14, %s3524_s12 }
  0x8a   : > { %p3521_p7 = pnand %p3519_p3, %p3505_p12  ;;  %p3527_p4 = scmp.lt.s32.totalorder %s3525_s20, %s3518_s10 }
  0x8c   : > { %p3522_p9 = pneg %p3521_p7  ;;  %p3528_p13 = por %p3527_p4, %p3526_p0 }
  0x8e   : > { %p3529_p6 = pnand %p3528_p13, %p3522_p9 }
  0x90   : > { %3532 = shalt.err (!%p3529_p6)
}
  0x91   : > { %3208 = dma.hbm_to_vmem [thread:$0]  (!%p3890_p11), %s3901_s5, 4608, %s3903_s14, %s3905_s21, %s3660_s17, %s3660_s17, %s3661_s18  }
  0x92   : > { %p4397_p12 = scmp.ne.s32.totalorder %s4391_s9, 0 }
  0x93   : > { %s3939_s27 = sand.u32 (!%p4397_p12), 1, %s3639_s22   ;;  %p4398_p1 = scmp.ne.s32.totalorder (!%p4397_p12), %s4388_s7, 0 }
  0x94   : > { %323 = sbr.rel (%p4397_p12) target bundleno = 562 (0x232), region = 40  ;;  %s326_s8 = scalar_lea.sflag (!%p4397_p12), [#allocation3], %s3939_s27 }
  0x95   : > { %s3167_s11 = smul.u32 (!%p4397_p12), 288, %s3939_s27 }
  0x97   : > { %s3943_s30 = scalar_lea.vmem (!%p4397_p12), [#allocation2], %s3167_s11 }
  0x9b   : > { %3614 = dma.done.wait (%p4398_p1), %s326_s8, 4608  }
  0x9c   : > { %3616 = vsyncadd (%p4398_p1), %s326_s8, 4294962688  ;;  %p4399_p11 = scmp.ne.s32.totalorder %s4386_s29, 0 }
  0x9e   : > { %3618 = dma.done.wait (%p4399_p11), [#allocation6], 9232  }
  0x9f   : > { %3620 = vsyncadd (%p4399_p11), [#allocation6], 4294958064 }
  0xa0   : > { %3622 = dma.done.wait (%p4399_p11), [#allocation9], 1040  }
  0xa1   : > { %3624 = vsyncadd (%p4399_p11), [#allocation9], 4294966256  ;;  %v3283_v0 = vld [vmem:[#allocation5 + $0x100] sm:$0xff]   ;;  %v3286_v3 = vld [vmem:[#allocation5 + $0x108] sm:$0xff]   ;;  %vm405_vm0 = vsmask.f32 3328 }
  0xa2   : > { %v3284_v1 = vld [vmem:[#allocation5 + $0x140] sm:$0xff]   ;;  %2845 = vmatprep.subr.bf16.mxu0 %v3283_v0  ;;  %v3287_v4 = vld [vmem:[#allocation5 + $0x148] sm:$0xff]   ;;  %v3289_v6 = vld [vmem:[#allocation5 + $0x110] sm:$0xff]   ;;  %vm406_vm1 = vsmask.f32 7440  ;;  %s3168_s29 = smul.u32 80, %s3939_s27 }
  0xa3   : > { %v3285_v2 = vld [vmem:[#allocation5 + $0xc0] sm:$0xff]   ;;  %3013 = vmatprep.subr.bf16.mxu1 %v3284_v1  ;;  %v3288_v5 = vld [vmem:[#allocation5 + $0xc8] sm:$0xff]   ;;  %v3290_v7 = vld [vmem:[#allocation5 + $0x150] sm:$0xff]   ;;  %vm2135_vm3 = vcmask 1043456   ;;  %vm2136_vm4 = vsmask.f32 7938 }
  0xa4   : > { %2846 = vmatpush3.bf16.msra.mxu0 %v3285_v2  ;;  %3014 = vmatpush3.bf16.msra.mxu1 %v3284_v1  ;;  %v3291_v8 = vld [vmem:[#allocation5 + $0xd0] sm:$0xff]   ;;  %v3292_v9 = vld [vmem:[#allocation5 + $0x118] sm:$0xff]   ;;  %v3295_v12 = vld [vmem:[#allocation5 + $0x120] sm:$0xff]   ;;  %s4134_s7 = scalar_lea.vmem [#allocation11], %s3168_s29  ;;  %vm2141_vm5 = vcmask 1040384   ;;  %s2580_s9 = sshll.u32 %s3939_s27, 5 }
  0xa5   : > { %2847 = vmatprep.subr.bf16.mxu0 %v3286_v3  ;;  %3015 = vmatprep.subr.bf16.mxu1 %v3287_v4  ;;  %v3293_v10 = vld [vmem:[#allocation5 + $0x158] sm:$0xff]   ;;  %v3296_v13 = vld [vmem:[#allocation5 + $0x160] sm:$0xff]   ;;  %v3298_v15 = vld [vmem:[#allocation5 + $0x128] sm:$0xff]   ;;  %vm2142_vm6 = vsmask.f32 256  ;;  %s4229_s17 = scalar_lea.vmem [#allocation12], %s2580_s9 }
  0xa6   : > { %v3294_v11 = vld [vmem:[#allocation5 + $0xd8] sm:$0xff]   ;;  %v3297_v14 = vld [vmem:[#allocation5 + $0xe0] sm:$0xff]   ;;  %v3299_v16 = vld [vmem:[#allocation5 + $0x168] sm:$0xff]   ;;  %s2403_s18 = sshll.u32 %s4229_s17, 4  ;;  %s2821_s13 = sshll.u32 %s3647_s24, 9  ;;  %s4255_s18 = int_to_ptr.vmem [resolvable:$true] %s2403_s18 }
  0xa7   : > { %v3300_v17 = vld [vmem:[#allocation5 + $0xe8] sm:$0xff]   ;;  %v3301_v18 = vld [vmem:[#allocation5 + $0x130] sm:$0xff]   ;;  %v3304_v21 = vld [vmem:[#allocation5 + $0x138] sm:$0xff]   ;;  %s3169_s14 = smul.u32 1280, %s3647_s24  ;;  %s4263_s10 = scalar_lea.hbm %s4376_s6, %s2821_s13 }
  0xa8   : > { %2848 = vmatpush3.bf16.msra.mxu0 %v3288_v5  ;;  %3016 = vmatpush3.bf16.msra.mxu1 %v3287_v4  ;;  %v3302_v19 = vld [vmem:[#allocation5 + $0x170] sm:$0xff]   ;;  %v3305_v22 = vld [vmem:[#allocation5 + $0x178] sm:$0xff]   ;;  %v3309_v37 = vld [vmem:[#allocation5 + $0x40] sm:$0xff]   ;;  %s2386_s16 = sshll.u32 %s4134_s7, 4  ;;  %s2372_s12 = scalar_lea.sflag [#allocation13], %s3939_s27  ;;  %s4306_s16 = int_to_ptr.vmem [resolvable:$true] %s2386_s16 }
  0xa9   : > { %2849 = vmatprep.subr.bf16.mxu0 %v3289_v6  ;;  %3017 = vmatprep.subr.bf16.mxu1 %v3290_v7  ;;  %v3303_v20 = vld [vmem:[#allocation5 + $0xf0] sm:$0xff]   ;;  %v3307_v23 = vld [vmem:[%s3943_s30 + $0xd8] ss:$8 sps:$4 sm:$0xff]   ;;  %v2618_v27 = vld [vmem:[%s3943_s30 + $0x9c] sm:$0x1]  ;;  %s3533_s20 = scalar_lea.vmem %s4255_s18, 512 }
  0xaa   : > { %v2601_v24 = vld [vmem:[%s3943_s30 + $0x90] sm:$0xf]  ;;  %v2602_v25 = vld [vmem:[%s3943_s30 + $0x98] sm:$0xf]  ;;  %v2617_v26 = vld [vmem:[%s3943_s30 + $0x94] sm:$0x1]  ;;  %1059 = vmatprep.mubr.bf16.mxu0 %v3307_v23  ;;  %p3534_p2 = scmp.ne.s32.totalorder %s4255_s18, %s3533_s20 }
  0xab   : > { %v659_v28 = vshrl.u32 %v2601_v24, 16  ;;  %v662_v29 = vshll.u32 %v2601_v24, 16  ;;  %v668_v30 = vshll.u32 %v2617_v26, 16  ;;  %v3306_v31 = vld [vmem:[#allocation5 + $0xf8] sm:$0xff]   ;;  %v673_v32 = vshrl.u32 %v2602_v25, 16  ;;  %v3310_v38 = vld [vmem:[#allocation5 + $0x80] sm:$0xff]   ;;  %vm3966_vm2 = vmor %vm405_vm0, %vm406_vm1 }
  0xac   : > { %2850 = vmatpush3.bf16.msra.mxu0 %v3291_v8  ;;  %3018 = vmatpush3.bf16.msra.mxu1 %v3290_v7  ;;  %v676_v33 = vshll.u32 %v2602_v25, 16  ;;  %v682_v34 = vshll.u32 %v2618_v27, 16  ;;  %v2603_v44 = vld [vmem:[%s3943_s30 + $0xa0] sm:$0xf]  ;;  %v2604_v45 = vld [vmem:[%s3943_s30 + $0xa8] sm:$0xf]  ;;  %v2625_v47 = vcombine.low %v2601_v24, %v2602_v25  ;;  %vm4180_vm7 = vmand %vm2135_vm3, %vm2136_vm4  ;;  %p3535_p8 = pnand %p3534_p2, %p3883_p5 }
  0xad   : > { %2851 = vmatprep.subr.bf16.mxu0 %v3292_v9  ;;  %3019 = vmatprep.subr.bf16.mxu1 %v3293_v10  ;;  %v661_v35 = vrot.slane %v659_v28, 4  ;;  %v664_v36 = vrot.slane %v662_v29, 5  ;;  %v670_v39 = vrot.slane %v668_v30, 5  ;;  %v675_v40 = vrot.slane %v673_v32, 4  ;;  %v3311_v46 = vld [vmem:[#allocation5] sm:$0xff]   ;;  %v3312_v54 = vld [vmem:[#allocation5 + $0x48] sm:$0xff]   ;;  %vm4186_vm8 = vmand %vm2141_vm5, %vm2142_vm6 }
  0xae   : > { %v678_v41 = vrot.slane %v676_v33, 5  ;;  %v684_v42 = vrot.slane %v682_v34, 5  ;;  %v2619_v50 = vld [vmem:[%s3943_s30 + $0xa4] sm:$0x1]  ;;  %v2620_v51 = vld [vmem:[%s3943_s30 + $0xac] sm:$0x1]  ;;  %p3536_p10 = pneg %p3535_p8 }
  0xaf   : > { %v665_v43 = vor.u32 %v664_v36, %v661_v35  ;;  %v687_v52 = vshrl.u32 %v2603_v44, 16  ;;  %v690_v53 = vshll.u32 %v2603_v44, 16  ;;  %v696_v56 = vshll.u32 %v2619_v50, 16  ;;  %v3314_v6 = vld [vmem:[#allocation5 + $0x8] sm:$0xff]   ;;  %v2605_v23 = vld [vmem:[%s3943_s30 + $0xb0] sm:$0xf] }
  0xb0   : > { %2852 = vmatpush3.bf16.msra.mxu0 %v3294_v11  ;;  %3020 = vmatpush3.bf16.msra.mxu1 %v3293_v10  ;;  %v679_v49 = vor.u32 %v678_v41, %v675_v40  ;;  %v701_v57 = vshrl.u32 %v2604_v45, 16  ;;  %v704_v58 = vshll.u32 %v2604_v45, 16  ;;  %v710_v62 = vshll.u32 %v2620_v51, 16  ;;  %v3317_v10 = vld [vmem:[#allocation5 + $0x50] sm:$0xff]   ;;  %v2606_v24 = vld [vmem:[%s3943_s30 + $0xb8] sm:$0xf] }
  0xb1   : > { %2853 = vmatprep.subr.bf16.mxu0 %v3295_v12  ;;  %3021 = vmatprep.subr.bf16.mxu1 %v3296_v13  ;;  %v666_v55 = vrot.slane %v665_v43, 4  ;;  %v689_v60 = vrot.slane %v687_v52, 4  ;;  %v692_v61 = vrot.slane %v690_v53, 5  ;;  %v698_v0 = vrot.slane %v696_v56, 5  ;;  %v3315_v12 = vld [vmem:[%s3943_s30 + $0xe8] ss:$8 sps:$4 sm:$0xff]  }
  0xb2   : > { %v680_v59 = vrot.slane %v679_v49, 4  ;;  %v703_v1 = vrot.slane %v701_v57, 4  ;;  %v706_v2 = vrot.slane %v704_v58, 5  ;;  %v712_v5 = vrot.slane %v710_v62, 5  ;;  %v3325_v30 = vld [vmem:[#allocation5 + $0x60] sm:$0xff]   ;;  %v3330_v40 = vld [vmem:[#allocation5 + $0x28] sm:$0xff]  }
  0xb3   : > { %v671_v63 = vsel %vm3966_vm2, %v666_v55, %v670_v39  ;;  %v693_v4 = vor.u32 %v692_v61, %v689_v60  ;;  %v715_v25 = vshrl.u32 %v2605_v23, 16  ;;  %v718_v26 = vshll.u32 %v2605_v23, 16  ;;  %v3327_v36 = vld [vmem:[#allocation5 + $0x20] sm:$0xff]   ;;  %v3331_v43 = vld [vmem:[%s3943_s30 + $0x108] ss:$8 sps:$4 sm:$0xff]   ;;  %s3665_s11 = smov [#allocation12]  }
  0xb4   : > { %2854 = vmatpush3.bf16.msra.mxu0 %v3297_v14  ;;  %3022 = vmatpush3.bf16.msra.mxu1 %v3296_v13  ;;  %v685_v3 = vsel %vm3966_vm2, %v680_v59, %v684_v42  ;;  %v707_v8 = vor.u32 %v706_v2, %v703_v1  ;;  %v3313_v14 = vld [vmem:[#allocation5 + $0x88] sm:$0xff]   ;;  %v729_v27 = vshrl.u32 %v2606_v24, 16  ;;  %v732_v28 = vshll.u32 %v2606_v24, 16  ;;  %v3326_v39 = vld [vmem:[#allocation5 + $0xa0] sm:$0xff]   ;;  %v2621_v49 = vld [vmem:[%s3943_s30 + $0xb4] sm:$0x1] }
  0xb5   : > { %2855 = vmatprep.subr.bf16.mxu0 %v3298_v15  ;;  %3023 = vmatprep.subr.bf16.mxu1 %v3299_v16  ;;  %v2633_v7 = vcombine.low %v671_v63, %v685_v3  ;;  %v694_v9 = vrot.slane %v693_v4, 4  ;;  %v2626_v15 = vcombine.low %v2603_v44, %v2604_v45  ;;  %v2627_v29 = vcombine.low %v2605_v23, %v2606_v24  ;;  %v2607_v44 = vld [vmem:[%s3943_s30 + $0xc0] sm:$0xf]  ;;  %v2608_v45 = vld [vmem:[%s3943_s30 + $0xc8] sm:$0xf]  ;;  %v3333_v55 = vld [vmem:[#allocation5 + $0x70] sm:$0xff]  }
  0xb6   : > { %v708_v11 = vrot.slane %v707_v8, 4  ;;  %v717_v32 = vrot.slane %v715_v25, 4  ;;  %v720_v33 = vrot.slane %v718_v26, 5  ;;  %v731_v34 = vrot.slane %v729_v27, 4  ;;  %v2622_v53 = vld [vmem:[%s3943_s30 + $0xbc] sm:$0x1] }
  0xb7   : > { %3029 = vmatprep.mubr.bf16.mxu1 %v2633_v7  ;;  %v699_v13 = vsel %vm3966_vm2, %v694_v9, %v698_v0  ;;  %v734_v35 = vrot.slane %v732_v28, 5  ;;  %v757_v50 = vshrl.u32 %v2608_v45, 16  ;;  %v760_v51 = vshll.u32 %v2608_v45, 16  ;;  %v3329_v60 = vld [vmem:[#allocation5 + $0xa8] sm:$0xff]   ;;  %v3335_v2 = vld [vmem:[#allocation5 + $0x30] sm:$0xff]   ;;  %s3537_s8 = sshll.u32 %s3665_s11, 4  ;;  %s3538_s8 = int_to_ptr.vmem [resolvable:$false] %s3537_s8 }
  0xb8   : > { %2856 = vmatpush3.bf16.msra.mxu0 %v3300_v17  ;;  %3024 = vmatpush3.bf16.msra.mxu1 %v3299_v16  ;;  %v713_v16 = vsel %vm3966_vm2, %v708_v11, %v712_v5  ;;  %v3319_v17 = vld [vmem:[#allocation5 + $0x10] sm:$0xff]   ;;  %v2628_v52 = vcombine.low %v2607_v44, %v2608_v45  ;;  %v738_v59 = vshll.u32 %v2622_v53, 16  ;;  %v2623_v4 = vld [vmem:[%s3943_s30 + $0xc4] sm:$0x1]  ;;  %v2624_v5 = vld [vmem:[%s3943_s30 + $0xcc] sm:$0x1]  ;;  %p3540_p3 = scmp.lt.s32.totalorder %s4255_s18, %s3538_s8 }
  0xb9   : > { %2857 = vmatprep.subr.bf16.mxu0 %v3301_v18  ;;  %3025 = vmatprep.subr.bf16.mxu1 %v3302_v19  ;;  %v2634_v18 = vcombine.low %v699_v13, %v713_v16  ;;  %v735_v42 = vor.u32 %v734_v35, %v731_v34  ;;  %v759_v61 = vrot.slane %v757_v50, 4  ;;  %v762_v62 = vrot.slane %v760_v51, 5  ;;  %v3336_v11 = vld [vmem:[#allocation5 + $0x78] sm:$0xff]   ;;  %v3334_v13 = vld [vmem:[#allocation5 + $0xb0] sm:$0xff]   ;;  %v380_v23 = vld [vmem:[%s3943_s30] sm:$0xf] }
  0xba   : > { %v740_v0 = vrot.slane %v738_v59, 5  ;;  %v752_v9 = vshll.u32 %v2623_v4, 16  ;;  %v381_v24 = vld [vmem:[%s3943_s30 + $0x8] sm:$0xf]  ;;  %v397_v25 = vld [vmem:[%s3943_s30 + $0x4] sm:$0x1] }
  0xbb   : > { %v736_v58 = vrot.slane %v735_v42, 4  ;;  %v2589_v26 = vcombine.low %v380_v23, %v381_v24  ;;  %v398_v27 = vld [vmem:[%s3943_s30 + $0xc] sm:$0x1]  ;;  %v409_v28 = vshrl.u32 %v380_v23, 16  ;;  %v4004_v35 = vld [vmem:[#allocation5 + $0x200] sm:$0xff]  }
  0xbc   : > { %2858 = vmatpush3.bf16.msra.mxu0 %v3303_v20  ;;  %3026 = vmatpush3.bf16.msra.mxu1 %v3302_v19  ;;  %v3320_v19 = vld [vmem:[#allocation5 + $0x58] sm:$0xff]   ;;  %v3318_v20 = vld [vmem:[#allocation5 + $0x90] sm:$0xff]   ;;  %v432_v34 = vshll.u32 %v398_v27, 16  ;;  %v3346_v4 = vld [vmem:[#allocation5 + $0x188] sm:$0xff]  }
  0xbd   : > { %2859 = vmatprep.subr.bf16.mxu0 %v3304_v21  ;;  %3027 = vmatprep.subr.bf16.mxu1 %v3305_v22  ;;  %v3322_v21 = vld [vmem:[#allocation5 + $0x18] sm:$0xff]   ;;  %v741_v7 = vsel %vm3966_vm2, %v736_v58, %v740_v0  ;;  %v382_v45 = vld [vmem:[%s3943_s30 + $0x10] sm:$0xf] }
  0xbe   : > { %v434_v42 = vrot.slane %v432_v34, 5  ;;  %v400_v50 = vld [vmem:[%s3943_s30 + $0x1c] sm:$0x1]  ;;  %v437_v51 = vshrl.u32 %v382_v45, 16  ;;  %v3359_v34 = vld [vmem:[#allocation5 + $0x1a0] sm:$0xff]  }
  0xbf   : > { %v3389_v48 = vld [vmem:[%s3943_s30 + $0xe8] ss:$8 sps:$4 sm:$0xff]  }
  0xc0   : > { %2860 = vmatpush3.bf16.msra.mxu0 %v3306_v31  ;;  %3028 = vmatpush3.bf16.msra.mxu1 %v3305_v22  ;;  %v3323_v22 = vld [vmem:[%s3943_s30 + $0xf8] ss:$8 sps:$4 sm:$0xff]   ;;  %v439_v58 = vrot.slane %v437_v51, 4 }
  0xc1   : > { %2897 = vmatprep.subr.bf16.mxu0 %v3309_v37  ;;  %3037 = vmatprep.subr.bf16.mxu1 %v3310_v38  ;;  %v3321_v31 = vld [vmem:[#allocation5 + $0x98] sm:$0xff]   ;;  %v3328_v37 = vld [vmem:[#allocation5 + $0x68] sm:$0xff]  }
  0xc3   : > { %1060 = vmatmul.mubr.bf16.vlgmr.msra.gmra.mrb[0].mxu0 %v2625_v47  ;;  %3030 = vmatmul.mubr.bf16.vlgmr.msra.gmra.mrb[0].mxu1 %v2634_v18  ;;  %v746_v47 = vshll.u32 %v2607_v44, 16  ;;  %v3338_v18 = vld [vmem:[#allocation5 + $0x38] sm:$0xff]  }
  0xc4   : > { %2898 = vmatpush3.bf16.msra.mxu0 %v3311_v46  ;;  %1067 = vmatprep.mubr.bf16.mxu0 %v3315_v12  ;;  %v743_v46 = vshrl.u32 %v2607_v44, 16 }
  0xc5   : > { %2899 = vmatprep.subr.bf16.mxu0 %v3312_v54  ;;  %3038 = vmatpush3.bf16.msra.mxu1 %v3310_v38  ;;  %v721_v38 = vor.u32 %v720_v33, %v717_v32  ;;  %v724_v54 = vshll.u32 %v2621_v49, 16  ;;  %v748_v57 = vrot.slane %v746_v47, 5  ;;  %v423_v32 = vshrl.u32 %v381_v24, 16  ;;  %v399_v49 = vld [vmem:[%s3943_s30 + $0x14] sm:$0x1] }
  0xc6   : > { %3039 = vmatprep.subr.bf16.mxu1 %v3313_v14  ;;  %v745_v56 = vrot.slane %v743_v46, 4  ;;  %v426_v33 = vshll.u32 %v381_v24, 16  ;;  %v383_v46 = vld [vmem:[%s3943_s30 + $0x18] sm:$0xf] }
  0xc7   : > { %v722_v41 = vrot.slane %v721_v38, 4  ;;  %v726_v63 = vrot.slane %v724_v54, 5  ;;  %v446_v54 = vshll.u32 %v399_v49, 16  ;;  %v387_v49 = vld [vmem:[%s3943_s30 + $0x38] sm:$0xf] }
  0xc8   : > { %2900 = vmatpush3.bf16.msra.mxu0 %v3314_v6  ;;  %v749_v1 = vor.u32 %v748_v57, %v745_v56  ;;  %v763_v6 = vor.u32 %v762_v62, %v759_v61  ;;  %v454_v56 = vshll.u32 %v383_v46, 16 }
  0xc9   : > { %2901 = vmatprep.subr.bf16.mxu0 %v3317_v10  ;;  %3040 = vmatpush3.bf16.msra.mxu1 %v3313_v14  ;;  %v727_v3 = vsel %vm3966_vm2, %v722_v41, %v726_v63  ;;  %v766_v10 = vshll.u32 %v2624_v5, 16  ;;  %v428_v41 = vrot.slane %v426_v33, 5  ;;  %v448_v62 = vrot.slane %v446_v54, 5 }
  0xca   : > { %3041 = vmatprep.subr.bf16.mxu1 %v3318_v20  ;;  %v750_v8 = vrot.slane %v749_v1, 4  ;;  %v2635_v12 = vcombine.low %v727_v3, %v741_v7  ;;  %v764_v14 = vrot.slane %v763_v6, 4  ;;  %v456_v0 = vrot.slane %v454_v56, 5 }
  0xcb   : > { %1068 = vmatmul.mubr.bf16.gmra.mrb[4].mxu0 %v2626_v15  ;;  %v754_v15 = vrot.slane %v752_v9, 5  ;;  %v768_v16 = vrot.slane %v766_v10, 5  ;;  %v3349_v9 = vld [vmem:[#allocation5 + $0x1d0] sm:$0xff]   ;;  %v510_v56 = vshll.u32 %v387_v49, 16 }
  0xcc   : > { %2902 = vmatpush3.bf16.msra.mxu0 %v3319_v17  ;;  %1075 = vmatprep.mubr.bf16.mxu0 %v3323_v22  ;;  %v3337_v17 = vld [vmem:[#allocation5 + $0xb8] sm:$0xff]  }
  0xcd   : > { %2903 = vmatprep.subr.bf16.mxu0 %v3320_v19  ;;  %3042 = vmatpush3.bf16.msra.mxu1 %v3318_v20  ;;  %v755_v19 = vsel %vm3966_vm2, %v750_v8, %v754_v15  ;;  %v769_v20 = vsel %vm3966_vm2, %v764_v14, %v768_v16  ;;  %v2590_v8 = vcombine.low %v382_v45, %v383_v46  ;;  %v3351_v15 = vld [vmem:[#allocation5 + $0x190] sm:$0xff]  }
  0xce   : > { %3043 = vmatprep.subr.bf16.mxu1 %v3321_v31  ;;  %3033 = vmatprep.mubr.bf16.mxu1 %v2635_v12  ;;  %v2636_v22 = vcombine.low %v755_v19, %v769_v20  ;;  %v3354_v19 = vld [vmem:[#allocation5 + $0x198] sm:$0xff]   ;;  %v3355_v20 = vld [vmem:[%s3943_s30 + $0x68] ss:$8 sps:$4 sm:$0xff]  }
  0xd0   : > { %2904 = vmatpush3.bf16.msra.mxu0 %v3322_v21  ;;  %v3339_v21 = vld [vmem:[%s3943_s30 + $0x48] ss:$8 sps:$4 sm:$0xff]   ;;  %3034 = vmatmul.mubr.bf16.gmra.mrb[4].mxu1 %v2636_v22 }
  0xd1   : > { %2905 = vmatprep.subr.bf16.mxu0 %v3325_v30  ;;  %3044 = vmatpush3.bf16.msra.mxu1 %v3321_v31  ;;  %v418_v30 = vshll.u32 %v397_v25, 16  ;;  %v3341_v31 = vld [vmem:[#allocation5 + $0x1c0] sm:$0xff]   ;;  %v385_v22 = vld [vmem:[%s3943_s30 + $0x28] sm:$0xf] }
  0xd2   : > { %3045 = vmatprep.subr.bf16.mxu1 %v3326_v39  ;;  %v479_v25 = vshrl.u32 %v385_v22, 16 }
  0xd3   : > { %1076 = vmatmul.mubr.bf16.gmra.mrb[8].mxu0 %v2627_v29  ;;  %v412_v29 = vshll.u32 %v380_v23, 16  ;;  %v420_v38 = vrot.slane %v418_v30, 5 }
  0xd4   : > { %2906 = vmatpush3.bf16.msra.mxu0 %v3327_v36  ;;  %1083 = vmatprep.mubr.bf16.mxu0 %v3331_v43  ;;  %v411_v36 = vrot.slane %v409_v28, 4  ;;  %v3344_v43 = vld [vmem:[#allocation5 + $0x1c8] sm:$0xff]   ;;  %v3357_v28 = vld [vmem:[#allocation5 + $0x1e0] sm:$0xff]  }
  0xd5   : > { %2907 = vmatprep.subr.bf16.mxu0 %v3328_v37  ;;  %3046 = vmatpush3.bf16.msra.mxu1 %v3326_v39  ;;  %v414_v37 = vrot.slane %v412_v29, 5  ;;  %v3343_v39 = vld [vmem:[#allocation5 + $0x180] sm:$0xff]   ;;  %v3353_v29 = vld [vmem:[#allocation5 + $0x218] sm:$0xff]  }
  0xd6   : > { %3047 = vmatprep.subr.bf16.mxu1 %v3329_v60 }
  0xd7   : > { %v415_v44 = vor.u32 %v414_v37, %v411_v36 }
  0xd8   : > { %2908 = vmatpush3.bf16.msra.mxu0 %v3330_v40  ;;  %v425_v40 = vrot.slane %v423_v32, 4  ;;  %v481_v32 = vrot.slane %v479_v25, 4  ;;  %v2702_v25 = vld [vmem:[%s3943_s30 + $0x14] sm:$0x1] }
  0xd9   : > { %2909 = vmatprep.subr.bf16.mxu0 %v3333_v55  ;;  %3048 = vmatpush3.bf16.msra.mxu1 %v3329_v60  ;;  %v416_v53 = vrot.slane %v415_v44, 4  ;;  %v451_v55 = vshrl.u32 %v383_v46, 16  ;;  %v460_v60 = vshll.u32 %v400_v50, 16  ;;  %v386_v46 = vld [vmem:[%s3943_s30 + $0x30] sm:$0xf] }
  0xda   : > { %3049 = vmatprep.subr.bf16.mxu1 %v3334_v13  ;;  %v429_v47 = vor.u32 %v428_v41, %v425_v40  ;;  %v3363_v41 = vld [vmem:[%s3943_s30 + $0x78] ss:$8 sps:$4 sm:$0xff]   ;;  %v493_v50 = vshrl.u32 %v386_v46, 16  ;;  %v496_v51 = vshll.u32 %v386_v46, 16 }
  0xdb   : > { %1084 = vmatmul.mubr.bf16.gmra.mrb[12].mxu0 %v2628_v52  ;;  %v440_v52 = vshll.u32 %v382_v45, 16  ;;  %v421_v61 = vsel %vm3966_vm2, %v416_v53, %v420_v38  ;;  %v453_v63 = vrot.slane %v451_v55, 4  ;;  %v462_v3 = vrot.slane %v460_v60, 5  ;;  %v3358_v38 = vld [vmem:[#allocation5 + $0x220] sm:$0xff]   ;;  %v3361_v53 = vld [vmem:[#allocation5 + $0x228] sm:$0xff]  }
  0xdc   : > { %2910 = vmatpush3.bf16.msra.mxu0 %v3335_v2  ;;  %1333 = vmatprep.mubr.bf16.mxu0 %v3339_v21  ;;  %v430_v57 = vrot.slane %v429_v47, 4  ;;  %v384_v21 = vld [vmem:[%s3943_s30 + $0x20] sm:$0xf]  ;;  %v507_v55 = vshrl.u32 %v387_v49, 16  ;;  %v495_v60 = vrot.slane %v493_v50, 4  ;;  %v4060_v50 = vld [vmem:[#allocation10 + $0x8] sm:$0xff]  }
  0xdd   : > { %2911 = vmatprep.subr.bf16.mxu0 %v3336_v11  ;;  %3050 = vmatpush3.bf16.msra.mxu1 %v3334_v13  ;;  %v442_v59 = vrot.slane %v440_v52, 5  ;;  %v457_v6 = vor.u32 %v456_v0, %v453_v63  ;;  %v3347_v11 = vld [vmem:[%s3943_s30 + $0x58] ss:$8 sps:$4 sm:$0xff]   ;;  %v3345_v13 = vld [vmem:[#allocation5 + $0x208] sm:$0xff]   ;;  %v465_v23 = vshrl.u32 %v384_v21, 16  ;;  %v468_v24 = vshll.u32 %v384_v21, 16 }
  0xde   : > { %3051 = vmatprep.subr.bf16.mxu1 %v3337_v17  ;;  %v435_v1 = vsel %vm3966_vm2, %v430_v57, %v434_v42  ;;  %v2591_v27 = vcombine.low %v384_v21, %v385_v22  ;;  %v401_v42 = vld [vmem:[%s3943_s30 + $0x24] sm:$0x1]  ;;  %v3365_v52 = vld [vmem:[#allocation5 + $0x1f0] sm:$0xff]   ;;  %v2592_v57 = vcombine.low %v386_v46, %v387_v49 }
  0xdf   : > { %v443_v2 = vor.u32 %v442_v59, %v439_v58  ;;  %v2597_v5 = vcombine.low %v421_v61, %v435_v1  ;;  %v458_v10 = vrot.slane %v457_v6, 4  ;;  %v467_v30 = vrot.slane %v465_v23, 4  ;;  %v403_v58 = vld [vmem:[%s3943_s30 + $0x34] sm:$0x1]  ;;  %v2686_v23 = vld [vmem:[%s3943_s30 + $0x10] sm:$0xf] }
  0xe0   : > { %2912 = vmatpush3.bf16.msra.mxu0 %v3338_v18  ;;  %v3350_v18 = vld [vmem:[#allocation5 + $0x210] sm:$0xff]   ;;  %v474_v44 = vshll.u32 %v401_v42, 16  ;;  %v498_v61 = vrot.slane %v496_v51, 5  ;;  %v502_v63 = vshll.u32 %v403_v58, 16  ;;  %v509_v1 = vrot.slane %v507_v55, 4 }
  0xe1   : > { %2949 = vmatprep.subr.bf16.mxu0 %v3341_v31  ;;  %3052 = vmatpush3.bf16.msra.mxu1 %v3337_v17  ;;  %v444_v7 = vrot.slane %v443_v2, 4  ;;  %v463_v14 = vsel %vm3966_vm2, %v458_v10, %v462_v3  ;;  %v3352_v17 = vld [vmem:[#allocation5 + $0x1d8] sm:$0xff]   ;;  %v470_v31 = vrot.slane %v468_v24, 5  ;;  %v512_v2 = vrot.slane %v510_v56, 5  ;;  %v2701_v24 = vld [vmem:[%s3943_s30 + $0xc] sm:$0x1] }
  0xe2   : > { %3061 = vmatprep.subr.bf16.mxu1 %v4004_v35  ;;  %3053 = vmatprep.mubr.bf16.mxu1 %v2597_v5  ;;  %v476_v54 = vrot.slane %v474_v44, 5  ;;  %v499_v6 = vor.u32 %v498_v61, %v495_v60  ;;  %v2704_v42 = vld [vmem:[%s3943_s30 + $0x24] sm:$0x1]  ;;  %v4062_v55 = vld [vmem:[#allocation10 + $0x10] sm:$0xff]   ;;  %v3373_v60 = vld [vmem:[%s3943_s30 + $0x60] ss:$8 sps:$4 sm:$0xff]  }
  0xe3   : > { %1334 = vmatmul.mubr.bf16.vlgmr.msra.gmra.mrb[16].mxu0 %v2589_v26  ;;  %v449_v12 = vsel %vm3966_vm2, %v444_v7, %v448_v62  ;;  %v482_v26 = vshll.u32 %v385_v22, 16  ;;  %v471_v36 = vor.u32 %v470_v31, %v467_v30  ;;  %v404_v62 = vld [vmem:[%s3943_s30 + $0x3c] sm:$0x1]  ;;  %v504_v7 = vrot.slane %v502_v63, 5  ;;  %v2685_v22 = vld [vmem:[%s3943_s30 + $0x8] sm:$0xf] }
  0xe4   : > { %2950 = vmatpush3.bf16.msra.mxu0 %v3343_v39  ;;  %1341 = vmatprep.mubr.bf16.mxu0 %v3347_v11  ;;  %v2598_v16 = vcombine.low %v449_v12, %v463_v14  ;;  %v3362_v39 = vld [vmem:[#allocation5 + $0x1a8] sm:$0xff]   ;;  %v516_v3 = vshll.u32 %v404_v62, 16  ;;  %v513_v10 = vor.u32 %v512_v2, %v509_v1  ;;  %v3366_v12 = vld [vmem:[#allocation5 + $0x230] sm:$0xff]   ;;  %v3370_v14 = vld [vmem:[#allocation5 + $0x1b8] sm:$0xff]   ;;  %v1475_v30 = vshll.u32 %v2686_v23, 16 }
  0xe5   : > { %2951 = vmatprep.subr.bf16.mxu0 %v3344_v43  ;;  %v484_v33 = vrot.slane %v482_v26, 5  ;;  %v472_v40 = vrot.slane %v471_v36, 4  ;;  %v402_v43 = vld [vmem:[%s3943_s30 + $0x2c] sm:$0x1]  ;;  %v1458_v26 = vshrl.u32 %v2685_v22, 16  ;;  %v1481_v31 = vshll.u32 %v2702_v25, 16 }
  0xe6   : > { %3054 = vmatmul.mubr.bf16.vlgmr.msra.gmra.mrb[0].mxu1 %v2598_v16  ;;  %v488_v47 = vshll.u32 %v402_v43, 16  ;;  %v518_v11 = vrot.slane %v516_v3, 5  ;;  %v4035_v16 = vld [vmem:[#allocation10] sm:$0xff]   ;;  %v4070_v1 = vld [vmem:[%s3943_s30 + $0x30] sm:$0xf] }
  0xe7   : > { %3062 = vmatpush3.bf16.msra.mxu1 %v4004_v35  ;;  %v3360_v35 = vld [vmem:[#allocation5 + $0x1e8] sm:$0xff]   ;;  %v485_v37 = vor.u32 %v484_v33, %v481_v32  ;;  %v477_v0 = vsel %vm3966_vm2, %v472_v40, %v476_v54  ;;  %v2709_v32 = vcombine.low %v2685_v22, %v2686_v23  ;;  %v4048_v33 = vld [vmem:[%s3943_s30 + $0x18] sm:$0xf]  ;;  %v1477_v40 = vrot.slane %v1475_v30, 5  ;;  %v2707_v25 = vld [vmem:[%s3943_s30 + $0x3c] sm:$0x1] }
  0xe8   : > { %2952 = vmatpush3.bf16.msra.mxu0 %v3346_v4  ;;  %3063 = vmatprep.subr.bf16.mxu1 %v3345_v13  ;;  %v490_v59 = vrot.slane %v488_v47, 5  ;;  %v3367_v4 = vld [vmem:[#allocation5 + $0x1b0] sm:$0xff]   ;;  %v1486_v43 = vshrl.u32 %v4048_v33, 16  ;;  %v1489_v44 = vshll.u32 %v4048_v33, 16  ;;  %v1509_v54 = vshll.u32 %v2704_v42, 16 }
  0xe9   : > { %2953 = vmatprep.subr.bf16.mxu0 %v3349_v9  ;;  %v486_v45 = vrot.slane %v485_v37, 4 }
  0xea   : > { %v1511_v63 = vrot.slane %v1509_v54, 5  ;;  %v3384_v54 = vld [vmem:[#allocation10 + $0x28] sm:$0xff]  }
  0xeb   : > { %1342 = vmatmul.mubr.bf16.gmra.mrb[20].mxu0 %v2590_v8  ;;  %3064 = vmatpush3.bf16.msra.mxu1 %v3345_v13  ;;  %v491_v5 = vsel %vm3966_vm2, %v486_v45, %v490_v59  ;;  %v3368_v8 = vld [vmem:[#allocation5 + $0x1f8] sm:$0xff]   ;;  %v500_v13 = vrot.slane %v499_v6, 4  ;;  %v2706_v6 = vld [vmem:[%s3943_s30 + $0x34] sm:$0x1] }
  0xec   : > { %2954 = vmatpush3.bf16.msra.mxu0 %v3351_v15  ;;  %1349 = vmatprep.mubr.bf16.mxu0 %v3355_v20  ;;  %v2599_v9 = vcombine.low %v477_v0, %v491_v5  ;;  %v514_v15 = vrot.slane %v513_v10, 4  ;;  %v3371_v20 = vld [vmem:[%s3943_s30 + $0x50] ss:$8 sps:$4 sm:$0xff]   ;;  %v4067_v0 = vld [vmem:[%s3943_s30 + $0x28] sm:$0xf] }
  0xed   : > { %2955 = vmatprep.subr.bf16.mxu0 %v3352_v17  ;;  %3065 = vmatprep.subr.bf16.mxu1 %v3350_v18  ;;  %v505_v17 = vsel %vm3966_vm2, %v500_v13, %v504_v7  ;;  %v2705_v5 = vld [vmem:[%s3943_s30 + $0x2c] sm:$0x1]  ;;  %v1514_v7 = vshrl.u32 %v4067_v0, 16  ;;  %v4086_v13 = vld [vmem:[%s3943_s30 + $0x38] sm:$0xf] }
  0xee   : > { %3057 = vmatprep.mubr.bf16.mxu1 %v2599_v9  ;;  %v1542_v30 = vshrl.u32 %v4086_v13, 16 }
  0xef   : > { %3066 = vmatpush3.bf16.msra.mxu1 %v3350_v18  ;;  %v3369_v18 = vld [vmem:[#allocation5 + $0x238] sm:$0xff]  }
  0xf0   : > { %2956 = vmatpush3.bf16.msra.mxu0 %v3354_v19  ;;  %3067 = vmatprep.subr.bf16.mxu1 %v3353_v29  ;;  %v519_v19 = vsel %vm3966_vm2, %v514_v15, %v518_v11  ;;  %v1523_v11 = vshll.u32 %v2705_v5, 16  ;;  %v3664_v5 = vmov 0  }
  0xf1   : > { %2957 = vmatprep.subr.bf16.mxu0 %v3357_v28  ;;  %v2600_v21 = vcombine.low %v505_v17, %v519_v19  ;;  %v1467_v28 = vshll.u32 %v2701_v24, 16  ;;  %v1531_v24 = vshll.u32 %v4070_v1, 16  ;;  %2012 = vst [vmem:[%s4134_s7 + $0x8] sm:$0xf] %v3664_v5  ;;  %2013 = vst [vmem:[%s4134_s7 + $0xc] sm:$0x1] %v3664_v5 }
  0xf2   : > { %2010 = vst [vmem:[%s4134_s7] sm:$0xf] %v3664_v5  ;;  %2011 = vst [vmem:[%s4134_s7 + $0x4] sm:$0x1] %v3664_v5 }
  0xf3   : > { %1350 = vmatmul.mubr.bf16.gmra.mrb[24].mxu0 %v2591_v27  ;;  %3068 = vmatpush3.bf16.msra.mxu1 %v3353_v29  ;;  %v1461_v27 = vshll.u32 %v2685_v22, 16  ;;  %v1472_v29 = vshrl.u32 %v2686_v23, 16  ;;  %v1469_v37 = vrot.slane %v1467_v28, 5  ;;  %v1525_v22 = vrot.slane %v1523_v11, 5  ;;  %2014 = vst [vmem:[%s4134_s7 + $0x10] sm:$0xf] %v3664_v5 }
  0xf4   : > { %2958 = vmatpush3.bf16.msra.mxu0 %v3359_v34  ;;  %1357 = vmatprep.mubr.bf16.mxu0 %v3363_v41  ;;  %v4051_v34 = vld [vmem:[%s3943_s30 + $0x20] sm:$0xf]  ;;  %v1483_v41 = vrot.slane %v1481_v31, 5  ;;  %v1537_v28 = vshll.u32 %v2706_v6, 16  ;;  %2015 = vst [vmem:[%s4134_s7 + $0x14] sm:$0x1] %v3664_v5 }
  0xf5   : > { %2959 = vmatprep.subr.bf16.mxu0 %v3360_v35  ;;  %3069 = vmatprep.subr.bf16.mxu1 %v3358_v38  ;;  %v1460_v35 = vrot.slane %v1458_v26, 4  ;;  %v1463_v36 = vrot.slane %v1461_v27, 5  ;;  %v1500_v47 = vshrl.u32 %v4051_v34, 16  ;;  %v1503_v49 = vshll.u32 %v4051_v34, 16  ;;  %2016 = vst [vmem:[%s4134_s7 + $0x18] sm:$0xf] %v3664_v5 }
  0xf6   : > { %3058 = vmatmul.mubr.bf16.gmra.mrb[4].mxu1 %v2600_v21  ;;  %v2710_v2 = vcombine.low %v4048_v33, %v4051_v34  ;;  %v1545_v33 = vshll.u32 %v4086_v13, 16  ;;  %v1551_v34 = vshll.u32 %v2707_v25, 16  ;;  %2017 = vst [vmem:[%s4134_s7 + $0x1c] sm:$0x1] %v3664_v5  ;;  %2018 = vst [vmem:[%s4134_s7 + $0x20] sm:$0xf] %v3664_v5 }
  0xf7   : > { %3070 = vmatpush3.bf16.msra.mxu1 %v3358_v38  ;;  %v1474_v38 = vrot.slane %v1472_v29, 4  ;;  %v1464_v45 = vor.u32 %v1463_v36, %v1460_v35  ;;  %v1502_v58 = vrot.slane %v1500_v47, 4  ;;  %v1505_v59 = vrot.slane %v1503_v49, 5  ;;  %v2708_v29 = vld [vmem:[%s3943_s30 + $0x44] sm:$0x1] }
  0xf8   : > { %2960 = vmatpush3.bf16.msra.mxu0 %v3362_v39  ;;  %3071 = vmatprep.subr.bf16.mxu1 %v3361_v53  ;;  %v2703_v39 = vld [vmem:[%s3943_s30 + $0x1c] sm:$0x1]  ;;  %v3383_v35 = vld [vmem:[#allocation10 + $0x20] sm:$0xff]   ;;  %v1553_v42 = vrot.slane %v1551_v34, 5  ;;  %2019 = vst [vmem:[%s4134_s7 + $0x24] sm:$0x1] %v3664_v5 }
  0xf9   : > { %2961 = vmatprep.subr.bf16.mxu0 %v3365_v52  ;;  %v1495_v46 = vshll.u32 %v2703_v39, 16  ;;  %v1478_v51 = vor.u32 %v1477_v40, %v1474_v38  ;;  %v1488_v52 = vrot.slane %v1486_v43, 4  ;;  %v1465_v56 = vrot.slane %v1464_v45, 4  ;;  %2020 = vst [vmem:[%s4134_s7 + $0x28] sm:$0xf] %v3664_v5 }
  0xfa   : > { %v1544_v38 = vrot.slane %v1542_v30, 4  ;;  %v1565_v45 = vshll.u32 %v2708_v29, 16  ;;  %2021 = vst [vmem:[%s4134_s7 + $0x2c] sm:$0x1] %v3664_v5  ;;  %2022 = vst [vmem:[%s4134_s7 + $0x30] sm:$0xf] %v3664_v5 }
  0xfb   : > { %1358 = vmatmul.mubr.bf16.gmra.mrb[28].mxu0 %v2592_v57  ;;  %3072 = vmatpush3.bf16.msra.mxu1 %v3361_v53  ;;  %v1491_v53 = vrot.slane %v1489_v44, 5  ;;  %v1497_v57 = vrot.slane %v1495_v46, 5  ;;  %v1479_v61 = vrot.slane %v1478_v51, 4  ;;  %v1470_v3 = vsel %vm3966_vm2, %v1465_v56, %v1469_v37  ;;  %2023 = vst [vmem:[%s4134_s7 + $0x34] sm:$0x1] %v3664_v5 }
  0xfc   : > { %2962 = vmatpush3.bf16.msra.mxu0 %v3367_v4  ;;  %3073 = vmatprep.subr.bf16.mxu1 %v3366_v12  ;;  %v1506_v4 = vor.u32 %v1505_v59, %v1502_v58  ;;  %v1539_v37 = vrot.slane %v1537_v28, 5  ;;  %v2711_v46 = vcombine.low %v4067_v0, %v4070_v1  ;;  %v1567_v58 = vrot.slane %v1565_v45, 5  ;;  %2024 = vst [vmem:[%s4134_s7 + $0x38] sm:$0xf] %v3664_v5 }
  0xfd   : > { %2963 = vmatprep.subr.bf16.mxu0 %v3368_v8  ;;  %1858 = vmatprep.mubr.bf16.mxu0 %v3371_v20  ;;  %v1492_v62 = vor.u32 %v1491_v53, %v1488_v52  ;;  %v1517_v8 = vshll.u32 %v4067_v0, 16  ;;  %v1484_v9 = vsel %vm3966_vm2, %v1479_v61, %v1483_v41  ;;  %v4092_v20 = vld [vmem:[%s3943_s30 + $0x40] sm:$0xf]  ;;  %v1547_v41 = vrot.slane %v1545_v33, 5  ;;  %v3377_v53 = vld [vmem:[%s3943_s30 + $0x70] ss:$8 sps:$4 sm:$0xff]  }
  0xfe   : > { %v2717_v15 = vcombine.low %v1470_v3, %v1484_v9  ;;  %v1507_v17 = vrot.slane %v1506_v4, 4  ;;  %v1556_v39 = vshrl.u32 %v4092_v20, 16  ;;  %v1559_v43 = vshll.u32 %v4092_v20, 16  ;;  %v3388_v3 = vld [vmem:[%s3943_s30 + $0xf8] ss:$8 sps:$4 sm:$0xff]  }
  0xff   : > { %3074 = vmatpush3.bf16.msra.mxu1 %v3366_v12  ;;  %v1493_v10 = vrot.slane %v1492_v62, 4  ;;  %v1528_v12 = vshrl.u32 %v4070_v1, 16  ;;  %v1519_v19 = vrot.slane %v1517_v8, 5  ;;  %v1548_v51 = vor.u32 %v1547_v41, %v1544_v38  ;;  %v3387_v4 = vld [vmem:[%s3943_s30 + $0xd8] ss:$8 sps:$4 sm:$0xff]  }
 0x100   : > { %2964 = vmatpush3.bf16.msra.mxu0 %v3370_v14  ;;  %3075 = vmatprep.subr.bf16.mxu1 %v3369_v18  ;;  %v4089_v14 = vld [vmem:[#allocation10 + $0x18] sm:$0xff]   ;;  %v1512_v26 = vsel %vm3966_vm2, %v1507_v17, %v1511_v63  ;;  %v1558_v44 = vrot.slane %v1556_v39, 4  ;;  %v1561_v52 = vrot.slane %v1559_v43, 5  ;;  %v3385_v63 = vld [vmem:[#allocation10 + $0x30] sm:$0xff]   ;;  %2025 = vst [vmem:[%s4134_s7 + $0x3c] sm:$0x1] %v3664_v5 }
 0x101   : > { %3085 = vmatprep.subr.bf16.mxu0 %v4035_v16  ;;  %v1498_v21 = vsel %vm3966_vm2, %v1493_v10, %v1497_v57  ;;  %v1530_v23 = vrot.slane %v1528_v12, 4  ;;  %3077 = vmatprep.mubr.bf16.mxu1 %v2717_v15  ;;  %v1549_v56 = vrot.slane %v1548_v51, 4  ;;  %2026 = vst [vmem:[%s4134_s7 + $0x40] sm:$0xf] %v3664_v5  ;;  %2027 = vst [vmem:[%s4134_s7 + $0x44] sm:$0x1] %v3664_v5 }
 0x102   : > { %v2718_v31 = vcombine.low %v1498_v21, %v1512_v26  ;;  %v1562_v57 = vor.u32 %v1561_v52, %v1558_v44  ;;  %2028 = vst [vmem:[%s4134_s7 + $0x48] sm:$0xf] %v3664_v5  ;;  %2029 = vst [vmem:[%s4134_s7 + $0x4c] sm:$0x1] %v3664_v5 }
 0x103   : > { %1859 = vmatmul.mubr.bf16.vlgmr.msra.gmra.mrb[32].mxu0 %v2709_v32  ;;  %3076 = vmatpush3.bf16.msra.mxu1 %v3369_v18  ;;  %v1516_v18 = vrot.slane %v1514_v7, 4  ;;  %v1533_v32 = vrot.slane %v1531_v24, 5  ;;  %v1554_v61 = vsel %vm3966_vm2, %v1549_v56, %v1553_v42 }
 0x104   : > { %3086 = vmatpush3.bf16.msra.mxu0 %v4035_v16  ;;  %3109 = vmatprep.subr.bf16.mxu1 %v4035_v16  ;;  %v1563_v62 = vrot.slane %v1562_v57, 4 }
 0x105   : > { %3087 = vmatprep.subr.bf16.mxu0 %v4060_v50  ;;  %1866 = vmatprep.mubr.bf16.mxu0 %v3373_v60  ;;  %v1520_v27 = vor.u32 %v1519_v19, %v1516_v18  ;;  %v1534_v40 = vor.u32 %v1533_v32, %v1530_v23  ;;  %v3381_v60 = vld [vmem:[%s3943_s30 + $0x80] ss:$8 sps:$4 sm:$0xff]  }
 0x106   : > { %3078 = vmatmul.mubr.bf16.vlgmr.msra.gmra.mrb[0].mxu1 %v2718_v31  ;;  %v1568_v0 = vsel %vm3966_vm2, %v1563_v62, %v1567_v58 }
 0x107   : > { %v1521_v36 = vrot.slane %v1520_v27, 4  ;;  %3117 = vmatpush3.bf16.msra.mxu1 %v4035_v16  ;;  %v1535_v49 = vrot.slane %v1534_v40, 4  ;;  %v2720_v1 = vcombine.low %v1554_v61, %v1568_v0 }
 0x108   : > { %3088 = vmatpush3.bf16.msra.mxu0 %v4060_v50  ;;  %3110 = vmatprep.subr.bf16.mxu1 %v4060_v50 }
 0x109   : > { %3089 = vmatprep.subr.bf16.mxu0 %v4062_v55  ;;  %v1526_v47 = vsel %vm3966_vm2, %v1521_v36, %v1525_v22  ;;  %v1540_v16 = vsel %vm3966_vm2, %v1535_v49, %v1539_v37 }
 0x10a   : > { %v2719_v59 = vcombine.low %v1526_v47, %v1540_v16 }
 0x10b   : > { %1867 = vmatmul.mubr.bf16.gmra.mrb[36].mxu0 %v2710_v2  ;;  %3118 = vmatpush3.bf16.msra.mxu1 %v4060_v50  ;;  %v2712_v50 = vcombine.low %v4086_v13, %v4092_v20  ;;  %v3386_v2 = vld [vmem:[#allocation10 + $0x38] sm:$0xff]  }
 0x10c   : > { %3090 = vmatpush3.bf16.msra.mxu0 %v4062_v55  ;;  %1874 = vmatprep.mubr.bf16.mxu0 %v3377_v53 }
 0x10d   : > { %3091 = vmatprep.subr.bf16.mxu0 %v4089_v14  ;;  %3111 = vmatprep.subr.bf16.mxu1 %v4062_v55 }
 0x10e   : > { %3081 = vmatprep.mubr.bf16.mxu1 %v2719_v59 }
 0x10f   : > { %3119 = vmatpush3.bf16.msra.mxu1 %v4062_v55  ;;  %v3390_v55 = vld [vmem:[%s3943_s30 + $0x108] ss:$8 sps:$4 sm:$0xff]   ;;  %s3539_s30 = scalar_lea.vmem %s3538_s8, 1024 }
 0x110   : > { %3092 = vmatpush3.bf16.msra.mxu0 %v4089_v14  ;;  %3112 = vmatprep.subr.bf16.mxu1 %v4089_v14  ;;  %p3541_p7 = scmp.lt.s32.totalorder %s3539_s30, %s3533_s20 }
 0x111   : > { %3093 = vmatprep.subr.bf16.mxu0 %v3383_v35  ;;  %3082 = vmatmul.mubr.bf16.gmra.mrb[4].mxu1 %v2720_v1 }
 0x112   : > { %3105 = vmatprep.mubr.bf16.mxu1 %v3388_v3  ;;  %p3542_p9 = por %p3541_p7, %p3540_p3 }
 0x113   : > { %1875 = vmatmul.mubr.bf16.gmra.mrb[40].mxu0 %v2711_v46  ;;  %3120 = vmatpush3.bf16.msra.mxu1 %v4089_v14 }
 0x114   : > { %3094 = vmatpush3.bf16.msra.mxu0 %v3383_v35  ;;  %1882 = vmatprep.mubr.bf16.mxu0 %v3381_v60  ;;  %p3543_p0 = pnand %p3542_p9, %p3536_p10 }
 0x115   : > { %3095 = vmatprep.subr.bf16.mxu0 %v3384_v54  ;;  %3113 = vmatprep.subr.bf16.mxu1 %v3383_v35 }
 0x117   : > { %3121 = vmatpush3.bf16.msra.mxu1 %v3383_v35 }
 0x118   : > { %3096 = vmatpush3.bf16.msra.mxu0 %v3384_v54  ;;  %3114 = vmatprep.subr.bf16.mxu1 %v3384_v54 }
 0x119   : > { %3097 = vmatprep.subr.bf16.mxu0 %v3385_v63 }
 0x11b   : > { %1883 = vmatmul.mubr.bf16.gmra.mrb[44].mxu0 %v2712_v50  ;;  %3122 = vmatpush3.bf16.msra.mxu1 %v3384_v54 }
 0x11c   : > { %3098 = vmatpush3.bf16.msra.mxu0 %v3385_v63  ;;  %3101 = vmatprep.mubr.bf16.mxu0 %v3387_v4 }
 0x11d   : > { %3099 = vmatprep.subr.bf16.mxu0 %v3386_v2  ;;  %3115 = vmatprep.subr.bf16.mxu1 %v3385_v63 }
 0x11f   : > { %3123 = vmatpush3.bf16.msra.mxu1 %v3385_v63 }
 0x120   : > { %3100 = vmatpush3.bf16.msra.mxu0 %v3386_v2  ;;  %3116 = vmatprep.subr.bf16.mxu1 %v3386_v2 }
 0x123   : > { %3102 = vmatmul.mubr.bf16.vlgmr.msra.gmra.mrb[48].mxu0 %v3389_v48  ;;  %3124 = vmatpush3.bf16.msra.mxu1 %v3386_v2 }
 0x126   : > { %3106 = vmatmul.mubr.bf16.vlgmr.msra.gmra.mrb[8].mxu1 %v3390_v55 }
 0x196   : > { %v2861_v6 = vpop.f32.mrb[0].mxu0 }
 0x197   : > { %v2862_v7 = vpop.f32.mrb[1].mxu0 }
 0x198   : > { %v2863_v8 = vadd.f32 %v2862_v7, %v2861_v6  ;;  %v2864_v9 = vpop.f32.mrb[2].mxu0 }
 0x199   : > { %v2865_v10 = vpop.f32.mrb[3].mxu0 }
 0x19a   : > { %v2866_v11 = vadd.f32 %v2865_v10, %v2864_v9 }
 0x19e   : > { %v2867_v12 = vpop.f32.mrb[4].mxu0 }
 0x19f   : > { %v2868_v13 = vpop.f32.mrb[5].mxu0 }
 0x1a0   : > { %v2869_v14 = vadd.f32 %v2868_v13, %v2867_v12  ;;  %v2870_v15 = vpop.f32.mrb[6].mxu0 }
 0x1a1   : > { %v2871_v17 = vpop.f32.mrb[7].mxu0 }
 0x1a2   : > { %v2872_v18 = vadd.f32 %v2871_v17, %v2870_v15  ;;  %v4160_v15 = vld [vmem:[#allocation7] ss:$0 sm:$0xff] }
 0x1a6   : > { %v2873_v19 = vpop.f32.mrb[8].mxu0 }
 0x1a7   : > { %v2874_v20 = vpop.f32.mrb[9].mxu0 }
 0x1a8   : > { %v2875_v21 = vadd.f32 %v2874_v20, %v2873_v19  ;;  %v2876_v22 = vpop.f32.mrb[10].mxu0 }
 0x1a9   : > { %v2877_v23 = vpop.f32.mrb[11].mxu0 }
 0x1aa   : > { %v2878_v24 = vadd.f32 %v2877_v23, %v2876_v22 }
 0x1ae   : > { %v2879_v25 = vpop.f32.mrb[12].mxu0 }
 0x1af   : > { %v2880_v26 = vpop.f32.mrb[13].mxu0 }
 0x1b0   : > { %v2881_v27 = vadd.f32 %v2880_v26, %v2879_v25  ;;  %v2882_v28 = vpop.f32.mrb[14].mxu0 }
 0x1b1   : > { %v2883_v29 = vpop.f32.mrb[15].mxu0 }
 0x1b2   : > { %v2884_v30 = vadd.f32 %v2883_v29, %v2882_v28 }
 0x1b6   : > { %v2913_v31 = vpop.f32.mrb[16].mxu0 }
 0x1b7   : > { %v2914_v32 = vpop.f32.mrb[17].mxu0 }
 0x1b8   : > { %v2915_v33 = vadd.f32 %v2914_v32, %v2913_v31  ;;  %v2916_v34 = vpop.f32.mrb[18].mxu0 }
 0x1b9   : > { %v2917_v35 = vpop.f32.mrb[19].mxu0 }
 0x1ba   : > { %v3128_v36 = vadd.f32 %v2915_v33, %v2863_v8  ;;  %v2918_v37 = vadd.f32 %v2917_v35, %v2916_v34 }
 0x1bc   : > { %v3134_v38 = vadd.f32 %v2918_v37, %v2866_v11 }
 0x1be   : > { %v2919_v39 = vpop.f32.mrb[20].mxu0 }
 0x1bf   : > { %v2920_v40 = vpop.f32.mrb[21].mxu0 }
 0x1c0   : > { %v2921_v41 = vadd.f32 %v2920_v40, %v2919_v39  ;;  %v2922_v42 = vpop.f32.mrb[22].mxu0 }
 0x1c1   : > { %v2923_v43 = vpop.f32.mrb[23].mxu0 }
 0x1c2   : > { %v3125_v44 = vadd.f32 %v2921_v41, %v2869_v14  ;;  %v2924_v45 = vadd.f32 %v2923_v43, %v2922_v42 }
 0x1c4   : > { %v3131_v46 = vadd.f32 %v2924_v45, %v2872_v18 }
 0x1c6   : > { %v2925_v47 = vpop.f32.mrb[24].mxu0 }
 0x1c7   : > { %v2926_v49 = vpop.f32.mrb[25].mxu0 }
 0x1c8   : > { %v2927_v51 = vadd.f32 %v2926_v49, %v2925_v47  ;;  %v2928_v52 = vpop.f32.mrb[26].mxu0 }
 0x1c9   : > { %v2929_v53 = vpop.f32.mrb[27].mxu0 }
 0x1ca   : > { %v3140_v54 = vadd.f32 %v2927_v51, %v2875_v21  ;;  %v2930_v16 = vadd.f32 %v2929_v53, %v2928_v52  ;;  %v4162_v21 = vld [vmem:[#allocation8] ss:$0 sm:$0xff] }
 0x1cc   : > { %v3146_v56 = vadd.f32 %v2930_v16, %v2878_v24 }
 0x1ce   : > { %v2931_v57 = vpop.f32.mrb[28].mxu0 }
 0x1cf   : > { %v2932_v58 = vpop.f32.mrb[29].mxu0 }
 0x1d0   : > { %v2933_v59 = vadd.f32 %v2932_v58, %v2931_v57  ;;  %v2934_v60 = vpop.f32.mrb[30].mxu0  ;;  %v2757_v57 = vld [vmem:[%s4134_s7 + $0xc] sm:$0x1] }
 0x1d1   : > { %v2935_v61 = vpop.f32.mrb[31].mxu0 }
 0x1d2   : > { %v4156_v62 = vadd.f32 %v2933_v59, %v2881_v27  ;;  %v2936_v63 = vadd.f32 %v2935_v61, %v2934_v60 }
 0x1d4   : > { %v4158_v0 = vadd.f32 %v2936_v63, %v2884_v30 }
 0x1d6   : > { %v2965_v1 = vpop.f32.mrb[32].mxu0 }
 0x1d7   : > { %v2966_v50 = vpop.f32.mrb[33].mxu0 }
 0x1d8   : > { %v2967_v2 = vadd.f32 %v2966_v50, %v2965_v1  ;;  %v2968_v3 = vpop.f32.mrb[34].mxu0 }
 0x1d9   : > { %v2969_v4 = vpop.f32.mrb[35].mxu0  ;;  %v3079_v11 = vpop.f32.mrb[0].mxu1 }
 0x1da   : > { %v3129_v48 = vadd.f32 %v3128_v36, %v2967_v2  ;;  %v2970_v55 = vadd.f32 %v2969_v4, %v2968_v3  ;;  %v1925_v14 = vpop.f32.mrb[1].mxu1 }
 0x1db   : > { %v3080_v18 = vpop.f32.mrb[2].mxu1 }
 0x1dc   : > { %v3135_v5 = vadd.f32 %v3134_v38, %v2970_v55  ;;  %v3130_v17 = vadd.f32 %v3129_v48, %v1925_v14  ;;  %v1928_v22 = vpop.f32.mrb[3].mxu1 }
 0x1de   : > { %v2971_v6 = vpop.f32.mrb[36].mxu0  ;;  %v1971_v23 = vmul.f32 %v3130_v17, %v4160_v15  ;;  %v3136_v24 = vadd.f32 %v3135_v5, %v1928_v22  ;;  %v2763_v5 = vld [vmem:[%s4134_s7 + $0x18] sm:$0xf]  ;;  %v2765_v17 = vld [vmem:[%s4134_s7 + $0x1c] sm:$0x1] }
 0x1df   : > { %v2972_v7 = vpop.f32.mrb[37].mxu0 }
 0x1e0   : > { %v2973_v8 = vadd.f32 %v2972_v7, %v2971_v6  ;;  %v2974_v9 = vpop.f32.mrb[38].mxu0  ;;  %v1986_v28 = vadd.f32 %v4162_v21, %v1971_v23  ;;  %v1972_v29 = vmul.f32 %v3136_v24, %v4160_v15 }
 0x1e1   : > { %v2975_v10 = vpop.f32.mrb[39].mxu0 }
 0x1e2   : > { %v3126_v12 = vadd.f32 %v3125_v44, %v2973_v8  ;;  %v2976_v13 = vadd.f32 %v2975_v10, %v2974_v9  ;;  %v1994_v35 = vmax.f32 %v1986_v28, 0.0  ;;  %v1987_v36 = vadd.f32 %v4162_v21, %v1972_v29 }
 0x1e4   : > { %v3127_v19 = vadd.f32 %v3126_v12, %v3079_v11  ;;  %v3132_v20 = vadd.f32 %v3131_v46, %v2976_v13  ;;  %v2813_v42 = vpack.c.bf16 %v1994_v35, %v1994_v35  ;;  %v1995_v43 = vmax.f32 %v1987_v36, 0.0  ;;  %v4172_v46 = vpop.f32.mrb[4].mxu1 }
 0x1e5   : > { %v1941_v53 = vpop.f32.mrb[5].mxu1 }
 0x1e6   : > { %v1973_v25 = vmul.f32 %v3127_v19, %v4160_v15  ;;  %v3133_v26 = vadd.f32 %v3132_v20, %v3080_v18  ;;  %v2977_v27 = vpop.f32.mrb[40].mxu0  ;;  %v2055_v49 = vshrl.u32 %v2813_v42, 16  ;;  %v2814_v51 = vpack.c.bf16 %v1995_v43, %v1995_v43  ;;  %v4176_v59 = vpop.f32.mrb[6].mxu1  ;;  %v2759_v19 = vld [vmem:[%s4134_s7 + $0x10] sm:$0xf] }
 0x1e7   : > { %v2978_v32 = vpop.f32.mrb[41].mxu0  ;;  %v2058_v16 = vshll.u32 %v2813_v42, 16  ;;  %v1944_v4 = vpop.f32.mrb[7].mxu1  ;;  %v2761_v20 = vld [vmem:[%s4134_s7 + $0x14] sm:$0x1] }
 0x1e8   : > { %v1988_v30 = vadd.f32 %v4162_v21, %v1973_v25  ;;  %v1974_v31 = vmul.f32 %v3133_v26, %v4160_v15  ;;  %v2979_v33 = vadd.f32 %v2978_v32, %v2977_v27  ;;  %v2980_v34 = vpop.f32.mrb[42].mxu0  ;;  %v2057_v1 = vrot.slane %v2055_v49, 7 }
 0x1e9   : > { %v2981_v39 = vpop.f32.mrb[43].mxu0  ;;  %v2063_v50 = vshrl.u32 %v2814_v51, 16  ;;  %v2066_v2 = vshll.u32 %v2814_v51, 16 }
 0x1ea   : > { %v1996_v37 = vmax.f32 %v1988_v30, 0.0  ;;  %v1989_v38 = vadd.f32 %v4162_v21, %v1974_v31  ;;  %v3141_v40 = vadd.f32 %v3140_v54, %v2979_v33  ;;  %v2982_v41 = vadd.f32 %v2981_v39, %v2980_v34  ;;  %v2755_v54 = vld [vmem:[%s4134_s7 + $0x8] sm:$0xf]  ;;  %v2767_v30 = vld [vmem:[%s4134_s7 + $0x20] sm:$0xf] }
 0x1eb   : > { %v2060_v11 = vor.u32 %v2058_v16, %v2057_v1  ;;  %v2061_v12 = vrot.slane %v2057_v1, 4  ;;  %v2065_v13 = vrot.slane %v2063_v50, 7  ;;  %v2769_v31 = vld [vmem:[%s4134_s7 + $0x24] sm:$0x1] }
 0x1ec   : > { %v2815_v44 = vpack.c.bf16 %v1996_v37, %v1996_v37  ;;  %v1997_v45 = vmax.f32 %v1989_v38, 0.0  ;;  %v3147_v47 = vadd.f32 %v3146_v56, %v2982_v41  ;;  %v3142_v61 = vadd.f32 %v3141_v40, %v1941_v53 }
 0x1ed   : > { %v2139_v26 = vsel %vm4180_vm7, %v2060_v11, %v2755_v54  ;;  %v2145_v27 = vsel %vm4186_vm8, %v2061_v12, %v2757_v57  ;;  %v2068_v28 = vor.u32 %v2066_v2, %v2065_v13  ;;  %v2069_v29 = vrot.slane %v2065_v13, 4 }
 0x1ee   : > { %v2071_v52 = vshrl.u32 %v2815_v44, 16  ;;  %v2074_v58 = vshll.u32 %v2815_v44, 16  ;;  %v2816_v60 = vpack.c.bf16 %v1997_v45, %v1997_v45  ;;  %v2983_v63 = vpop.f32.mrb[44].mxu0  ;;  %v1975_v8 = vmul.f32 %v3142_v61, %v4160_v15  ;;  %2756 = vst [vmem:[%s4134_s7 + $0x8] sm:$0xf] %v2139_v26 }
 0x1ef   : > { %v2984_v48 = vpop.f32.mrb[45].mxu0  ;;  %v3148_v9 = vadd.f32 %v3147_v47, %v1944_v4  ;;  %2758 = vst [vmem:[%s4134_s7 + $0xc] sm:$0x1] %v2145_v27  ;;  %v2148_v36 = vsel %vm4180_vm7, %v2068_v28, %v2759_v19  ;;  %v2151_v37 = vsel %vm4186_vm8, %v2069_v29, %v2761_v20  ;;  %v2779_v27 = vld [vmem:[%s4134_s7 + $0x38] sm:$0xf] }
 0x1f0   : > { %v2073_v3 = vrot.slane %v2071_v52, 7  ;;  %v2079_v6 = vshrl.u32 %v2816_v60, 16  ;;  %v2082_v7 = vshll.u32 %v2816_v60, 16  ;;  %v2986_v10 = vpop.f32.mrb[46].mxu0  ;;  %v1990_v24 = vadd.f32 %v4162_v21, %v1975_v8  ;;  %2760 = vst [vmem:[%s4134_s7 + $0x10] sm:$0xf] %v2148_v36 }
 0x1f1   : > { %v2987_v18 = vpop.f32.mrb[47].mxu0  ;;  %v1976_v25 = vmul.f32 %v3148_v9, %v4160_v15  ;;  %2762 = vst [vmem:[%s4134_s7 + $0x14] sm:$0x1] %v2151_v37  ;;  %v2985_v42 = vadd.f32 %v2984_v48, %v2983_v63  ;;  %v2781_v28 = vld [vmem:[%s4134_s7 + $0x3c] sm:$0x1] }
 0x1f2   : > { %v2076_v14 = vor.u32 %v2074_v58, %v2073_v3  ;;  %v2077_v22 = vrot.slane %v2073_v3, 4  ;;  %v2081_v23 = vrot.slane %v2079_v6, 7  ;;  %v1998_v38 = vmax.f32 %v1990_v24, 0.0  ;;  %v2775_v6 = vld [vmem:[%s4134_s7 + $0x30] sm:$0xf] }
 0x1f3   : > { %v1991_v39 = vadd.f32 %v4162_v21, %v1976_v25  ;;  %v2988_v43 = vadd.f32 %v2987_v18, %v2986_v10  ;;  %v3138_v51 = vadd.f32 %v4156_v62, %v2985_v42  ;;  %v2771_v62 = vld [vmem:[%s4134_s7 + $0x28] sm:$0xf]  ;;  %v2785_v36 = vld [vmem:[%s4134_s7 + $0x44] sm:$0x1] }
 0x1f4   : > { %v2154_v32 = vsel %vm4180_vm7, %v2076_v14, %v2763_v5  ;;  %v2157_v33 = vsel %vm4186_vm8, %v2077_v22, %v2765_v17  ;;  %v2084_v34 = vor.u32 %v2082_v7, %v2081_v23  ;;  %v2085_v35 = vrot.slane %v2081_v23, 4  ;;  %v2777_v7 = vld [vmem:[%s4134_s7 + $0x34] sm:$0x1] }
 0x1f5   : > { %2764 = vst [vmem:[%s4134_s7 + $0x18] sm:$0xf] %v2154_v32  ;;  %2766 = vst [vmem:[%s4134_s7 + $0x1c] sm:$0x1] %v2157_v33  ;;  %v2817_v45 = vpack.c.bf16 %v1998_v38, %v1998_v38  ;;  %v1999_v47 = vmax.f32 %v1991_v39, 0.0  ;;  %v3144_v52 = vadd.f32 %v4158_v0, %v2988_v43  ;;  %v3139_v60 = vadd.f32 %v3138_v51, %v4172_v46 }
 0x1f6   : > { %v2160_v40 = vsel %vm4180_vm7, %v2084_v34, %v2767_v30  ;;  %v2163_v41 = vsel %vm4186_vm8, %v2085_v35, %v2769_v31  ;;  %v3103_v44 = vpop.f32.mrb[48].mxu0  ;;  %v2773_v0 = vld [vmem:[%s4134_s7 + $0x2c] sm:$0x1]  ;;  %v2783_v35 = vld [vmem:[%s4134_s7 + $0x40] sm:$0xf] }
 0x1f7   : > { %2768 = vst [vmem:[%s4134_s7 + $0x20] sm:$0xf] %v2160_v40  ;;  %2770 = vst [vmem:[%s4134_s7 + $0x24] sm:$0x1] %v2163_v41  ;;  %v2319_v49 = vpop.f32.mrb[49].mxu0  ;;  %v2087_v16 = vshrl.u32 %v2817_v45, 16  ;;  %v2818_v54 = vpack.c.bf16 %v1999_v47, %v1999_v47  ;;  %v3145_v61 = vadd.f32 %v3144_v52, %v4176_v59  ;;  %v1977_v3 = vmul.f32 %v3139_v60, %v4160_v15 }
 0x1f8   : > { %v3104_v53 = vpop.f32.mrb[50].mxu0  ;;  %v2090_v50 = vshll.u32 %v2817_v45, 16 }
 0x1f9   : > { %v2830_v57 = vpack.c.bf16 %v3104_v53, %v3103_v44  ;;  %v2322_v58 = vpop.f32.mrb[51].mxu0  ;;  %v2089_v1 = vrot.slane %v2087_v16, 7  ;;  %v2095_v2 = vshrl.u32 %v2818_v54, 16  ;;  %v1978_v46 = vmul.f32 %v3145_v61, %v4160_v15  ;;  %v3107_v18 = vpop.f32.mrb[8].mxu1 }
 0x1fa   : > { %v2825_v63 = vpack.c.bf16 %v2322_v58, %v2319_v49  ;;  %v2098_v5 = vshll.u32 %v2818_v54, 16  ;;  %v1992_v8 = vadd.f32 %v4162_v21, %v1977_v3  ;;  %v2335_v22 = vpop.f32.mrb[9].mxu1 }
 0x1fb   : > { %2842 = vst [vmem:[%s4229_s17 + $0x8] sm:$0xff] %v2830_v57   ;;  %v2092_v59 = vor.u32 %v2090_v50, %v2089_v1  ;;  %v2093_v4 = vrot.slane %v2089_v1, 4  ;;  %v2097_v48 = vrot.slane %v2095_v2, 7  ;;  %v1993_v9 = vadd.f32 %v4162_v21, %v1978_v46  ;;  %v3108_v23 = vpop.f32.mrb[10].mxu1 }
 0x1fc   : > { %2826 = vst [vmem:[%s4229_s17] sm:$0xff] %v2825_v63   ;;  %v2000_v13 = vmax.f32 %v1992_v8, 0.0  ;;  %v2338_v26 = vpop.f32.mrb[11].mxu1  ;;  %v2840_v29 = vpack.c.bf16 %v3108_v23, %v3107_v18 }
 0x1fd   : > { %v2166_v10 = vsel %vm4180_vm7, %v2092_v59, %v2771_v62  ;;  %v2169_v15 = vsel %vm4186_vm8, %v2093_v4, %v2773_v0  ;;  %v2100_v11 = vor.u32 %v2098_v5, %v2097_v48  ;;  %v2101_v12 = vrot.slane %v2097_v48, 4 }
 0x1fe   : > { %2772 = vst [vmem:[%s4134_s7 + $0x28] sm:$0xf] %v2166_v10  ;;  %2774 = vst [vmem:[%s4134_s7 + $0x2c] sm:$0x1] %v2169_v15  ;;  %v2001_v14 = vmax.f32 %v1993_v9, 0.0  ;;  %v2819_v19 = vpack.c.bf16 %v2000_v13, %v2000_v13  ;;  %v2835_v30 = vpack.c.bf16 %v2338_v26, %v2335_v22 }
 0x1ff   : > { %v2172_v17 = vsel %vm4180_vm7, %v2100_v11, %v2775_v6  ;;  %v2175_v21 = vsel %vm4186_vm8, %v2101_v12, %v2777_v7  ;;  %2844 = vst [vmem:[%s4229_s17 + $0x18] sm:$0xff] %v2840_v29  }
 0x200   : > { %2776 = vst [vmem:[%s4134_s7 + $0x30] sm:$0xf] %v2172_v17  ;;  %2778 = vst [vmem:[%s4134_s7 + $0x34] sm:$0x1] %v2175_v21  ;;  %v2820_v20 = vpack.c.bf16 %v2001_v14, %v2001_v14  ;;  %v2103_v24 = vshrl.u32 %v2819_v19, 16  ;;  %v2106_v32 = vshll.u32 %v2819_v19, 16 }
 0x201   : > { %2843 = vst [vmem:[%s4229_s17 + $0x10] sm:$0xff] %v2835_v30  }
 0x202   : > { %v2111_v25 = vshrl.u32 %v2820_v20, 16  ;;  %v2105_v31 = vrot.slane %v2103_v24, 7  ;;  %v2114_v34 = vshll.u32 %v2820_v20, 16 }
 0x204   : > { %v2113_v33 = vrot.slane %v2111_v25, 7  ;;  %v2108_v37 = vor.u32 %v2106_v32, %v2105_v31  ;;  %v2109_v38 = vrot.slane %v2105_v31, 4 }
 0x206   : > { %v2116_v39 = vor.u32 %v2114_v34, %v2113_v33  ;;  %v2117_v40 = vrot.slane %v2113_v33, 4 }
 0x207   : > { %3546 = shalt.err (!%p3543_p0)
}
 0x208   : > { %s3547_s29 = scalar_lea.hbm %s4263_s10, 512  ;;  %s3551_s13 = scalar_lea.hbm %s4376_s6, 1024 }
 0x209   : > { %p3548_p4 = scmp.ne.s32.totalorder %s4263_s10, %s3547_s29  ;;  %p3552_p12 = scmp.lt.u32.totalorder %s4263_s10, %s4376_s6 }
 0x20a   : > { %p3553_p1 = scmp.lt.u32.totalorder %s3551_s13, %s3547_s29  ;;  %p3555_p2 = scmp.lt.u32.totalorder %s3547_s29, %s4263_s10 }
 0x20b   : > { %p3549_p13 = pnand %p3548_p4, %p3883_p5 }
 0x20c   : > { %p3554_p11 = por %p3553_p1, %p3552_p12 }
 0x20d   : > { %p3550_p6 = pneg %p3549_p13 }
 0x20e   : > { %p3556_p8 = por %p3555_p2, %p3554_p11 }
 0x210   : > { %p3557_p10 = pnand %p3556_p8, %p3550_p6 }
 0x212   : > { %3560 = shalt.err (!%p3557_p10)
}
 0x213   : > { %s3666_s20 = smov 64   ;;  %s3667_s11 = smov 4   ;;  %v2178_v41 = vsel %vm4180_vm7, %v2108_v37, %v2779_v27  ;;  %v2181_v42 = vsel %vm4186_vm8, %v2109_v38, %v2781_v28  ;;  %v2184_v43 = vsel %vm4180_vm7, %v2116_v39, %v2783_v35  ;;  %v2187_v44 = vsel %vm4186_vm8, %v2117_v40, %v2785_v36 }
 0x214   : > { %3189 = dma.vmem_to_hbm [thread:$0]  (%p3883_p5), %s4255_s18, 512, %s4263_s10, %s2372_s12, %s3666_s20, %s3666_s20, %s3667_s11  }
 0x215   : > { %s4406_s29 = sld [smem:[#allocation21_spill]]  ;;  %2780 = vst [vmem:[%s4134_s7 + $0x38] sm:$0xf] %v2178_v41  ;;  %2782 = vst [vmem:[%s4134_s7 + $0x3c] sm:$0x1] %v2181_v42  ;;  %s2367_s24 = scalar_lea.sflag [#allocation4], %s3939_s27 }
 0x216   : > { %2784 = vst [vmem:[%s4134_s7 + $0x40] sm:$0xf] %v2184_v43  ;;  %2786 = vst [vmem:[%s4134_s7 + $0x44] sm:$0x1] %v2187_v44  ;;  %s3561_s18 = scalar_lea.vmem %s4306_s16, 1280 }
 0x217   : > { %p3562_p3 = scmp.ne.s32.totalorder %s4306_s16, %s3561_s18 }
 0x219   : > { %p3563_p7 = pnand %p3562_p3, %p3883_p5 }
 0x21b   : > { %s4302_s9 = scalar_lea.hbm %s4406_s29, %s3169_s14  ;;  %p3564_p9 = pneg %p3563_p7 }
 0x21c   : > { %s3668_s14 = smov [#allocation11]  }
 0x21d   : > { %s3565_s10 = sshll.u32 %s3668_s14, 4  ;;  %s3566_s10 = int_to_ptr.vmem [resolvable:$false] %s3565_s10 }
 0x21e   : > { %s3567_s12 = scalar_lea.vmem %s3566_s10, 2560  ;;  %p3568_p0 = scmp.lt.s32.totalorder %s4306_s16, %s3566_s10 }
 0x21f   : > { %p3569_p4 = scmp.lt.s32.totalorder %s3567_s12, %s3561_s18 }
 0x221   : > { %p3570_p13 = por %p3569_p4, %p3568_p0 }
 0x223   : > { %p3571_p6 = pnand %p3570_p13, %p3564_p9 }
 0x225   : > { %3574 = shalt.err (!%p3571_p6)
}
 0x226   : > { %s3575_s7 = scalar_lea.hbm %s4302_s9, 1280  ;;  %s3579_s5 = scalar_lea.hbm %s4406_s29, 2560 }
 0x227   : > { %p3576_p12 = scmp.ne.s32.totalorder %s4302_s9, %s3575_s7  ;;  %p3580_p2 = scmp.lt.u32.totalorder %s4302_s9, %s4406_s29 }
 0x228   : > { %p3581_p8 = scmp.lt.u32.totalorder %s3579_s5, %s3575_s7  ;;  %p3583_p3 = scmp.lt.u32.totalorder %s3575_s7, %s4302_s9 }
 0x229   : > { %p3577_p1 = pnand %p3576_p12, %p3883_p5 }
 0x22a   : > { %p3582_p10 = por %p3581_p8, %p3580_p2 }
 0x22b   : > { %p3578_p11 = pneg %p3577_p1 }
 0x22c   : > { %p3584_p7 = por %p3583_p3, %p3582_p10 }
 0x22e   : > { %p3585_p9 = pnand %p3584_p7, %p3578_p11 }
 0x230   : > { %3588 = shalt.err (!%p3585_p9)
}
 0x231   : > { %3188 = dma.vmem_to_hbm [thread:$0]  (%p3883_p5), %s4306_s16, 1280, %s4302_s9, %s2367_s24, %s3666_s20, %s3666_s20, %s3667_s11  }
 0x232 PF: > { %s4407_s30 = sld [smem:[#allocation19_spill]]  ;;  %s4408_s18 = sld [smem:[#allocation20_spill]] }
 0x233   : > { %p4410_p4 = scmp.ge.s32.totalorder %s3655_s26, 2 }
 0x238   : > { %s2418_s14 = sand.u32 1, %s4407_s30   ;;  %p4409_p0 = scmp.ne.s32.totalorder %s4408_s18, 0 }
 0x239   : > { %s2419_s10 = scalar_lea.sflag [#allocation4], %s2418_s14 }
 0x23a   : > { %p3210_p13 = pnand %p4410_p4, %p4409_p0 }
 0x23c   : > { %3626 = dma.done.wait (!%p3210_p13), %s2419_s10, 1280  }
 0x23d   : > { %3628 = vsyncadd (!%p3210_p13), %s2419_s10, 4294966016  ;;  %s2428_s19 = scalar_lea.sflag [#allocation13], %s2418_s14 }
 0x23e   : > { %3630 = dma.done.wait (!%p3210_p13), %s2428_s19, 512  }
 0x23f   : > { %3632 = vsyncadd (!%p3210_p13), %s2428_s19, 4294966784  ;;  %s28_s26 = sadd.s32 1, %s3655_s26   ;;  %s4411_s21 = smov %s3639_s22 }
 0x240   : > { %p25_p6 = scmp.ge.s32.totalorder %s28_s26, 4   ;;  %s4412_s22 = smov %s3643_s23 }
 0x241   : > { %s4413_s23 = smov %s3895_s15  ;;  %s4414_s24 = smov %s3651_s25 }
 0x242   : > { %s4415_s25 = smov %s4417_s28  ;;  %27 = sbr.rel (!%p25_p6) target bundleno = 12 (0xc), region = 130 }
 0x249   :  { %2433 = vsyncpa [#allocation3], 1 }
 0x24a   :  { %2435 = vsyncpa [#allocation3 + $0x1], 1 }
 0x24b   :  { %2436 = vsyncpa [#allocation6], 1 }
 0x24c   :  { %2437 = vsyncpa [#allocation9], 1 }
 0x24d   :  { %2438 = vsyncpa [#allocation4], 1 }
 0x24e   :  { %2440 = vsyncpa [#allocation4 + $0x1], 1 }
 0x24f   :  { %2441 = vsyncpa [#allocation13], 1 }
 0x250   :  { %2443 = vsyncpa [#allocation13 + $0x1], 1 }

</bundles_post_ra>
